<compile_context>
chip_gen: v5e
topology: v5e:2x2
jax: 0.10.0
libtpu: 0.0.40
codegen_flags: <defaults>
</compile_context>

<pallas_src>
import functools
import math

import jax
import jax.numpy as jnp
from jax import lax
from jax.experimental import pallas as pl
from jax.experimental.pallas import tpu as pltpu


def _layernorm(h, gamma, beta, eps=1e-5):
    # h: (rows, C) f32; gamma/beta: (1, C).  Biased variance, eps inside rsqrt
    # (matches torch.nn.LayerNorm).
    mu = jnp.mean(h, axis=-1, keepdims=True)
    var = jnp.mean((h - mu) ** 2, axis=-1, keepdims=True)
    return (h - mu) * lax.rsqrt(var + eps) * gamma + beta


def _gelu_tanh(x):
    # GELU(approximate='tanh'), f32.
    c = math.sqrt(2.0 / math.pi)
    return 0.5 * x * (1.0 + jnp.tanh(c * (x + 0.044715 * x * x * x)))


def block_kernel(x_ref,
                 ln1_g_ref, ln1_b_ref,
                 w_attn_ref, b_attn_ref,
                 w_aproj_ref, b_aproj_ref,
                 ln2_g_ref, ln2_b_ref,
                 w_fc_ref, b_fc_ref,
                 w_mproj_ref, b_mproj_ref,
                 o_ref,
                 q_sc, k_sc, v_sc,
                 *, n_head, block_q):
    T = x_ref.shape[1]
    C = x_ref.shape[2]
    H = n_head
    hd = C // H
    tq = block_q
    scale = 1.0 / math.sqrt(hd)
    qi = pl.program_id(1)

    # ---- per-batch Q/K/V cache: computed once, at the first q-tile ---------
    @pl.when(qi == 0)
    def _():
        h = _layernorm(x_ref[0], ln1_g_ref[...], ln1_b_ref[...])          # (T, C) f32
        qkv = jnp.dot(h.astype(jnp.bfloat16), w_attn_ref[...],
                      preferred_element_type=jnp.float32) + b_attn_ref[...]   # (T, 3C)
        q_sc[...] = (qkv[:, 0 * C:1 * C] * scale).astype(jnp.bfloat16)    # fold 1/sqrt(hd)
        k_sc[...] = qkv[:, 1 * C:2 * C].astype(jnp.bfloat16)
        v_sc[...] = qkv[:, 2 * C:3 * C].astype(jnp.bfloat16)

    # ---- this q-tile --------------------------------------------------------
    row0 = pl.multiple_of(qi * tq, tq)
    x_t = x_ref[0, pl.ds(row0, tq), :]                                     # (tq, C) f32
    q_t = q_sc[pl.ds(row0, tq), :]                                         # (tq, C) bf16
    qh = jnp.transpose(q_t.reshape(tq, H, hd), (1, 0, 2))                  # (H, tq, hd)

    # Causal mask for the diagonal kv block only, built once per q-tile
    # (hoisted out of the kv loop).  Finite negative avoids inf-inf NaN.
    row = lax.broadcasted_iota(jnp.int32, (tq, tq), 0)
    col = lax.broadcasted_iota(jnp.int32, (tq, tq), 1)
    causal = col <= row

    def kv_block(j, carry, masked):
        m, l, acc = carry
        c0 = pl.multiple_of(j * tq, tq)
        kh = jnp.transpose(k_sc[pl.ds(c0, tq), :].reshape(tq, H, hd), (1, 0, 2))
        vh = jnp.transpose(v_sc[pl.ds(c0, tq), :].reshape(tq, H, hd), (1, 0, 2))
        s = jnp.einsum('hqd,hkd->hqk', qh, kh,
                       preferred_element_type=jnp.float32)                 # (H,tq,tq) f32
        if masked:
            s = jnp.where(causal[None, :, :], s, -1e30)
        m_new = jnp.maximum(m, jnp.max(s, axis=-1, keepdims=True))
        alpha = jnp.exp(m - m_new)                                          # exp -> EUP
        p = jnp.exp(s - m_new)
        l_new = alpha * l + jnp.sum(p, axis=-1, keepdims=True)
        acc_new = alpha * acc + jnp.einsum(
            'hqk,hkd->hqd', p.astype(jnp.bfloat16), vh,
            preferred_element_type=jnp.float32)
        return m_new, l_new, acc_new

    m0 = jnp.full((H, tq, 1), -1e30, jnp.float32)
    l0 = jnp.zeros((H, tq, 1), jnp.float32)
    a0 = jnp.zeros((H, tq, hd), jnp.float32)

    # kv blocks strictly below the diagonal: unmasked; blocks above the
    # diagonal are skipped entirely (causal block-skipping).
    m, l, acc = lax.fori_loop(0, qi, lambda j, c: kv_block(j, c, masked=False),
                              (m0, l0, a0))
    # Diagonal kv block with the causal mask.
    m, l, acc = kv_block(qi, (m, l, acc), masked=True)

    # Normalize AFTER the PV matmul (H*tq*hd multiplies instead of H*tq*tq);
    # the reciprocal lands on the EUP slot.
    acc = acc * pl.reciprocal(l, approx=True)
    y = jnp.transpose(acc, (1, 0, 2)).reshape(tq, C)                       # (tq, C) f32

    y = jnp.dot(y.astype(jnp.bfloat16), w_aproj_ref[...],
                preferred_element_type=jnp.float32) + b_aproj_ref[...]
    x1 = x_t + y                                                           # residual 1

    # ---- MLP branch ----------------------------------------------------------
    h2 = _layernorm(x1, ln2_g_ref[...], ln2_b_ref[...])
    fc = jnp.dot(h2.astype(jnp.bfloat16), w_fc_ref[...],
                 preferred_element_type=jnp.float32) + b_fc_ref[...]       # (tq, 4C)
    fc = _gelu_tanh(fc)                                                    # f32
    mo = jnp.dot(fc.astype(jnp.bfloat16), w_mproj_ref[...],
                 preferred_element_type=jnp.float32) + b_mproj_ref[...]    # (tq, C)

    o_ref[0] = (x1 + mo).astype(o_ref.dtype)                               # residual 2


def _pick_block_q(T):
    for t in (256, 128, 64, 32, 16, 8):
        if T % t == 0:
            return t
    return T


def _cost_estimate(B, T, C, H):
    hd = C // H
    matmul_flops = (2 * T * C * (3 * C)      # qkv
                    + 2 * T * C * C          # attn proj
                    + 2 * T * C * (4 * C)    # fc
                    + 2 * T * (4 * C) * C)   # mlp proj
    attn_flops = (2 * (2 * H * T * T * hd)) // 2     # causal: ~half of full T^2
    flops = B * (matmul_flops + attn_flops)
    transcendentals = B * (H * T * T // 2 + T * 4 * C)   # exp + tanh
    bytes_accessed = (B * T * C * 4 * 2                                   # x in/out f32
                      + 2 * (C * 3 * C + C * C + C * 4 * C + 4 * C * C)   # bf16 weights
                      + 4 * (3 * C + C + 4 * C + C + 4 * C))              # biases + LN
    return pl.CostEstimate(flops=int(flops), transcendentals=int(transcendentals),
                           bytes_accessed=int(bytes_accessed))


def _vmem_limit_bytes(T, C, H, tq):
    bf16, f32 = 2, 4
    weights = (C * 3 * C + C * C + C * 4 * C + 4 * C * C) * bf16      # single-buffered
    io = 2 * T * C * f32 + 2 * tq * C * f32                           # x + out (dbl)
    qkv_cache = 3 * T * C * bf16                                      # scratch
    acts = (T * 3 * C + 3 * H * tq * tq + 2 * H * tq * (C // H) + tq * 4 * C) * f32
    working_set = weights + io + qkv_cache + acts

    try:
        kind = jax.devices()[0].device_kind.lower()
    except Exception:  # pragma: no cover
        kind = ""
    if "v7" in kind:
        cap = 50 * 1024 * 1024        # headroom under v7x's 64 MiB physical VMEM
    elif "v5" in kind or "v6" in kind:
        cap = 100 * 1024 * 1024       # v5e/v6e have 128 MiB physical VMEM
    else:
        cap = 64 * 1024 * 1024        # conservative default
    return int(min(max(working_set * 3 // 2, 32 * 1024 * 1024), cap))


def block_forward(x, params, n_head, *, block_q=None):
    (ln1_g, ln1_b, w_attn, b_attn, w_aproj, b_aproj,
     ln2_g, ln2_b, w_fc, b_fc, w_mproj, b_mproj) = params
    B, T, C = x.shape
    assert C % n_head == 0

    tq = block_q if block_q is not None else _pick_block_q(T)
    if T % tq != 0:
        tq = T
    n_qt = T // tq

    # bf16 weights for the MXU (halves weight DMA + VMEM); all matmuls
    # accumulate in f32 inside the kernel.
    args = (x,
            ln1_g, ln1_b,
            w_attn.astype(jnp.bfloat16), b_attn,
            w_aproj.astype(jnp.bfloat16), b_aproj,
            ln2_g, ln2_b,
            w_fc.astype(jnp.bfloat16), b_fc,
            w_mproj.astype(jnp.bfloat16), b_mproj)

    def const_spec(shape, single_buffer):
        # Block index never changes across the grid -> single-buffer to halve
        # the weight VMEM footprint (key on v7x's 64 MiB physical VMEM).
        if single_buffer:
            return pl.BlockSpec(shape, lambda b, q: (0, 0),
                                pipeline_mode=pl.Buffered(1))
        return pl.BlockSpec(shape, lambda b, q: (0, 0))

    def call(single_buffer):
        in_specs = [
            pl.BlockSpec((1, T, C), lambda b, q: (b, 0, 0)),                 # x
            const_spec((1, C), single_buffer), const_spec((1, C), single_buffer),       # ln1
            const_spec((C, 3 * C), single_buffer), const_spec((1, 3 * C), single_buffer),  # c_attn
            const_spec((C, C), single_buffer), const_spec((1, C), single_buffer),       # attn proj
            const_spec((1, C), single_buffer), const_spec((1, C), single_buffer),       # ln2
            const_spec((C, 4 * C), single_buffer), const_spec((1, 4 * C), single_buffer),  # c_fc
            const_spec((4 * C, C), single_buffer), const_spec((1, C), single_buffer),   # mlp proj
        ]
        kernel = functools.partial(block_kernel, n_head=n_head, block_q=tq)
        return pl.pallas_call(
            kernel,
            out_shape=jax.ShapeDtypeStruct((B, T, C), x.dtype),
            grid_spec=pltpu.PrefetchScalarGridSpec(
                num_scalar_prefetch=0,
                grid=(B, n_qt),
                in_specs=in_specs,
                out_specs=pl.BlockSpec((1, tq, C), lambda b, q: (b, q, 0)),
                scratch_shapes=[pltpu.VMEM((T, C), jnp.bfloat16),   # q (scaled)
                                pltpu.VMEM((T, C), jnp.bfloat16),   # k
                                pltpu.VMEM((T, C), jnp.bfloat16)],  # v
            ),
            compiler_params=pltpu.CompilerParams(
                # Batch splits across TensorCores (v7x).  The q-tile axis must
                # stay sequential because of the per-batch K/V cache in scratch.
                dimension_semantics=("parallel", "arbitrary"),
                vmem_limit_bytes=_vmem_limit_bytes(T, C, n_head, tq)),
            cost_estimate=_cost_estimate(B, T, C, n_head),
        )(*args)

    try:
        return call(single_buffer=True)
    except Exception:
        # pl.Buffered(1) unsupported on this jax version / backend:
        # fall back to default double-buffered weight specs.
        return call(single_buffer=False)


# ---------------------------- pure-JAX reference ----------------------------
def block_reference(x, params, n_head):
    (ln1_g, ln1_b, w_attn, b_attn, w_aproj, b_aproj,
     ln2_g, ln2_b, w_fc, b_fc, w_mproj, b_mproj) = params
    B, T, C = x.shape
    hd = C // n_head

    def ln(h, g, b, eps=1e-5):
        mu = jnp.mean(h, axis=-1, keepdims=True)
        var = jnp.mean((h - mu) ** 2, axis=-1, keepdims=True)
        return (h - mu) / jnp.sqrt(var + eps) * g + b

    h = ln(x, ln1_g, ln1_b)
    qkv = h @ w_attn + b_attn
    q, k, v = jnp.split(qkv, 3, axis=-1)
    q = q.reshape(B, T, n_head, hd).transpose(0, 2, 1, 3)
    k = k.reshape(B, T, n_head, hd).transpose(0, 2, 1, 3)
    v = v.reshape(B, T, n_head, hd).transpose(0, 2, 1, 3)
    s = jnp.einsum('bhtd,bhsd->bhts', q, k) / math.sqrt(hd)
    mask = jnp.tril(jnp.ones((T, T), dtype=bool))
    s = jnp.where(mask, s, -jnp.inf)
    p = jax.nn.softmax(s, axis=-1)
    y = jnp.einsum('bhts,bhsd->bhtd', p, v)
    y = y.transpose(0, 2, 1, 3).reshape(B, T, C)
    y = y @ w_aproj + b_aproj
    x1 = x + y

    h2 = ln(x1, ln2_g, ln2_b)
    c = math.sqrt(2.0 / math.pi)
    fc = h2 @ w_fc + b_fc
    fc = 0.5 * fc * (1.0 + jnp.tanh(c * (fc + 0.044715 * fc ** 3)))
    m = fc @ w_mproj + b_mproj
    return x1 + m


if __name__ == "__main__":
    def make_params(key, C):
        std = 0.02
        ks = jax.random.split(key, 4)
        ln1_g = jnp.ones((1, C), jnp.float32)
        ln1_b = jnp.zeros((1, C), jnp.float32)
        w_attn = std * jax.random.normal(ks[0], (C, 3 * C), jnp.float32)
        b_attn = jnp.zeros((1, 3 * C), jnp.float32)
        w_aproj = std * jax.random.normal(ks[1], (C, C), jnp.float32)
        b_aproj = jnp.zeros((1, C), jnp.float32)
        ln2_g = jnp.ones((1, C), jnp.float32)
        ln2_b = jnp.zeros((1, C), jnp.float32)
        w_fc = std * jax.random.normal(ks[2], (C, 4 * C), jnp.float32)
        b_fc = jnp.zeros((1, 4 * C), jnp.float32)
        w_mproj = std * jax.random.normal(ks[3], (4 * C, C), jnp.float32)
        b_mproj = jnp.zeros((1, C), jnp.float32)
        return (ln1_g, ln1_b, w_attn, b_attn, w_aproj, b_aproj,
                ln2_g, ln2_b, w_fc, b_fc, w_mproj, b_mproj)

    key = jax.random.PRNGKey(0)
    k_x, k_p, k_x2, k_p2 = jax.random.split(key, 4)

    # Config 1: small GPT-2 style block (B=2, T=8, C=32, H=4); single q-tile.
    B, T, C, H = 2, 8, 32, 4
    x = jax.random.normal(k_x, (B, T, C), jnp.float32)
    params = make_params(k_p, C)
    out = jax.block_until_ready(block_forward(x, params, H))
    ref = block_reference(x, params, H)
    assert out.shape == (B, T, C)
    err = float(jnp.max(jnp.abs(out - ref)))
    # bf16 matmul inputs (f32 accumulate) => looser tolerance than pure-f32.
    assert jnp.allclose(out, ref, atol=1e-2, rtol=1e-2), f"max abs diff = {err}"

    # Config 2: T=32 with block_q=8 to exercise the multi-tile flash path
    # (online softmax over kv blocks + causal block skipping).
    B2, T2, C2, H2 = 2, 32, 32, 4
    x2 = jax.random.normal(k_x2, (B2, T2, C2), jnp.float32)
    params2 = make_params(k_p2, C2)
    out2 = jax.block_until_ready(block_forward(x2, params2, H2, block_q=8))
    ref2 = block_reference(x2, params2, H2)
    err2 = float(jnp.max(jnp.abs(out2 - ref2)))
    assert jnp.allclose(out2, ref2, atol=1e-2, rtol=1e-2), f"max abs diff = {err2}"

    print("KERNEL_OK")
</pallas_src>

<mosaic_0001>
module attributes {stable_mosaic.version = 11 : i64} {
  func.func @block_kernel(%arg0: i32, %arg1: i32, %arg2: memref<1x8x32xf32, #tpu.memory_space<vmem>>, %arg3: memref<1x32xf32, #tpu.memory_space<vmem>>, %arg4: memref<1x32xf32, #tpu.memory_space<vmem>>, %arg5: memref<32x96xbf16, #tpu.memory_space<vmem>>, %arg6: memref<1x96xf32, #tpu.memory_space<vmem>>, %arg7: memref<32x32xbf16, #tpu.memory_space<vmem>>, %arg8: memref<1x32xf32, #tpu.memory_space<vmem>>, %arg9: memref<1x32xf32, #tpu.memory_space<vmem>>, %arg10: memref<1x32xf32, #tpu.memory_space<vmem>>, %arg11: memref<32x128xbf16, #tpu.memory_space<vmem>>, %arg12: memref<1x128xf32, #tpu.memory_space<vmem>>, %arg13: memref<128x32xbf16, #tpu.memory_space<vmem>>, %arg14: memref<1x32xf32, #tpu.memory_space<vmem>>, %arg15: memref<1x8x32xf32, #tpu.memory_space<vmem>>, %arg16: memref<8x32xbf16, #tpu.memory_space<vmem>>, %arg17: memref<8x32xbf16, #tpu.memory_space<vmem>>, %arg18: memref<8x32xbf16, #tpu.memory_space<vmem>>) attributes {dimension_semantics = [#tpu.dimension_semantics<parallel>, #tpu.dimension_semantics<arbitrary>], iteration_bounds = array<i64: 2, 1>, scalar_prefetch = 0 : i64, scratch_operands = 3 : i64, tpu.core_type = #tpu.core_type<tc>, window_params = [{transform_indices = @transform_0, window_bounds = array<i64: 1, 8, 32>}, {pipeline_mode = #tpu.pipeline_mode<synchronous>, transform_indices = @transform_1, window_bounds = array<i64: 1, 32>}, {pipeline_mode = #tpu.pipeline_mode<synchronous>, transform_indices = @transform_2, window_bounds = array<i64: 1, 32>}, {pipeline_mode = #tpu.pipeline_mode<synchronous>, transform_indices = @transform_3, window_bounds = array<i64: 32, 96>}, {pipeline_mode = #tpu.pipeline_mode<synchronous>, transform_indices = @transform_4, window_bounds = array<i64: 1, 96>}, {pipeline_mode = #tpu.pipeline_mode<synchronous>, transform_indices = @transform_5, window_bounds = array<i64: 32, 32>}, {pipeline_mode = #tpu.pipeline_mode<synchronous>, transform_indices = @transform_6, window_bounds = array<i64: 1, 32>}, {pipeline_mode = #tpu.pipeline_mode<synchronous>, transform_indices = @transform_7, window_bounds = array<i64: 1, 32>}, {pipeline_mode = #tpu.pipeline_mode<synchronous>, transform_indices = @transform_8, window_bounds = array<i64: 1, 32>}, {pipeline_mode = #tpu.pipeline_mode<synchronous>, transform_indices = @transform_9, window_bounds = array<i64: 32, 128>}, {pipeline_mode = #tpu.pipeline_mode<synchronous>, transform_indices = @transform_10, window_bounds = array<i64: 1, 128>}, {pipeline_mode = #tpu.pipeline_mode<synchronous>, transform_indices = @transform_11, window_bounds = array<i64: 128, 32>}, {pipeline_mode = #tpu.pipeline_mode<synchronous>, transform_indices = @transform_12, window_bounds = array<i64: 1, 32>}, {transform_indices = @transform_13, window_bounds = array<i64: 1, 8, 32>}]} {
    %c0_i32 = arith.constant 0 : i32
    %0 = arith.cmpi eq, %arg1, %c0_i32 : i32
    %1 = arith.extui %0 : i1 to i32
    %c0_i32_0 = arith.constant 0 : i32
    %2 = arith.cmpi ne, %1, %c0_i32_0 : i32
    scf.if %2 {
      %c0_45 = arith.constant 0 : index
      %c0_46 = arith.constant 0 : index
      %c0_47 = arith.constant 0 : index
      %119 = vector.load %arg2[%c0_45, %c0_46, %c0_47] : memref<1x8x32xf32, #tpu.memory_space<vmem>>, vector<1x8x32xf32>
      %120 = vector.shape_cast %119 : vector<1x8x32xf32> to vector<8x32xf32>
      %c0_48 = arith.constant 0 : index
      %c0_49 = arith.constant 0 : index
      %121 = vector.load %arg3[%c0_48, %c0_49] : memref<1x32xf32, #tpu.memory_space<vmem>>, vector<1x32xf32>
      %c0_50 = arith.constant 0 : index
      %c0_51 = arith.constant 0 : index
      %122 = vector.load %arg4[%c0_50, %c0_51] : memref<1x32xf32, #tpu.memory_space<vmem>>, vector<1x32xf32>
      %cst_52 = arith.constant dense<0.000000e+00> : vector<8xf32>
      %123 = vector.multi_reduction <add>, %120, %cst_52 [1] : vector<8x32xf32> to vector<8xf32>
      %124 = vector.shape_cast %123 : vector<8xf32> to vector<8x1xf32>
      %cst_53 = arith.constant 3.200000e+01 : f32
      %125 = vector.broadcast %cst_53 : f32 to vector<8x1xf32>
      %126 = arith.divf %124, %125 : vector<8x1xf32>
      %127 = vector.broadcast %126 : vector<8x1xf32> to vector<8x32xf32>
      %128 = arith.subf %120, %127 : vector<8x32xf32>
      %129 = arith.mulf %128, %128 : vector<8x32xf32>
      %cst_54 = arith.constant dense<0.000000e+00> : vector<8xf32>
      %130 = vector.multi_reduction <add>, %129, %cst_54 [1] : vector<8x32xf32> to vector<8xf32>
      %131 = vector.shape_cast %130 : vector<8xf32> to vector<8x1xf32>
      %cst_55 = arith.constant 3.200000e+01 : f32
      %132 = vector.broadcast %cst_55 : f32 to vector<8x1xf32>
      %133 = arith.divf %131, %132 : vector<8x1xf32>
      %134 = vector.broadcast %126 : vector<8x1xf32> to vector<8x32xf32>
      %135 = arith.subf %120, %134 : vector<8x32xf32>
      %cst_56 = arith.constant 9.99999974E-6 : f32
      %136 = vector.broadcast %cst_56 : f32 to vector<8x1xf32>
      %137 = arith.addf %133, %136 : vector<8x1xf32>
      %138 = math.rsqrt %137 : vector<8x1xf32>
      %139 = vector.broadcast %138 : vector<8x1xf32> to vector<8x32xf32>
      %140 = arith.mulf %135, %139 : vector<8x32xf32>
      %141 = vector.broadcast %121 : vector<1x32xf32> to vector<8x32xf32>
      %142 = arith.mulf %140, %141 : vector<8x32xf32>
      %143 = vector.broadcast %122 : vector<1x32xf32> to vector<8x32xf32>
      %144 = arith.addf %142, %143 : vector<8x32xf32>
      %145 = arith.truncf %144 : vector<8x32xf32> to vector<8x32xbf16>
      %c0_57 = arith.constant 0 : index
      %c0_58 = arith.constant 0 : index
      %146 = vector.load %arg5[%c0_57, %c0_58] : memref<32x96xbf16, #tpu.memory_space<vmem>>, vector<32x96xbf16>
      %cst_59 = arith.constant dense<0.000000e+00> : vector<8x96xf32>
      %147 = tpu.matmul %145, %146, %cst_59 {dimension_numbers = #tpu.dot_dimension_numbers<[1], [0], [0], [1], [0, 0, 1, 1], [], []>} : vector<8x32xbf16>, vector<32x96xbf16>, vector<8x96xf32> -> vector<8x96xf32>
      %c0_60 = arith.constant 0 : index
      %c0_61 = arith.constant 0 : index
      %148 = vector.load %arg6[%c0_60, %c0_61] : memref<1x96xf32, #tpu.memory_space<vmem>>, vector<1x96xf32>
      %149 = vector.broadcast %148 : vector<1x96xf32> to vector<8x96xf32>
      %150 = arith.addf %147, %149 : vector<8x96xf32>
      %151 = vector.extract_strided_slice %150 {offsets = [0, 0], sizes = [8, 32], strides = [1, 1]} : vector<8x96xf32> to vector<8x32xf32>
      %cst_62 = arith.constant 0.353553385 : f32
      %152 = vector.broadcast %cst_62 : f32 to vector<8x32xf32>
      %153 = arith.mulf %151, %152 : vector<8x32xf32>
      %154 = arith.truncf %153 : vector<8x32xf32> to vector<8x32xbf16>
      %c0_63 = arith.constant 0 : index
      %c0_64 = arith.constant 0 : index
      %155 = vector.load %arg16[%c0_63, %c0_64] : memref<8x32xbf16, #tpu.memory_space<vmem>>, vector<8x32xbf16>
      tpu.vector_store %arg16[%c0_63, %c0_64], %154 {strides = array<i32>} : memref<8x32xbf16, #tpu.memory_space<vmem>>, vector<8x32xbf16>,
      %156 = vector.extract_strided_slice %150 {offsets = [0, 32], sizes = [8, 32], strides = [1, 1]} : vector<8x96xf32> to vector<8x32xf32>
      %157 = arith.truncf %156 : vector<8x32xf32> to vector<8x32xbf16>
      %c0_65 = arith.constant 0 : index
      %c0_66 = arith.constant 0 : index
      %158 = vector.load %arg17[%c0_65, %c0_66] : memref<8x32xbf16, #tpu.memory_space<vmem>>, vector<8x32xbf16>
      tpu.vector_store %arg17[%c0_65, %c0_66], %157 {strides = array<i32>} : memref<8x32xbf16, #tpu.memory_space<vmem>>, vector<8x32xbf16>,
      %159 = vector.extract_strided_slice %150 {offsets = [0, 64], sizes = [8, 32], strides = [1, 1]} : vector<8x96xf32> to vector<8x32xf32>
      %160 = arith.truncf %159 : vector<8x32xf32> to vector<8x32xbf16>
      %c0_67 = arith.constant 0 : index
      %c0_68 = arith.constant 0 : index
      %161 = vector.load %arg18[%c0_67, %c0_68] : memref<8x32xbf16, #tpu.memory_space<vmem>>, vector<8x32xbf16>
      tpu.vector_store %arg18[%c0_67, %c0_68], %160 {strides = array<i32>} : memref<8x32xbf16, #tpu.memory_space<vmem>>, vector<8x32xbf16>,
    } else {
    }
    %c8_i32 = arith.constant 8 : i32
    %3 = arith.muli %arg1, %c8_i32 : i32
    %4 = tpu.assume_multiple %3, 8 : i32
    %c0 = arith.constant 0 : index
    %5 = arith.index_cast %4 : i32 to index
    %c0_1 = arith.constant 0 : index
    %6 = vector.load %arg2[%c0, %5, %c0_1] : memref<1x8x32xf32, #tpu.memory_space<vmem>>, vector<1x8x32xf32>
    %7 = vector.shape_cast %6 : vector<1x8x32xf32> to vector<8x32xf32>
    %8 = arith.index_cast %4 : i32 to index
    %c0_2 = arith.constant 0 : index
    %9 = vector.load %arg16[%8, %c0_2] : memref<8x32xbf16, #tpu.memory_space<vmem>>, vector<8x32xbf16>
    %10 = vector.shape_cast %9 : vector<8x32xbf16> to vector<8x4x8xbf16>
    %11 = tpu.transpose %10, [1, 0, 2] : vector<8x4x8xbf16> -> vector<4x8x8xbf16>
    %12 = tpu.iota {dimensions = array<i32: 0>} : vector<8x8xi32>
    %13 = tpu.iota {dimensions = array<i32: 1>} : vector<8x8xi32>
    %14 = arith.cmpi sle, %13, %12 : vector<8x8xi32>
    %cst = arith.constant -1.000000e+30 : f32
    %15 = vector.broadcast %cst : f32 to vector<4x8x1xf32>
    %cst_3 = arith.constant 0.000000e+00 : f32
    %16 = vector.broadcast %cst_3 : f32 to vector<4x8x1xf32>
    %cst_4 = arith.constant 0.000000e+00 : f32
    %17 = vector.broadcast %cst_4 : f32 to vector<4x8x8xf32>
    %c0_i32_5 = arith.constant 0 : i32
    %18 = arith.subi %arg1, %c0_i32_5 : i32
    %19 = arith.addi %c0_i32_5, %18 : i32
    %c1_i32 = arith.constant 1 : i32
    %20:3 = scf.for %arg19 = %c0_i32_5 to %19 step %c1_i32 iter_args(%arg20 = %15, %arg21 = %16, %arg22 = %17) -> (vector<4x8x1xf32>, vector<4x8x1xf32>, vector<4x8x8xf32>)  : i32 {
      %c8_i32_45 = arith.constant 8 : i32
      %119 = arith.muli %arg19, %c8_i32_45 : i32
      %120 = tpu.assume_multiple %119, 8 : i32
      %121 = arith.index_cast %120 : i32 to index
      %c0_46 = arith.constant 0 : index
      %122 = vector.load %arg17[%121, %c0_46] : memref<8x32xbf16, #tpu.memory_space<vmem>>, vector<8x32xbf16>
      %123 = vector.shape_cast %122 : vector<8x32xbf16> to vector<8x4x8xbf16>
      %124 = tpu.transpose %123, [1, 0, 2] : vector<8x4x8xbf16> -> vector<4x8x8xbf16>
      %125 = arith.index_cast %120 : i32 to index
      %c0_47 = arith.constant 0 : index
      %126 = vector.load %arg18[%125, %c0_47] : memref<8x32xbf16, #tpu.memory_space<vmem>>, vector<8x32xbf16>
      %127 = vector.shape_cast %126 : vector<8x32xbf16> to vector<8x4x8xbf16>
      %128 = tpu.transpose %127, [1, 0, 2] : vector<8x4x8xbf16> -> vector<4x8x8xbf16>
      "tpu.trace_start"() <{level = 10 : i32, message = "hqd,hkd->hqk"}> : () -> ()
      %cst_48 = arith.constant dense<0.000000e+00> : vector<4x8x8xf32>
      %129 = tpu.matmul %11, %124, %cst_48 {dimension_numbers = #tpu.dot_dimension_numbers<[2], [2], [1], [1], [0, 0, 0, 1, 1, 1], [0], [0]>} : vector<4x8x8xbf16>, vector<4x8x8xbf16>, vector<4x8x8xf32> -> vector<4x8x8xf32>
      "tpu.trace_stop"() : () -> ()
      %cst_49 = arith.constant dense<0xFF800000> : vector<4x8xf32>
      %130 = vector.multi_reduction <maximumf>, %129, %cst_49 [2] : vector<4x8x8xf32> to vector<4x8xf32>
      %131 = vector.shape_cast %130 : vector<4x8xf32> to vector<4x8x1xf32>
      %132 = arith.maximumf %arg20, %131 : vector<4x8x1xf32>
      %133 = arith.subf %arg20, %132 : vector<4x8x1xf32>
      %134 = math.exp %133 : vector<4x8x1xf32>
      %135 = vector.broadcast %132 : vector<4x8x1xf32> to vector<4x8x8xf32>
      %136 = arith.subf %129, %135 : vector<4x8x8xf32>
      %137 = math.exp %136 : vector<4x8x8xf32>
      %138 = arith.mulf %134, %arg21 : vector<4x8x1xf32>
      %cst_50 = arith.constant dense<0.000000e+00> : vector<4x8xf32>
      %139 = vector.multi_reduction <add>, %137, %cst_50 [2] : vector<4x8x8xf32> to vector<4x8xf32>
      %140 = vector.shape_cast %139 : vector<4x8xf32> to vector<4x8x1xf32>
      %141 = arith.addf %138, %140 : vector<4x8x1xf32>
      %142 = vector.broadcast %134 : vector<4x8x1xf32> to vector<4x8x8xf32>
      %143 = arith.mulf %142, %arg22 : vector<4x8x8xf32>
      %144 = arith.truncf %137 : vector<4x8x8xf32> to vector<4x8x8xbf16>
      "tpu.trace_start"() <{level = 10 : i32, message = "hqk,hkd->hqd"}> : () -> ()
      %cst_51 = arith.constant dense<0.000000e+00> : vector<4x8x8xf32>
      %145 = tpu.matmul %144, %128, %cst_51 {dimension_numbers = #tpu.dot_dimension_numbers<[2], [1], [1], [2], [0, 0, 0, 1, 1, 2], [0], [0]>} : vector<4x8x8xbf16>, vector<4x8x8xbf16>, vector<4x8x8xf32> -> vector<4x8x8xf32>
      "tpu.trace_stop"() : () -> ()
      %146 = arith.addf %143, %145 : vector<4x8x8xf32>
      scf.yield %132, %141, %146 : vector<4x8x1xf32>, vector<4x8x1xf32>, vector<4x8x8xf32>
    }
    %c8_i32_6 = arith.constant 8 : i32
    %21 = arith.muli %arg1, %c8_i32_6 : i32
    %22 = tpu.assume_multiple %21, 8 : i32
    %23 = arith.index_cast %22 : i32 to index
    %c0_7 = arith.constant 0 : index
    %24 = vector.load %arg17[%23, %c0_7] : memref<8x32xbf16, #tpu.memory_space<vmem>>, vector<8x32xbf16>
    %25 = vector.shape_cast %24 : vector<8x32xbf16> to vector<8x4x8xbf16>
    %26 = tpu.transpose %25, [1, 0, 2] : vector<8x4x8xbf16> -> vector<4x8x8xbf16>
    %27 = arith.index_cast %22 : i32 to index
    %c0_8 = arith.constant 0 : index
    %28 = vector.load %arg18[%27, %c0_8] : memref<8x32xbf16, #tpu.memory_space<vmem>>, vector<8x32xbf16>
    %29 = vector.shape_cast %28 : vector<8x32xbf16> to vector<8x4x8xbf16>
    %30 = tpu.transpose %29, [1, 0, 2] : vector<8x4x8xbf16> -> vector<4x8x8xbf16>
    "tpu.trace_start"() <{level = 10 : i32, message = "hqd,hkd->hqk"}> : () -> ()
    %cst_9 = arith.constant dense<0.000000e+00> : vector<4x8x8xf32>
    %31 = tpu.matmul %11, %26, %cst_9 {dimension_numbers = #tpu.dot_dimension_numbers<[2], [2], [1], [1], [0, 0, 0, 1, 1, 1], [0], [0]>} : vector<4x8x8xbf16>, vector<4x8x8xbf16>, vector<4x8x8xf32> -> vector<4x8x8xf32>
    "tpu.trace_stop"() : () -> ()
    %32 = vector.shape_cast %14 : vector<8x8xi1> to vector<1x8x8xi1>
    %cst_10 = arith.constant -1.000000e+30 : f32
    %33 = vector.shape_cast %32 : vector<1x8x8xi1> to vector<1x8x8xi1>
    %34 = vector.broadcast %33 : vector<1x8x8xi1> to vector<4x8x8xi1>
    %35 = vector.broadcast %cst_10 : f32 to vector<4x8x8xf32>
    %36 = arith.select %34, %31, %35 : vector<4x8x8xi1>, vector<4x8x8xf32>
    %cst_11 = arith.constant dense<0xFF800000> : vector<4x8xf32>
    %37 = vector.multi_reduction <maximumf>, %36, %cst_11 [2] : vector<4x8x8xf32> to vector<4x8xf32>
    %38 = vector.shape_cast %37 : vector<4x8xf32> to vector<4x8x1xf32>
    %39 = arith.maximumf %20#0, %38 : vector<4x8x1xf32>
    %40 = arith.subf %20#0, %39 : vector<4x8x1xf32>
    %41 = math.exp %40 : vector<4x8x1xf32>
    %42 = vector.broadcast %39 : vector<4x8x1xf32> to vector<4x8x8xf32>
    %43 = arith.subf %36, %42 : vector<4x8x8xf32>
    %44 = math.exp %43 : vector<4x8x8xf32>
    %45 = arith.mulf %41, %20#1 : vector<4x8x1xf32>
    %cst_12 = arith.constant dense<0.000000e+00> : vector<4x8xf32>
    %46 = vector.multi_reduction <add>, %44, %cst_12 [2] : vector<4x8x8xf32> to vector<4x8xf32>
    %47 = vector.shape_cast %46 : vector<4x8xf32> to vector<4x8x1xf32>
    %48 = arith.addf %45, %47 : vector<4x8x1xf32>
    %49 = vector.broadcast %41 : vector<4x8x1xf32> to vector<4x8x8xf32>
    %50 = arith.mulf %49, %20#2 : vector<4x8x8xf32>
    %51 = arith.truncf %44 : vector<4x8x8xf32> to vector<4x8x8xbf16>
    "tpu.trace_start"() <{level = 10 : i32, message = "hqk,hkd->hqd"}> : () -> ()
    %cst_13 = arith.constant dense<0.000000e+00> : vector<4x8x8xf32>
    %52 = tpu.matmul %51, %30, %cst_13 {dimension_numbers = #tpu.dot_dimension_numbers<[2], [1], [1], [2], [0, 0, 0, 1, 1, 2], [0], [0]>} : vector<4x8x8xbf16>, vector<4x8x8xbf16>, vector<4x8x8xf32> -> vector<4x8x8xf32>
    "tpu.trace_stop"() : () -> ()
    %53 = arith.addf %50, %52 : vector<4x8x8xf32>
    %54 = tpu.reciprocal %48 {approx = true} : vector<4x8x1xf32> -> vector<4x8x1xf32>
    %55 = vector.broadcast %54 : vector<4x8x1xf32> to vector<4x8x8xf32>
    %56 = arith.mulf %53, %55 : vector<4x8x8xf32>
    %57 = tpu.transpose %56, [1, 0, 2] : vector<4x8x8xf32> -> vector<8x4x8xf32>
    %58 = vector.shape_cast %57 : vector<8x4x8xf32> to vector<8x32xf32>
    %59 = arith.truncf %58 : vector<8x32xf32> to vector<8x32xbf16>
    %c0_14 = arith.constant 0 : index
    %c0_15 = arith.constant 0 : index
    %60 = vector.load %arg7[%c0_14, %c0_15] : memref<32x32xbf16, #tpu.memory_space<vmem>>, vector<32x32xbf16>
    %cst_16 = arith.constant dense<0.000000e+00> : vector<8x32xf32>
    %61 = tpu.matmul %59, %60, %cst_16 {dimension_numbers = #tpu.dot_dimension_numbers<[1], [0], [0], [1], [0, 0, 1, 1], [], []>} : vector<8x32xbf16>, vector<32x32xbf16>, vector<8x32xf32> -> vector<8x32xf32>
    %c0_17 = arith.constant 0 : index
    %c0_18 = arith.constant 0 : index
    %62 = vector.load %arg8[%c0_17, %c0_18] : memref<1x32xf32, #tpu.memory_space<vmem>>, vector<1x32xf32>
    %63 = vector.broadcast %62 : vector<1x32xf32> to vector<8x32xf32>
    %64 = arith.addf %61, %63 : vector<8x32xf32>
    %65 = arith.addf %7, %64 : vector<8x32xf32>
    %c0_19 = arith.constant 0 : index
    %c0_20 = arith.constant 0 : index
    %66 = vector.load %arg9[%c0_19, %c0_20] : memref<1x32xf32, #tpu.memory_space<vmem>>, vector<1x32xf32>
    %c0_21 = arith.constant 0 : index
    %c0_22 = arith.constant 0 : index
    %67 = vector.load %arg10[%c0_21, %c0_22] : memref<1x32xf32, #tpu.memory_space<vmem>>, vector<1x32xf32>
    %cst_23 = arith.constant dense<0.000000e+00> : vector<8xf32>
    %68 = vector.multi_reduction <add>, %65, %cst_23 [1] : vector<8x32xf32> to vector<8xf32>
    %69 = vector.shape_cast %68 : vector<8xf32> to vector<8x1xf32>
    %cst_24 = arith.constant 3.200000e+01 : f32
    %70 = vector.broadcast %cst_24 : f32 to vector<8x1xf32>
    %71 = arith.divf %69, %70 : vector<8x1xf32>
    %72 = vector.broadcast %71 : vector<8x1xf32> to vector<8x32xf32>
    %73 = arith.subf %65, %72 : vector<8x32xf32>
    %74 = arith.mulf %73, %73 : vector<8x32xf32>
    %cst_25 = arith.constant dense<0.000000e+00> : vector<8xf32>
    %75 = vector.multi_reduction <add>, %74, %cst_25 [1] : vector<8x32xf32> to vector<8xf32>
    %76 = vector.shape_cast %75 : vector<8xf32> to vector<8x1xf32>
    %cst_26 = arith.constant 3.200000e+01 : f32
    %77 = vector.broadcast %cst_26 : f32 to vector<8x1xf32>
    %78 = arith.divf %76, %77 : vector<8x1xf32>
    %79 = vector.broadcast %71 : vector<8x1xf32> to vector<8x32xf32>
    %80 = arith.subf %65, %79 : vector<8x32xf32>
    %cst_27 = arith.constant 9.99999974E-6 : f32
    %81 = vector.broadcast %cst_27 : f32 to vector<8x1xf32>
    %82 = arith.addf %78, %81 : vector<8x1xf32>
    %83 = math.rsqrt %82 : vector<8x1xf32>
    %84 = vector.broadcast %83 : vector<8x1xf32> to vector<8x32xf32>
    %85 = arith.mulf %80, %84 : vector<8x32xf32>
    %86 = vector.broadcast %66 : vector<1x32xf32> to vector<8x32xf32>
    %87 = arith.mulf %85, %86 : vector<8x32xf32>
    %88 = vector.broadcast %67 : vector<1x32xf32> to vector<8x32xf32>
    %89 = arith.addf %87, %88 : vector<8x32xf32>
    %90 = arith.truncf %89 : vector<8x32xf32> to vector<8x32xbf16>
    %c0_28 = arith.constant 0 : index
    %c0_29 = arith.constant 0 : index
    %91 = vector.load %arg11[%c0_28, %c0_29] : memref<32x128xbf16, #tpu.memory_space<vmem>>, vector<32x128xbf16>
    %cst_30 = arith.constant dense<0.000000e+00> : vector<8x128xf32>
    %92 = tpu.matmul %90, %91, %cst_30 {dimension_numbers = #tpu.dot_dimension_numbers<[1], [0], [0], [1], [0, 0, 1, 1], [], []>} : vector<8x32xbf16>, vector<32x128xbf16>, vector<8x128xf32> -> vector<8x128xf32>
    %c0_31 = arith.constant 0 : index
    %c0_32 = arith.constant 0 : index
    %93 = vector.load %arg12[%c0_31, %c0_32] : memref<1x128xf32, #tpu.memory_space<vmem>>, vector<1x128xf32>
    %94 = vector.broadcast %93 : vector<1x128xf32> to vector<8x128xf32>
    %95 = arith.addf %92, %94 : vector<8x128xf32>
    %cst_33 = arith.constant 5.000000e-01 : f32
    %96 = vector.broadcast %cst_33 : f32 to vector<8x128xf32>
    %97 = arith.mulf %96, %95 : vector<8x128xf32>
    %cst_34 = arith.constant 4.471500e-02 : f32
    %98 = vector.broadcast %cst_34 : f32 to vector<8x128xf32>
    %99 = arith.mulf %98, %95 : vector<8x128xf32>
    %100 = arith.mulf %99, %95 : vector<8x128xf32>
    %101 = arith.mulf %100, %95 : vector<8x128xf32>
    %102 = arith.addf %95, %101 : vector<8x128xf32>
    %cst_35 = arith.constant 0.797884583 : f32
    %103 = vector.broadcast %cst_35 : f32 to vector<8x128xf32>
    %104 = arith.mulf %103, %102 : vector<8x128xf32>
    %105 = math.tanh %104 : vector<8x128xf32>
    %cst_36 = arith.constant 1.000000e+00 : f32
    %106 = vector.broadcast %cst_36 : f32 to vector<8x128xf32>
    %107 = arith.addf %106, %105 : vector<8x128xf32>
    %108 = arith.mulf %97, %107 : vector<8x128xf32>
    %109 = arith.truncf %108 : vector<8x128xf32> to vector<8x128xbf16>
    %c0_37 = arith.constant 0 : index
    %c0_38 = arith.constant 0 : index
    %110 = vector.load %arg13[%c0_37, %c0_38] : memref<128x32xbf16, #tpu.memory_space<vmem>>, vector<128x32xbf16>
    %cst_39 = arith.constant dense<0.000000e+00> : vector<8x32xf32>
    %111 = tpu.matmul %109, %110, %cst_39 {dimension_numbers = #tpu.dot_dimension_numbers<[1], [0], [0], [1], [0, 0, 1, 1], [], []>} : vector<8x128xbf16>, vector<128x32xbf16>, vector<8x32xf32> -> vector<8x32xf32>
    %c0_40 = arith.constant 0 : index
    %c0_41 = arith.constant 0 : index
    %112 = vector.load %arg14[%c0_40, %c0_41] : memref<1x32xf32, #tpu.memory_space<vmem>>, vector<1x32xf32>
    %113 = vector.broadcast %112 : vector<1x32xf32> to vector<8x32xf32>
    %114 = arith.addf %111, %113 : vector<8x32xf32>
    %115 = arith.addf %65, %114 : vector<8x32xf32>
    %c0_42 = arith.constant 0 : index
    %c0_43 = arith.constant 0 : index
    %c0_44 = arith.constant 0 : index
    %116 = vector.load %arg15[%c0_42, %c0_43, %c0_44] : memref<1x8x32xf32, #tpu.memory_space<vmem>>, vector<1x8x32xf32>
    %117 = vector.shape_cast %116 : vector<1x8x32xf32> to vector<8x32xf32>
    %118 = vector.shape_cast %115 : vector<8x32xf32> to vector<1x8x32xf32>
    tpu.vector_store %arg15[%c0_42, %c0_43, %c0_44], %118 {strides = array<i32>} : memref<1x8x32xf32, #tpu.memory_space<vmem>>, vector<1x8x32xf32>,
    return
  }
  func.func @transform_0(%arg0: i32, %arg1: i32) -> (i32, i32, i32) {
    %c0_i32 = arith.constant 0 : i32
    %c0_i32_0 = arith.constant 0 : i32
    %c0_i32_1 = arith.constant 0 : i32
    return %arg0, %c0_i32, %c0_i32_0 : i32, i32, i32
  }
  func.func @transform_1(%arg0: i32, %arg1: i32) -> (i32, i32) {
    %c0_i32 = arith.constant 0 : i32
    %c0_i32_0 = arith.constant 0 : i32
    %c0_i32_1 = arith.constant 0 : i32
    return %c0_i32, %c0_i32_0 : i32, i32
  }
  func.func @transform_2(%arg0: i32, %arg1: i32) -> (i32, i32) {
    %c0_i32 = arith.constant 0 : i32
    %c0_i32_0 = arith.constant 0 : i32
    %c0_i32_1 = arith.constant 0 : i32
    return %c0_i32, %c0_i32_0 : i32, i32
  }
  func.func @transform_3(%arg0: i32, %arg1: i32) -> (i32, i32) {
    %c0_i32 = arith.constant 0 : i32
    %c0_i32_0 = arith.constant 0 : i32
    %c0_i32_1 = arith.constant 0 : i32
    return %c0_i32, %c0_i32_0 : i32, i32
  }
  func.func @transform_4(%arg0: i32, %arg1: i32) -> (i32, i32) {
    %c0_i32 = arith.constant 0 : i32
    %c0_i32_0 = arith.constant 0 : i32
    %c0_i32_1 = arith.constant 0 : i32
    return %c0_i32, %c0_i32_0 : i32, i32
  }
  func.func @transform_5(%arg0: i32, %arg1: i32) -> (i32, i32) {
    %c0_i32 = arith.constant 0 : i32
    %c0_i32_0 = arith.constant 0 : i32
    %c0_i32_1 = arith.constant 0 : i32
    return %c0_i32, %c0_i32_0 : i32, i32
  }
  func.func @transform_6(%arg0: i32, %arg1: i32) -> (i32, i32) {
    %c0_i32 = arith.constant 0 : i32
    %c0_i32_0 = arith.constant 0 : i32
    %c0_i32_1 = arith.constant 0 : i32
    return %c0_i32, %c0_i32_0 : i32, i32
  }
  func.func @transform_7(%arg0: i32, %arg1: i32) -> (i32, i32) {
    %c0_i32 = arith.constant 0 : i32
    %c0_i32_0 = arith.constant 0 : i32
    %c0_i32_1 = arith.constant 0 : i32
    return %c0_i32, %c0_i32_0 : i32, i32
  }
  func.func @transform_8(%arg0: i32, %arg1: i32) -> (i32, i32) {
    %c0_i32 = arith.constant 0 : i32
    %c0_i32_0 = arith.constant 0 : i32
    %c0_i32_1 = arith.constant 0 : i32
    return %c0_i32, %c0_i32_0 : i32, i32
  }
  func.func @transform_9(%arg0: i32, %arg1: i32) -> (i32, i32) {
    %c0_i32 = arith.constant 0 : i32
    %c0_i32_0 = arith.constant 0 : i32
    %c0_i32_1 = arith.constant 0 : i32
    return %c0_i32, %c0_i32_0 : i32, i32
  }
  func.func @transform_10(%arg0: i32, %arg1: i32) -> (i32, i32) {
    %c0_i32 = arith.constant 0 : i32
    %c0_i32_0 = arith.constant 0 : i32
    %c0_i32_1 = arith.constant 0 : i32
    return %c0_i32, %c0_i32_0 : i32, i32
  }
  func.func @transform_11(%arg0: i32, %arg1: i32) -> (i32, i32) {
    %c0_i32 = arith.constant 0 : i32
    %c0_i32_0 = arith.constant 0 : i32
    %c0_i32_1 = arith.constant 0 : i32
    return %c0_i32, %c0_i32_0 : i32, i32
  }
  func.func @transform_12(%arg0: i32, %arg1: i32) -> (i32, i32) {
    %c0_i32 = arith.constant 0 : i32
    %c0_i32_0 = arith.constant 0 : i32
    %c0_i32_1 = arith.constant 0 : i32
    return %c0_i32, %c0_i32_0 : i32, i32
  }
  func.func @transform_13(%arg0: i32, %arg1: i32) -> (i32, i32, i32) {
    %c0_i32 = arith.constant 0 : i32
    %c0_i32_0 = arith.constant 0 : i32
    return %arg0, %arg1, %c0_i32 : i32, i32, i32
  }
}

module attributes {stable_mosaic.version = 11 : i64} {
  func.func @block_kernel(%arg0: i32, %arg1: i32, %arg2: memref<1x8x32xf32, #tpu.memory_space<vmem>>, %arg3: memref<1x32xf32, #tpu.memory_space<vmem>>, %arg4: memref<1x32xf32, #tpu.memory_space<vmem>>, %arg5: memref<32x96xbf16, #tpu.memory_space<vmem>>, %arg6: memref<1x96xf32, #tpu.memory_space<vmem>>, %arg7: memref<32x32xbf16, #tpu.memory_space<vmem>>, %arg8: memref<1x32xf32, #tpu.memory_space<vmem>>, %arg9: memref<1x32xf32, #tpu.memory_space<vmem>>, %arg10: memref<1x32xf32, #tpu.memory_space<vmem>>, %arg11: memref<32x128xbf16, #tpu.memory_space<vmem>>, %arg12: memref<1x128xf32, #tpu.memory_space<vmem>>, %arg13: memref<128x32xbf16, #tpu.memory_space<vmem>>, %arg14: memref<1x32xf32, #tpu.memory_space<vmem>>, %arg15: memref<1x8x32xf32, #tpu.memory_space<vmem>>, %arg16: memref<8x32xbf16, #tpu.memory_space<vmem>>, %arg17: memref<8x32xbf16, #tpu.memory_space<vmem>>, %arg18: memref<8x32xbf16, #tpu.memory_space<vmem>>) attributes {dimension_semantics = [#tpu.dimension_semantics<parallel>, #tpu.dimension_semantics<arbitrary>], iteration_bounds = array<i64: 2, 1>, scalar_prefetch = 0 : i64, scratch_operands = 3 : i64, tpu.core_type = #tpu.core_type<tc>, window_params = [{transform_indices = @transform_0, window_bounds = array<i64: 1, 8, 32>}, {pipeline_mode = #tpu.pipeline_mode<synchronous>, transform_indices = @transform_1, window_bounds = array<i64: 1, 32>}, {pipeline_mode = #tpu.pipeline_mode<synchronous>, transform_indices = @transform_2, window_bounds = array<i64: 1, 32>}, {pipeline_mode = #tpu.pipeline_mode<synchronous>, transform_indices = @transform_3, window_bounds = array<i64: 32, 96>}, {pipeline_mode = #tpu.pipeline_mode<synchronous>, transform_indices = @transform_4, window_bounds = array<i64: 1, 96>}, {pipeline_mode = #tpu.pipeline_mode<synchronous>, transform_indices = @transform_5, window_bounds = array<i64: 32, 32>}, {pipeline_mode = #tpu.pipeline_mode<synchronous>, transform_indices = @transform_6, window_bounds = array<i64: 1, 32>}, {pipeline_mode = #tpu.pipeline_mode<synchronous>, transform_indices = @transform_7, window_bounds = array<i64: 1, 32>}, {pipeline_mode = #tpu.pipeline_mode<synchronous>, transform_indices = @transform_8, window_bounds = array<i64: 1, 32>}, {pipeline_mode = #tpu.pipeline_mode<synchronous>, transform_indices = @transform_9, window_bounds = array<i64: 32, 128>}, {pipeline_mode = #tpu.pipeline_mode<synchronous>, transform_indices = @transform_10, window_bounds = array<i64: 1, 128>}, {pipeline_mode = #tpu.pipeline_mode<synchronous>, transform_indices = @transform_11, window_bounds = array<i64: 128, 32>}, {pipeline_mode = #tpu.pipeline_mode<synchronous>, transform_indices = @transform_12, window_bounds = array<i64: 1, 32>}, {transform_indices = @transform_13, window_bounds = array<i64: 1, 8, 32>}]} {
    %c0_i32 = arith.constant 0 : i32
    %0 = arith.cmpi eq, %arg1, %c0_i32 : i32
    %1 = arith.extui %0 : i1 to i32
    %c0_i32_0 = arith.constant 0 : i32
    %2 = arith.cmpi ne, %1, %c0_i32_0 : i32
    scf.if %2 {
      %c0_45 = arith.constant 0 : index
      %c0_46 = arith.constant 0 : index
      %c0_47 = arith.constant 0 : index
      %119 = vector.load %arg2[%c0_45, %c0_46, %c0_47] : memref<1x8x32xf32, #tpu.memory_space<vmem>>, vector<1x8x32xf32>
      %120 = vector.shape_cast %119 : vector<1x8x32xf32> to vector<8x32xf32>
      %c0_48 = arith.constant 0 : index
      %c0_49 = arith.constant 0 : index
      %121 = vector.load %arg3[%c0_48, %c0_49] : memref<1x32xf32, #tpu.memory_space<vmem>>, vector<1x32xf32>
      %c0_50 = arith.constant 0 : index
      %c0_51 = arith.constant 0 : index
      %122 = vector.load %arg4[%c0_50, %c0_51] : memref<1x32xf32, #tpu.memory_space<vmem>>, vector<1x32xf32>
      %cst_52 = arith.constant dense<0.000000e+00> : vector<8xf32>
      %123 = vector.multi_reduction <add>, %120, %cst_52 [1] : vector<8x32xf32> to vector<8xf32>
      %124 = vector.shape_cast %123 : vector<8xf32> to vector<8x1xf32>
      %cst_53 = arith.constant 3.200000e+01 : f32
      %125 = vector.broadcast %cst_53 : f32 to vector<8x1xf32>
      %126 = arith.divf %124, %125 : vector<8x1xf32>
      %127 = vector.broadcast %126 : vector<8x1xf32> to vector<8x32xf32>
      %128 = arith.subf %120, %127 : vector<8x32xf32>
      %129 = arith.mulf %128, %128 : vector<8x32xf32>
      %cst_54 = arith.constant dense<0.000000e+00> : vector<8xf32>
      %130 = vector.multi_reduction <add>, %129, %cst_54 [1] : vector<8x32xf32> to vector<8xf32>
      %131 = vector.shape_cast %130 : vector<8xf32> to vector<8x1xf32>
      %cst_55 = arith.constant 3.200000e+01 : f32
      %132 = vector.broadcast %cst_55 : f32 to vector<8x1xf32>
      %133 = arith.divf %131, %132 : vector<8x1xf32>
      %134 = vector.broadcast %126 : vector<8x1xf32> to vector<8x32xf32>
      %135 = arith.subf %120, %134 : vector<8x32xf32>
      %cst_56 = arith.constant 9.99999974E-6 : f32
      %136 = vector.broadcast %cst_56 : f32 to vector<8x1xf32>
      %137 = arith.addf %133, %136 : vector<8x1xf32>
      %138 = math.rsqrt %137 : vector<8x1xf32>
      %139 = vector.broadcast %138 : vector<8x1xf32> to vector<8x32xf32>
      %140 = arith.mulf %135, %139 : vector<8x32xf32>
      %141 = vector.broadcast %121 : vector<1x32xf32> to vector<8x32xf32>
      %142 = arith.mulf %140, %141 : vector<8x32xf32>
      %143 = vector.broadcast %122 : vector<1x32xf32> to vector<8x32xf32>
      %144 = arith.addf %142, %143 : vector<8x32xf32>
      %145 = arith.truncf %144 : vector<8x32xf32> to vector<8x32xbf16>
      %c0_57 = arith.constant 0 : index
      %c0_58 = arith.constant 0 : index
      %146 = vector.load %arg5[%c0_57, %c0_58] : memref<32x96xbf16, #tpu.memory_space<vmem>>, vector<32x96xbf16>
      %cst_59 = arith.constant dense<0.000000e+00> : vector<8x96xf32>
      %147 = tpu.matmul %145, %146, %cst_59 {dimension_numbers = #tpu.dot_dimension_numbers<[1], [0], [0], [1], [0, 0, 1, 1], [], []>} : vector<8x32xbf16>, vector<32x96xbf16>, vector<8x96xf32> -> vector<8x96xf32>
      %c0_60 = arith.constant 0 : index
      %c0_61 = arith.constant 0 : index
      %148 = vector.load %arg6[%c0_60, %c0_61] : memref<1x96xf32, #tpu.memory_space<vmem>>, vector<1x96xf32>
      %149 = vector.broadcast %148 : vector<1x96xf32> to vector<8x96xf32>
      %150 = arith.addf %147, %149 : vector<8x96xf32>
      %151 = vector.extract_strided_slice %150 {offsets = [0, 0], sizes = [8, 32], strides = [1, 1]} : vector<8x96xf32> to vector<8x32xf32>
      %cst_62 = arith.constant 0.353553385 : f32
      %152 = vector.broadcast %cst_62 : f32 to vector<8x32xf32>
      %153 = arith.mulf %151, %152 : vector<8x32xf32>
      %154 = arith.truncf %153 : vector<8x32xf32> to vector<8x32xbf16>
      %c0_63 = arith.constant 0 : index
      %c0_64 = arith.constant 0 : index
      %155 = vector.load %arg16[%c0_63, %c0_64] : memref<8x32xbf16, #tpu.memory_space<vmem>>, vector<8x32xbf16>
      tpu.vector_store %arg16[%c0_63, %c0_64], %154 {strides = array<i32>} : memref<8x32xbf16, #tpu.memory_space<vmem>>, vector<8x32xbf16>,
      %156 = vector.extract_strided_slice %150 {offsets = [0, 32], sizes = [8, 32], strides = [1, 1]} : vector<8x96xf32> to vector<8x32xf32>
      %157 = arith.truncf %156 : vector<8x32xf32> to vector<8x32xbf16>
      %c0_65 = arith.constant 0 : index
      %c0_66 = arith.constant 0 : index
      %158 = vector.load %arg17[%c0_65, %c0_66] : memref<8x32xbf16, #tpu.memory_space<vmem>>, vector<8x32xbf16>
      tpu.vector_store %arg17[%c0_65, %c0_66], %157 {strides = array<i32>} : memref<8x32xbf16, #tpu.memory_space<vmem>>, vector<8x32xbf16>,
      %159 = vector.extract_strided_slice %150 {offsets = [0, 64], sizes = [8, 32], strides = [1, 1]} : vector<8x96xf32> to vector<8x32xf32>
      %160 = arith.truncf %159 : vector<8x32xf32> to vector<8x32xbf16>
      %c0_67 = arith.constant 0 : index
      %c0_68 = arith.constant 0 : index
      %161 = vector.load %arg18[%c0_67, %c0_68] : memref<8x32xbf16, #tpu.memory_space<vmem>>, vector<8x32xbf16>
      tpu.vector_store %arg18[%c0_67, %c0_68], %160 {strides = array<i32>} : memref<8x32xbf16, #tpu.memory_space<vmem>>, vector<8x32xbf16>,
    } else {
    }
    %c8_i32 = arith.constant 8 : i32
    %3 = arith.muli %arg1, %c8_i32 : i32
    %4 = tpu.assume_multiple %3, 8 : i32
    %c0 = arith.constant 0 : index
    %5 = arith.index_cast %4 : i32 to index
    %c0_1 = arith.constant 0 : index
    %6 = vector.load %arg2[%c0, %5, %c0_1] : memref<1x8x32xf32, #tpu.memory_space<vmem>>, vector<1x8x32xf32>
    %7 = vector.shape_cast %6 : vector<1x8x32xf32> to vector<8x32xf32>
    %8 = arith.index_cast %4 : i32 to index
    %c0_2 = arith.constant 0 : index
    %9 = vector.load %arg16[%8, %c0_2] : memref<8x32xbf16, #tpu.memory_space<vmem>>, vector<8x32xbf16>
    %10 = vector.shape_cast %9 : vector<8x32xbf16> to vector<8x4x8xbf16>
    %11 = tpu.transpose %10, [1, 0, 2] : vector<8x4x8xbf16> -> vector<4x8x8xbf16>
    %12 = tpu.iota {dimensions = array<i32: 0>} : vector<8x8xi32>
    %13 = tpu.iota {dimensions = array<i32: 1>} : vector<8x8xi32>
    %14 = arith.cmpi sle, %13, %12 : vector<8x8xi32>
    %cst = arith.constant -1.000000e+30 : f32
    %15 = vector.broadcast %cst : f32 to vector<4x8x1xf32>
    %cst_3 = arith.constant 0.000000e+00 : f32
    %16 = vector.broadcast %cst_3 : f32 to vector<4x8x1xf32>
    %cst_4 = arith.constant 0.000000e+00 : f32
    %17 = vector.broadcast %cst_4 : f32 to vector<4x8x8xf32>
    %c0_i32_5 = arith.constant 0 : i32
    %18 = arith.subi %arg1, %c0_i32_5 : i32
    %19 = arith.addi %c0_i32_5, %18 : i32
    %c1_i32 = arith.constant 1 : i32
    %20:3 = scf.for %arg19 = %c0_i32_5 to %19 step %c1_i32 iter_args(%arg20 = %15, %arg21 = %16, %arg22 = %17) -> (vector<4x8x1xf32>, vector<4x8x1xf32>, vector<4x8x8xf32>)  : i32 {
      %c8_i32_45 = arith.constant 8 : i32
      %119 = arith.muli %arg19, %c8_i32_45 : i32
      %120 = tpu.assume_multiple %119, 8 : i32
      %121 = arith.index_cast %120 : i32 to index
      %c0_46 = arith.constant 0 : index
      %122 = vector.load %arg17[%121, %c0_46] : memref<8x32xbf16, #tpu.memory_space<vmem>>, vector<8x32xbf16>
      %123 = vector.shape_cast %122 : vector<8x32xbf16> to vector<8x4x8xbf16>
      %124 = tpu.transpose %123, [1, 0, 2] : vector<8x4x8xbf16> -> vector<4x8x8xbf16>
      %125 = arith.index_cast %120 : i32 to index
      %c0_47 = arith.constant 0 : index
      %126 = vector.load %arg18[%125, %c0_47] : memref<8x32xbf16, #tpu.memory_space<vmem>>, vector<8x32xbf16>
      %127 = vector.shape_cast %126 : vector<8x32xbf16> to vector<8x4x8xbf16>
      %128 = tpu.transpose %127, [1, 0, 2] : vector<8x4x8xbf16> -> vector<4x8x8xbf16>
      "tpu.trace_start"() <{level = 10 : i32, message = "hqd,hkd->hqk"}> : () -> ()
      %cst_48 = arith.constant dense<0.000000e+00> : vector<4x8x8xf32>
      %129 = tpu.matmul %11, %124, %cst_48 {dimension_numbers = #tpu.dot_dimension_numbers<[2], [2], [1], [1], [0, 0, 0, 1, 1, 1], [0], [0]>} : vector<4x8x8xbf16>, vector<4x8x8xbf16>, vector<4x8x8xf32> -> vector<4x8x8xf32>
      "tpu.trace_stop"() : () -> ()
      %cst_49 = arith.constant dense<0xFF800000> : vector<4x8xf32>
      %130 = vector.multi_reduction <maximumf>, %129, %cst_49 [2] : vector<4x8x8xf32> to vector<4x8xf32>
      %131 = vector.shape_cast %130 : vector<4x8xf32> to vector<4x8x1xf32>
      %132 = arith.maximumf %arg20, %131 : vector<4x8x1xf32>
      %133 = arith.subf %arg20, %132 : vector<4x8x1xf32>
      %134 = math.exp %133 : vector<4x8x1xf32>
      %135 = vector.broadcast %132 : vector<4x8x1xf32> to vector<4x8x8xf32>
      %136 = arith.subf %129, %135 : vector<4x8x8xf32>
      %137 = math.exp %136 : vector<4x8x8xf32>
      %138 = arith.mulf %134, %arg21 : vector<4x8x1xf32>
      %cst_50 = arith.constant dense<0.000000e+00> : vector<4x8xf32>
      %139 = vector.multi_reduction <add>, %137, %cst_50 [2] : vector<4x8x8xf32> to vector<4x8xf32>
      %140 = vector.shape_cast %139 : vector<4x8xf32> to vector<4x8x1xf32>
      %141 = arith.addf %138, %140 : vector<4x8x1xf32>
      %142 = vector.broadcast %134 : vector<4x8x1xf32> to vector<4x8x8xf32>
      %143 = arith.mulf %142, %arg22 : vector<4x8x8xf32>
      %144 = arith.truncf %137 : vector<4x8x8xf32> to vector<4x8x8xbf16>
      "tpu.trace_start"() <{level = 10 : i32, message = "hqk,hkd->hqd"}> : () -> ()
      %cst_51 = arith.constant dense<0.000000e+00> : vector<4x8x8xf32>
      %145 = tpu.matmul %144, %128, %cst_51 {dimension_numbers = #tpu.dot_dimension_numbers<[2], [1], [1], [2], [0, 0, 0, 1, 1, 2], [0], [0]>} : vector<4x8x8xbf16>, vector<4x8x8xbf16>, vector<4x8x8xf32> -> vector<4x8x8xf32>
      "tpu.trace_stop"() : () -> ()
      %146 = arith.addf %143, %145 : vector<4x8x8xf32>
      scf.yield %132, %141, %146 : vector<4x8x1xf32>, vector<4x8x1xf32>, vector<4x8x8xf32>
    }
    %c8_i32_6 = arith.constant 8 : i32
    %21 = arith.muli %arg1, %c8_i32_6 : i32
    %22 = tpu.assume_multiple %21, 8 : i32
    %23 = arith.index_cast %22 : i32 to index
    %c0_7 = arith.constant 0 : index
    %24 = vector.load %arg17[%23, %c0_7] : memref<8x32xbf16, #tpu.memory_space<vmem>>, vector<8x32xbf16>
    %25 = vector.shape_cast %24 : vector<8x32xbf16> to vector<8x4x8xbf16>
    %26 = tpu.transpose %25, [1, 0, 2] : vector<8x4x8xbf16> -> vector<4x8x8xbf16>
    %27 = arith.index_cast %22 : i32 to index
    %c0_8 = arith.constant 0 : index
    %28 = vector.load %arg18[%27, %c0_8] : memref<8x32xbf16, #tpu.memory_space<vmem>>, vector<8x32xbf16>
    %29 = vector.shape_cast %28 : vector<8x32xbf16> to vector<8x4x8xbf16>
    %30 = tpu.transpose %29, [1, 0, 2] : vector<8x4x8xbf16> -> vector<4x8x8xbf16>
    "tpu.trace_start"() <{level = 10 : i32, message = "hqd,hkd->hqk"}> : () -> ()
    %cst_9 = arith.constant dense<0.000000e+00> : vector<4x8x8xf32>
    %31 = tpu.matmul %11, %26, %cst_9 {dimension_numbers = #tpu.dot_dimension_numbers<[2], [2], [1], [1], [0, 0, 0, 1, 1, 1], [0], [0]>} : vector<4x8x8xbf16>, vector<4x8x8xbf16>, vector<4x8x8xf32> -> vector<4x8x8xf32>
    "tpu.trace_stop"() : () -> ()
    %32 = vector.shape_cast %14 : vector<8x8xi1> to vector<1x8x8xi1>
    %cst_10 = arith.constant -1.000000e+30 : f32
    %33 = vector.shape_cast %32 : vector<1x8x8xi1> to vector<1x8x8xi1>
    %34 = vector.broadcast %33 : vector<1x8x8xi1> to vector<4x8x8xi1>
    %35 = vector.broadcast %cst_10 : f32 to vector<4x8x8xf32>
    %36 = arith.select %34, %31, %35 : vector<4x8x8xi1>, vector<4x8x8xf32>
    %cst_11 = arith.constant dense<0xFF800000> : vector<4x8xf32>
    %37 = vector.multi_reduction <maximumf>, %36, %cst_11 [2] : vector<4x8x8xf32> to vector<4x8xf32>
    %38 = vector.shape_cast %37 : vector<4x8xf32> to vector<4x8x1xf32>
    %39 = arith.maximumf %20#0, %38 : vector<4x8x1xf32>
    %40 = arith.subf %20#0, %39 : vector<4x8x1xf32>
    %41 = math.exp %40 : vector<4x8x1xf32>
    %42 = vector.broadcast %39 : vector<4x8x1xf32> to vector<4x8x8xf32>
    %43 = arith.subf %36, %42 : vector<4x8x8xf32>
    %44 = math.exp %43 : vector<4x8x8xf32>
    %45 = arith.mulf %41, %20#1 : vector<4x8x1xf32>
    %cst_12 = arith.constant dense<0.000000e+00> : vector<4x8xf32>
    %46 = vector.multi_reduction <add>, %44, %cst_12 [2] : vector<4x8x8xf32> to vector<4x8xf32>
    %47 = vector.shape_cast %46 : vector<4x8xf32> to vector<4x8x1xf32>
    %48 = arith.addf %45, %47 : vector<4x8x1xf32>
    %49 = vector.broadcast %41 : vector<4x8x1xf32> to vector<4x8x8xf32>
    %50 = arith.mulf %49, %20#2 : vector<4x8x8xf32>
    %51 = arith.truncf %44 : vector<4x8x8xf32> to vector<4x8x8xbf16>
    "tpu.trace_start"() <{level = 10 : i32, message = "hqk,hkd->hqd"}> : () -> ()
    %cst_13 = arith.constant dense<0.000000e+00> : vector<4x8x8xf32>
    %52 = tpu.matmul %51, %30, %cst_13 {dimension_numbers = #tpu.dot_dimension_numbers<[2], [1], [1], [2], [0, 0, 0, 1, 1, 2], [0], [0]>} : vector<4x8x8xbf16>, vector<4x8x8xbf16>, vector<4x8x8xf32> -> vector<4x8x8xf32>
    "tpu.trace_stop"() : () -> ()
    %53 = arith.addf %50, %52 : vector<4x8x8xf32>
    %54 = tpu.reciprocal %48 {approx = true} : vector<4x8x1xf32> -> vector<4x8x1xf32>
    %55 = vector.broadcast %54 : vector<4x8x1xf32> to vector<4x8x8xf32>
    %56 = arith.mulf %53, %55 : vector<4x8x8xf32>
    %57 = tpu.transpose %56, [1, 0, 2] : vector<4x8x8xf32> -> vector<8x4x8xf32>
    %58 = vector.shape_cast %57 : vector<8x4x8xf32> to vector<8x32xf32>
    %59 = arith.truncf %58 : vector<8x32xf32> to vector<8x32xbf16>
    %c0_14 = arith.constant 0 : index
    %c0_15 = arith.constant 0 : index
    %60 = vector.load %arg7[%c0_14, %c0_15] : memref<32x32xbf16, #tpu.memory_space<vmem>>, vector<32x32xbf16>
    %cst_16 = arith.constant dense<0.000000e+00> : vector<8x32xf32>
    %61 = tpu.matmul %59, %60, %cst_16 {dimension_numbers = #tpu.dot_dimension_numbers<[1], [0], [0], [1], [0, 0, 1, 1], [], []>} : vector<8x32xbf16>, vector<32x32xbf16>, vector<8x32xf32> -> vector<8x32xf32>
    %c0_17 = arith.constant 0 : index
    %c0_18 = arith.constant 0 : index
    %62 = vector.load %arg8[%c0_17, %c0_18] : memref<1x32xf32, #tpu.memory_space<vmem>>, vector<1x32xf32>
    %63 = vector.broadcast %62 : vector<1x32xf32> to vector<8x32xf32>
    %64 = arith.addf %61, %63 : vector<8x32xf32>
    %65 = arith.addf %7, %64 : vector<8x32xf32>
    %c0_19 = arith.constant 0 : index
    %c0_20 = arith.constant 0 : index
    %66 = vector.load %arg9[%c0_19, %c0_20] : memref<1x32xf32, #tpu.memory_space<vmem>>, vector<1x32xf32>
    %c0_21 = arith.constant 0 : index
    %c0_22 = arith.constant 0 : index
    %67 = vector.load %arg10[%c0_21, %c0_22] : memref<1x32xf32, #tpu.memory_space<vmem>>, vector<1x32xf32>
    %cst_23 = arith.constant dense<0.000000e+00> : vector<8xf32>
    %68 = vector.multi_reduction <add>, %65, %cst_23 [1] : vector<8x32xf32> to vector<8xf32>
    %69 = vector.shape_cast %68 : vector<8xf32> to vector<8x1xf32>
    %cst_24 = arith.constant 3.200000e+01 : f32
    %70 = vector.broadcast %cst_24 : f32 to vector<8x1xf32>
    %71 = arith.divf %69, %70 : vector<8x1xf32>
    %72 = vector.broadcast %71 : vector<8x1xf32> to vector<8x32xf32>
    %73 = arith.subf %65, %72 : vector<8x32xf32>
    %74 = arith.mulf %73, %73 : vector<8x32xf32>
    %cst_25 = arith.constant dense<0.000000e+00> : vector<8xf32>
    %75 = vector.multi_reduction <add>, %74, %cst_25 [1] : vector<8x32xf32> to vector<8xf32>
    %76 = vector.shape_cast %75 : vector<8xf32> to vector<8x1xf32>
    %cst_26 = arith.constant 3.200000e+01 : f32
    %77 = vector.broadcast %cst_26 : f32 to vector<8x1xf32>
    %78 = arith.divf %76, %77 : vector<8x1xf32>
    %79 = vector.broadcast %71 : vector<8x1xf32> to vector<8x32xf32>
    %80 = arith.subf %65, %79 : vector<8x32xf32>
    %cst_27 = arith.constant 9.99999974E-6 : f32
    %81 = vector.broadcast %cst_27 : f32 to vector<8x1xf32>
    %82 = arith.addf %78, %81 : vector<8x1xf32>
    %83 = math.rsqrt %82 : vector<8x1xf32>
    %84 = vector.broadcast %83 : vector<8x1xf32> to vector<8x32xf32>
    %85 = arith.mulf %80, %84 : vector<8x32xf32>
    %86 = vector.broadcast %66 : vector<1x32xf32> to vector<8x32xf32>
    %87 = arith.mulf %85, %86 : vector<8x32xf32>
    %88 = vector.broadcast %67 : vector<1x32xf32> to vector<8x32xf32>
    %89 = arith.addf %87, %88 : vector<8x32xf32>
    %90 = arith.truncf %89 : vector<8x32xf32> to vector<8x32xbf16>
    %c0_28 = arith.constant 0 : index
    %c0_29 = arith.constant 0 : index
    %91 = vector.load %arg11[%c0_28, %c0_29] : memref<32x128xbf16, #tpu.memory_space<vmem>>, vector<32x128xbf16>
    %cst_30 = arith.constant dense<0.000000e+00> : vector<8x128xf32>
    %92 = tpu.matmul %90, %91, %cst_30 {dimension_numbers = #tpu.dot_dimension_numbers<[1], [0], [0], [1], [0, 0, 1, 1], [], []>} : vector<8x32xbf16>, vector<32x128xbf16>, vector<8x128xf32> -> vector<8x128xf32>
    %c0_31 = arith.constant 0 : index
    %c0_32 = arith.constant 0 : index
    %93 = vector.load %arg12[%c0_31, %c0_32] : memref<1x128xf32, #tpu.memory_space<vmem>>, vector<1x128xf32>
    %94 = vector.broadcast %93 : vector<1x128xf32> to vector<8x128xf32>
    %95 = arith.addf %92, %94 : vector<8x128xf32>
    %cst_33 = arith.constant 5.000000e-01 : f32
    %96 = vector.broadcast %cst_33 : f32 to vector<8x128xf32>
    %97 = arith.mulf %96, %95 : vector<8x128xf32>
    %cst_34 = arith.constant 4.471500e-02 : f32
    %98 = vector.broadcast %cst_34 : f32 to vector<8x128xf32>
    %99 = arith.mulf %98, %95 : vector<8x128xf32>
    %100 = arith.mulf %99, %95 : vector<8x128xf32>
    %101 = arith.mulf %100, %95 : vector<8x128xf32>
    %102 = arith.addf %95, %101 : vector<8x128xf32>
    %cst_35 = arith.constant 0.797884583 : f32
    %103 = vector.broadcast %cst_35 : f32 to vector<8x128xf32>
    %104 = arith.mulf %103, %102 : vector<8x128xf32>
    %105 = math.tanh %104 : vector<8x128xf32>
    %cst_36 = arith.constant 1.000000e+00 : f32
    %106 = vector.broadcast %cst_36 : f32 to vector<8x128xf32>
    %107 = arith.addf %106, %105 : vector<8x128xf32>
    %108 = arith.mulf %97, %107 : vector<8x128xf32>
    %109 = arith.truncf %108 : vector<8x128xf32> to vector<8x128xbf16>
    %c0_37 = arith.constant 0 : index
    %c0_38 = arith.constant 0 : index
    %110 = vector.load %arg13[%c0_37, %c0_38] : memref<128x32xbf16, #tpu.memory_space<vmem>>, vector<128x32xbf16>
    %cst_39 = arith.constant dense<0.000000e+00> : vector<8x32xf32>
    %111 = tpu.matmul %109, %110, %cst_39 {dimension_numbers = #tpu.dot_dimension_numbers<[1], [0], [0], [1], [0, 0, 1, 1], [], []>} : vector<8x128xbf16>, vector<128x32xbf16>, vector<8x32xf32> -> vector<8x32xf32>
    %c0_40 = arith.constant 0 : index
    %c0_41 = arith.constant 0 : index
    %112 = vector.load %arg14[%c0_40, %c0_41] : memref<1x32xf32, #tpu.memory_space<vmem>>, vector<1x32xf32>
    %113 = vector.broadcast %112 : vector<1x32xf32> to vector<8x32xf32>
    %114 = arith.addf %111, %113 : vector<8x32xf32>
    %115 = arith.addf %65, %114 : vector<8x32xf32>
    %c0_42 = arith.constant 0 : index
    %c0_43 = arith.constant 0 : index
    %c0_44 = arith.constant 0 : index
    %116 = vector.load %arg15[%c0_42, %c0_43, %c0_44] : memref<1x8x32xf32, #tpu.memory_space<vmem>>, vector<1x8x32xf32>
    %117 = vector.shape_cast %116 : vector<1x8x32xf32> to vector<8x32xf32>
    %118 = vector.shape_cast %115 : vector<8x32xf32> to vector<1x8x32xf32>
    tpu.vector_store %arg15[%c0_42, %c0_43, %c0_44], %118 {strides = array<i32>} : memref<1x8x32xf32, #tpu.memory_space<vmem>>, vector<1x8x32xf32>,
    return
  }
  func.func @transform_0(%arg0: i32, %arg1: i32) -> (i32, i32, i32) {
    %c0_i32 = arith.constant 0 : i32
    %c0_i32_0 = arith.constant 0 : i32
    %c0_i32_1 = arith.constant 0 : i32
    return %arg0, %c0_i32, %c0_i32_0 : i32, i32, i32
  }
  func.func @transform_1(%arg0: i32, %arg1: i32) -> (i32, i32) {
    %c0_i32 = arith.constant 0 : i32
    %c0_i32_0 = arith.constant 0 : i32
    %c0_i32_1 = arith.constant 0 : i32
    return %c0_i32, %c0_i32_0 : i32, i32
  }
  func.func @transform_2(%arg0: i32, %arg1: i32) -> (i32, i32) {
    %c0_i32 = arith.constant 0 : i32
    %c0_i32_0 = arith.constant 0 : i32
    %c0_i32_1 = arith.constant 0 : i32
    return %c0_i32, %c0_i32_0 : i32, i32
  }
  func.func @transform_3(%arg0: i32, %arg1: i32) -> (i32, i32) {
    %c0_i32 = arith.constant 0 : i32
    %c0_i32_0 = arith.constant 0 : i32
    %c0_i32_1 = arith.constant 0 : i32
    return %c0_i32, %c0_i32_0 : i32, i32
  }
  func.func @transform_4(%arg0: i32, %arg1: i32) -> (i32, i32) {
    %c0_i32 = arith.constant 0 : i32
    %c0_i32_0 = arith.constant 0 : i32
    %c0_i32_1 = arith.constant 0 : i32
    return %c0_i32, %c0_i32_0 : i32, i32
  }
  func.func @transform_5(%arg0: i32, %arg1: i32) -> (i32, i32) {
    %c0_i32 = arith.constant 0 : i32
    %c0_i32_0 = arith.constant 0 : i32
    %c0_i32_1 = arith.constant 0 : i32
    return %c0_i32, %c0_i32_0 : i32, i32
  }
  func.func @transform_6(%arg0: i32, %arg1: i32) -> (i32, i32) {
    %c0_i32 = arith.constant 0 : i32
    %c0_i32_0 = arith.constant 0 : i32
    %c0_i32_1 = arith.constant 0 : i32
    return %c0_i32, %c0_i32_0 : i32, i32
  }
  func.func @transform_7(%arg0: i32, %arg1: i32) -> (i32, i32) {
    %c0_i32 = arith.constant 0 : i32
    %c0_i32_0 = arith.constant 0 : i32
    %c0_i32_1 = arith.constant 0 : i32
    return %c0_i32, %c0_i32_0 : i32, i32
  }
  func.func @transform_8(%arg0: i32, %arg1: i32) -> (i32, i32) {
    %c0_i32 = arith.constant 0 : i32
    %c0_i32_0 = arith.constant 0 : i32
    %c0_i32_1 = arith.constant 0 : i32
    return %c0_i32, %c0_i32_0 : i32, i32
  }
  func.func @transform_9(%arg0: i32, %arg1: i32) -> (i32, i32) {
    %c0_i32 = arith.constant 0 : i32
    %c0_i32_0 = arith.constant 0 : i32
    %c0_i32_1 = arith.constant 0 : i32
    return %c0_i32, %c0_i32_0 : i32, i32
  }
  func.func @transform_10(%arg0: i32, %arg1: i32) -> (i32, i32) {
    %c0_i32 = arith.constant 0 : i32
    %c0_i32_0 = arith.constant 0 : i32
    %c0_i32_1 = arith.constant 0 : i32
    return %c0_i32, %c0_i32_0 : i32, i32
  }
  func.func @transform_11(%arg0: i32, %arg1: i32) -> (i32, i32) {
    %c0_i32 = arith.constant 0 : i32
    %c0_i32_0 = arith.constant 0 : i32
    %c0_i32_1 = arith.constant 0 : i32
    return %c0_i32, %c0_i32_0 : i32, i32
  }
  func.func @transform_12(%arg0: i32, %arg1: i32) -> (i32, i32) {
    %c0_i32 = arith.constant 0 : i32
    %c0_i32_0 = arith.constant 0 : i32
    %c0_i32_1 = arith.constant 0 : i32
    return %c0_i32, %c0_i32_0 : i32, i32
  }
  func.func @transform_13(%arg0: i32, %arg1: i32) -> (i32, i32, i32) {
    %c0_i32 = arith.constant 0 : i32
    %c0_i32_0 = arith.constant 0 : i32
    return %arg0, %arg1, %c0_i32 : i32, i32, i32
  }
}

</mosaic_0001>

<bundles_post_ra>
// kernel: tpu_custom_call.1
= control target key start
LH: loop header
LB: loop body
LE: loop exit
PB: predicated region body
PF: predicated region fallthrough
CT: control target
= control target key end

     0   :  { %s2871_s0 = inlined_call_operand.vmem [shape: f32[2,8,32], index: 0, kind: input, shape index: {}]   ;;  %s2872_s1 = inlined_call_operand.vmem [shape: f32[1,32], index: 1, kind: input, shape index: {}]   ;;  %s2873_s2 = inlined_call_operand.vmem [shape: f32[1,32], index: 2, kind: input, shape index: {}]   ;;  %s2874_s3 = inlined_call_operand.vmem [shape: bf16[32,96], index: 3, kind: input, shape index: {}]   ;;  %s2875_s4 = inlined_call_operand.vmem [shape: f32[1,96], index: 4, kind: input, shape index: {}]   ;;  %s2876_s5 = inlined_call_operand.vmem [shape: bf16[32,32], index: 5, kind: input, shape index: {}]   ;;  %s2877_s6 = inlined_call_operand.vmem [shape: f32[1,32], index: 6, kind: input, shape index: {}]   ;;  %s2878_s7 = inlined_call_operand.vmem [shape: f32[1,32], index: 7, kind: input, shape index: {}]   ;;  %s2879_s8 = inlined_call_operand.vmem [shape: f32[1,32], index: 8, kind: input, shape index: {}]   ;;  %s2880_s9 = inlined_call_operand.vmem [shape: bf16[32,128], index: 9, kind: input, shape index: {}]   ;;  %s2881_s10 = inlined_call_operand.vmem [shape: f32[1,128], index: 10, kind: input, shape index: {}]   ;;  %s2882_s11 = inlined_call_operand.vmem [shape: bf16[128,32], index: 11, kind: input, shape index: {}]   ;;  %s2883_s12 = inlined_call_operand.vmem [shape: f32[1,32], index: 12, kind: input, shape index: {}]   ;;  %s2884_s13 = inlined_call_operand.hbm [shape: f32[2,8,32], index: 13, kind: output, shape index: {}]  }
   0x1   :  { %2885 = sst [smem:[#allocation8_spill]] %s2871_s0 }
   0x2   :  { %2886 = sst [smem:[#allocation9_spill]] %s2872_s1 }
   0x3   :  { %2887 = sst [smem:[#allocation10_spill]] %s2873_s2 }
   0x4   :  { %2888 = sst [smem:[#allocation11_spill]] %s2874_s3 }
   0x5   :  { %2889 = sst [smem:[#allocation12_spill]] %s2875_s4 }
   0x6   :  { %18 = vsyncpa [#allocation6], 0 }
   0x7   :  { %20 = vsyncpa [#allocation6 + $0x1], 0  ;;  %s2509_s25 = smov 0   ;;  %s2511_s26 = smov 0  }
   0x8   :  { %s2513_s27 = smov 0   ;;  %s2515_s28 = smov 0  }
   0x9   :  { %s2517_s29 = smov 0   ;;  %s2519_s30 = smov 0  }
   0xa LB: > { %s2139_s14 = sadd.s32 4294967295, %s2426_s30   ;;  %s2140_s15 = sadd.s32 4294967294, %s2426_s30   ;;  %s2426_s30 = sphi %s2519_s30, %s26_s30   ;;  %s2422_s29 = sphi %s2517_s29, %s2901_s29   ;;  %s2418_s28 = sphi %s2515_s28, %s2900_s28   ;;  %s2414_s27 = sphi %s2513_s27, %s2899_s27   ;;  %s2410_s26 = sphi %s2511_s26, %s2898_s26   ;;  %s2406_s25 = sphi %s2509_s25, %s2897_s25  }
   0xb   : > { %s38_s16 = sadd.s32 1, %s2422_s29  ;;  %s325_s17 = sadd.s32 1, %s2414_s27 }
   0xc   : > { %p40_p0 = scmp.ge.s32.totalorder %s38_s16, 2  ;;  %p335_p1 = scmp.ne.s32.totalorder %s2414_s27, %s2410_s26 }
   0xd   : > { %p336_p2 = scmp.eq.s32.totalorder %s2139_s14, 1  ;;  %p341_p3 = scmp.ne.s32.totalorder %s2410_s26, %s2406_s25 }
   0xe   : > { %s2903_s16 = smov (%p40_p0, %s38_s16), 0  ;;  %p342_p5 = scmp.eq.s32.totalorder %s2140_s15, 1 }
   0xf   : > { %p2549_p4 = por %p336_p2, %p335_p1  ;;  %s320_s19 = ssub.s32 %s2422_s29, %s2903_s16 }
  0x10   : > { %p2143_p6 = scmp.ge.s32.totalorder %s2426_s30, 1  ;;  %p323_p7 = scmp.eq.s32.totalorder %s320_s19, 0 }
  0x11   : > { %p2556_p8 = por %p342_p5, %p341_p3  ;;  %p403_p9 = scmp.lt.s32.totalorder %s2426_s30, 3 }
  0x12   : > { %s2562_s21 = scalar_select %p323_p7, %s2414_s27, %s325_s17  }
  0x13   : > { %p404_p10 = pnand %p2143_p6, %p403_p9 }
  0x14   : > { %p446_p11 = scmp.lt.s32.totalorder (!%p404_p10), %s2418_s28, 1  ;;  %s2892_s0 = sld [smem:[#allocation8_spill]] (!%p404_p10) }
  0x15   : > { %407 = sbr.rel (%p404_p10) target bundleno = 1951 (0x79f), region = 72  ;;  %s2893_s3 = sld [smem:[#allocation11_spill]] (!%p404_p10) }
  0x16   : > { %s2894_s1 = sld [smem:[#allocation9_spill]] (!%p404_p10)  ;;  %s2430_s24 = smov (!%p404_p10), 120  }
  0x17   : > { %s2895_s2 = sld [smem:[#allocation10_spill]] (!%p404_p10)  ;;  %s2431_s14 = smov (!%p404_p10), 112  }
  0x18   : > { %s2896_s4 = sld [smem:[#allocation12_spill]] (!%p404_p10)  ;;  %s2433_s17 = smov (!%p404_p10), 64  }
  0x19   : > { %s2436_s19 = smov (!%p404_p10), 16  }
  0x1a   : > { %s447_s22 = scalar_select %p446_p11, %s2418_s28, 1  ;;  %vm458_vm0 = vcmask 261120   ;;  %v2428_v2 = vmov 32.0   ;;  %vm535_vm5 = vcmask 257024   ;;  %v2434_v44 = vmov 1983009808  }
  0x1b   : > { %2316 = vrcp.f32 %v2428_v2  ;;  %v2229_v14 = vld [vmem:[%s2893_s3 + $0x8] sm:$0xff]  ;;  %v2228_v15 = vld [vmem:[%s2893_s3] sm:$0xff]  ;;  %v576_v45 = vunpack.c.l.s4 %v2434_v44  ;;  %v2435_v52 = vmov 1934713408   ;;  %vm585_vm6 = vcmask 1047556  }
  0x1c   : > { %s2145_s23 = sshll.u32 %s447_s22, 3  ;;  %526 = vmatpush.bf16.msra.mxu0 %v2229_v14  ;;  %v2308_v25 = vld [vmem:[%s2894_s1] ss:$0 sm:$0xff]  ;;  %v590_v53 = vunpack.c.l.s4 %v2435_v52  ;;  %vm1425_vm7 = vcmask 64512   ;;  %vm1579_vm9 = vcmask 1043456   ;;  %s2437_s22 = smov 24  }
  0x1d   : > { %s449_s15 = scalar_lea.vmem %s2892_s0, %s2145_s23  ;;  %v2309_v28 = vld [vmem:[%s2895_s2] ss:$0 sm:$0xff]  ;;  %s2429_s23 = smov 96   ;;  %v2603_v49 = vunpack.c.0.s8 %v576_v45  ;;  %vm1789_vm10 = vcmask 130048   ;;  %vm1791_vm11 = vcmask 195584  }
  0x1e   : > { %v2569_v0 = vld [vmem:[%s449_s15] sm:$0xff]  ;;  %s2432_s15 = smov 104   ;;  %v2607_v62 = vunpack.c.0.s8 %v590_v53  ;;  %s443_s1 = sand.u32 1, %s2410_s26  }
  0x1f   : > { %v459_v1 = vsel %vm458_vm0, %v2569_v0, 0.0  ;;  %v2310_v32 = vld [vmem:[%s2896_s4] ss:$0 sm:$0xff]  ;;  %s2144_s2 = sshll.u32 %s443_s1, 3 }
  0x20   : > { %460 = vadd.xlane.f32.xlu0 %v459_v1  ;;  %527 = vmatpush.bf16.msra.mxu0 %v2228_v15 }
  0x21   : > { %v2317_v3 = vpop.eup %2316 }
  0x22   : > { %v463_v4 = vmul.f32 32.0, %v2317_v3  ;;  %vm467_vm1 = vweird.f32 %v2317_v3 }
  0x24   : > { %v464_v5 = vsub.f32 1.0, %v463_v4 }
  0x26   : > { %v465_v6 = vmul.f32 %v2317_v3, %v464_v5 }
  0x28   : > { %v466_v7 = vadd.f32 %v2317_v3, %v465_v6 }
  0x2a   : > { %v2573_v8 = vsel %vm467_vm1, %v2317_v3, %v466_v7 }
  0x93   : > { %v461_v9 = vpop.xlane.xlu0 %460 }
  0x94   : > { %v469_v10 = vmul.f32 %v2573_v8, %v461_v9 }
  0x96   : > { %v470_v11 = vsub.f32 %v2569_v0, %v469_v10 }
  0x98   : > { %v471_v12 = vmul.f32 %v470_v11, %v470_v11 }
  0x9a   : > { %v472_v13 = vsel %vm458_vm0, %v471_v12, 0.0 }
  0x9b   : > { %473 = vadd.xlane.f32.xlu0 %v472_v13 }
 0x10e   : > { %v474_v16 = vpop.xlane.xlu0 %473 }
 0x10f   : > { %v475_v17 = vmul.f32 %v474_v16, %v2573_v8 }
 0x111   : > { %v476_v18 = vadd.f32 1e-05, %v475_v17 }
 0x113   : > { %2318 = vrsqrt.f32 %v476_v18  ;;  %vm483_vm3 = vweird.f32 %v476_v18 }
 0x119   : > { %v2319_v19 = vpop.eup %2318 }
 0x11a   : > { %v478_v20 = vmul.f32 %v2319_v19, %v476_v18  ;;  %vm484_vm2 = vweird.f32 %v2319_v19 }
 0x11b   : > { %vm485_vm4 = vmor %vm483_vm3, %vm484_vm2 }
 0x11c   : > { %v479_v21 = vmul.f32 %v2319_v19, %v478_v20 }
 0x11e   : > { %v480_v22 = vmul.f32 0.5, %v479_v21 }
 0x120   : > { %v481_v23 = vsub.f32 1.5, %v480_v22 }
 0x122   : > { %v482_v24 = vmul.f32 %v2319_v19, %v481_v23 }
 0x124   : > { %v486_v26 = vsel %vm485_vm4, %v2319_v19, %v482_v24 }
 0x125   : > { %v487_v27 = vmul.f32 %v486_v26, %v470_v11 }
 0x127   : > { %v491_v29 = vmul.f32 %v2308_v25, %v487_v27 }
 0x129   : > { %v495_v30 = vadd.f32 %v2309_v28, %v491_v29 }
 0x12b   : > { %v496_v31 = vpack.c.bf16 %v495_v30, %v495_v30 }
 0x12d   : > { %2154 = vmatmul.msk.bf16.vlgmr.msra.gmra.mxu0 %vm458_vm0, %v496_v31 }
 0x1aa   : > { %v529_v33 = vpop.f32.mrf.mxu0 }
 0x1ab   : > { %v530_v34 = vadd.f32 %v2310_v32, %v529_v33 }
 0x1ad   : > { %v533_v35 = vmul.f32 0.35355338, %v530_v34  ;;  %v537_v36 = vpack.c.bf16 %v530_v34, %v530_v34 }
 0x1af   : > { %v534_v37 = vpack.c.bf16 %v533_v35, %v533_v35  ;;  %539 = vrot.lane.b32.xlu1 %v537_v36, %s2429_s23  ;;  %s2438_s23 = smov 8  }
 0x1b1   : > { %536 = vst.msk [vmem:[#allocation2] sm:$0xf] %vm535_vm5, %v534_v37 }
 0x1b2   : > { %v531_v38 = vpop.f32.mrf.mxu0 }
 0x1b8   : > { %v554_v39 = vld [vmem:[#allocation2] sm:$0xf] }
 0x1b9   : > { %556 = vrot.lane.b32.xlu0 %v554_v39, %s2430_s24  ;;  %v565_v61 = vshrl.u32 %v554_v39, 16 }
 0x221   : > { %v540_v40 = vpop.permute.xlu1 %539 }
 0x222   : > { %542 = vst.msk [vmem:[#allocation3] sm:$0xf] %vm535_vm5, %v540_v40 }
 0x229   : > { %v1179_v41 = vld [vmem:[#allocation3] sm:$0xf] }
 0x22a   : > { %1183 = vrot.lane.b32.xlu2 %v1179_v41, %s2431_s14  ;;  %1181 = vrot.lane.b32.xlu1 %v1179_v41, %s2430_s24  ;;  %v1190_v59 = vshrl.u32 %v1179_v41, 16 }
 0x22b   : > { %v557_v50 = vpop.permute.xlu0 %556 }
 0x22c   : > { %v566_v55 = vshrl.u32 %v557_v50, 16  ;;  %v564_v63 = vpack.i.b16 %v557_v50, %v554_v39 }
 0x22e   : > { %v567_v4 = vpack.i.b16 %v566_v55, %v565_v61  ;;  %v578_v12 = vperm.slane %v564_v63, %v2603_v49 }
 0x230   : > { %v605_v16 = vperm.slane %v567_v4, %v2603_v49  ;;  %v587_v28 = vrot.slane %v578_v12, 4 }
 0x232   : > { %1185 = vrot.lane.b32.xlu2 %v1179_v41, %s2432_s15  ;;  %558 = vrot.lane.b32.xlu1 %v554_v39, %s2431_s14  ;;  %v613_v31 = vrot.slane %v605_v16, 4 }
 0x23a   : > { %560 = vrot.lane.b32.xlu2 %v554_v39, %s2432_s15  ;;  %543 = vrot.lane.b32.xlu1 %v537_v36, %s2433_s17 }
 0x284   : > { %v1184_v42 = vpop.permute.xlu2 %1183 }
 0x285   : > { %v1196_v47 = vshrl.u32 %v1184_v42, 16 }
 0x28c   : > { %v1186_v43 = vpop.permute.xlu2 %1185 }
 0x28d   : > { %v1197_v46 = vshrl.u32 %v1186_v43, 16  ;;  %v1195_v48 = vpack.i.b16 %v1186_v43, %v1184_v42 }
 0x28f   : > { %v1198_v51 = vpack.i.b16 %v1197_v46, %v1196_v47  ;;  %v1208_v54 = vperm.slane %v1195_v48, %v2603_v49 }
 0x291   : > { %v1234_v57 = vperm.slane %v1198_v51, %v2603_v49  ;;  %v1209_v1 = vrot.slane %v1208_v54, 4 }
 0x293   : > { %v1235_v5 = vrot.slane %v1234_v57, 4 }
 0x294   : > { %v561_v10 = vpop.permute.xlu2 %560 }
 0x295   : > { %v572_v21 = vshrl.u32 %v561_v10, 16 }
 0x29c   : > { %v1182_v56 = vpop.permute.xlu1 %1181 }
 0x29d   : > { %v1189_v58 = vpack.i.b16 %v1182_v56, %v1179_v41  ;;  %v1191_v60 = vshrl.u32 %v1182_v56, 16 }
 0x29f   : > { %v1192_v2 = vpack.i.b16 %v1191_v60, %v1190_v59  ;;  %v1203_v3 = vperm.slane %v1189_v58, %v2603_v49 }
 0x2a1   : > { %v1210_v6 = vsel %vm585_vm6, %v1209_v1, %v1203_v3  ;;  %v1211_v7 = vrot.slane %v1203_v3, 4  ;;  %v1229_v9 = vperm.slane %v1192_v2, %v2603_v49 }
 0x2a2   : > { %v1216_v11 = vperm.slane %v1210_v6, %v2607_v62 }
 0x2a3   : > { %v1212_v13 = vsel %vm585_vm6, %v1208_v54, %v1211_v7  ;;  %v1236_v14 = vsel %vm585_vm6, %v1235_v5, %v1229_v9  ;;  %v1237_v15 = vrot.slane %v1229_v9, 4 }
 0x2a4   : > { %v1220_v17 = vperm.slane %v1212_v13, %v2607_v62  ;;  %v1221_v18 = vrot.slane %v1216_v11, 4  ;;  %v1242_v19 = vperm.slane %v1236_v14, %v2607_v62  ;;  %v559_v20 = vpop.permute.xlu1 %558 }
 0x2a5   : > { %v1238_v22 = vsel %vm585_vm6, %v1234_v57, %v1237_v15  ;;  %v570_v23 = vpack.i.b16 %v561_v10, %v559_v20  ;;  %v571_v24 = vshrl.u32 %v559_v20, 16 }
 0x2a6   : > { %v1223_v25 = vrot.slane %v1220_v17, 4  ;;  %v1246_v26 = vperm.slane %v1238_v22, %v2607_v62  ;;  %v1247_v27 = vrot.slane %v1242_v19, 4  ;;  %v1222_v32 = vsel %vm585_vm6, 0, %v1221_v18 }
 0x2a7   : > { %v573_v29 = vpack.i.b16 %v572_v21, %v571_v24  ;;  %v583_v30 = vperm.slane %v570_v23, %v2603_v49 }
 0x2a8   : > { %v1224_v33 = vsel %vm585_vm6, 0, %v1223_v25  ;;  %v1249_v34 = vrot.slane %v1246_v26, 4  ;;  %v1248_v39 = vsel %vm585_vm6, 0, %v1247_v27  ;;  %v1251_v42 = vsel %vm585_vm6, %v1223_v25, %v1216_v11 }
 0x2a9   : > { %v1256_v35 = vrot.slane %v1224_v33, 4  ;;  %v584_v36 = vrot.slane %v583_v30, 4  ;;  %v588_v37 = vsel %vm585_vm6, %v583_v30, %v587_v28  ;;  %v610_v38 = vperm.slane %v573_v29, %v2603_v49 }
 0x2aa   : > { %v1250_v40 = vsel %vm585_vm6, 0, %v1249_v34  ;;  %v596_v41 = vperm.slane %v588_v37, %v2607_v62  ;;  %v1270_v55 = vsel %vm585_vm6, %v1249_v34, %v1242_v19  ;;  %v1255_v63 = vperm.slane %v1251_v42, %v2603_v49 }
 0x2ab   : > { %v1275_v43 = vrot.slane %v1250_v40, 4  ;;  %v586_v44 = vsel %vm585_vm6, %v584_v36, %v578_v12  ;;  %v611_v45 = vrot.slane %v610_v38, 4  ;;  %v614_v46 = vsel %vm585_vm6, %v610_v38, %v613_v31 }
 0x2ac   : > { %v592_v47 = vperm.slane %v586_v44, %v2607_v62  ;;  %v599_v48 = vrot.slane %v596_v41, 4  ;;  %v622_v50 = vperm.slane %v614_v46, %v2607_v62  ;;  %v544_v51 = vpop.permute.xlu1 %543  ;;  %v1257_v52 = vsel %vm585_vm6, %v1256_v35, %v1222_v32 }
 0x2ad   : > { %v612_v53 = vsel %vm585_vm6, %v611_v45, %v605_v16  ;;  %546 = vst.msk [vmem:[#allocation4] sm:$0xf] %vm535_vm5, %v544_v51  ;;  %v1261_v54 = vperm.slane %v1257_v52, %v2603_v49  ;;  %v1276_v56 = vsel %vm585_vm6, %v1275_v43, %v1248_v39  ;;  %v1274_v6 = vperm.slane %v1270_v55, %v2603_v49 }
 0x2ae   : > { %v597_v57 = vrot.slane %v592_v47, 4  ;;  %v600_v58 = vsel %vm585_vm6, 0, %v599_v48  ;;  %v618_v59 = vperm.slane %v612_v53, %v2607_v62  ;;  %v625_v60 = vrot.slane %v622_v50, 4 }
 0x2af   : > { %v632_v61 = vrot.slane %v600_v58, 4  ;;  %v1262_v1 = vrot.slane %v1261_v54, 4  ;;  %v1280_v2 = vperm.slane %v1276_v56, %v2603_v49  ;;  %v627_v13 = vsel %vm585_vm6, %v599_v48, %v592_v47 }
 0x2b0   : > { %v598_v3 = vsel %vm585_vm6, 0, %v597_v57  ;;  %v623_v4 = vrot.slane %v618_v59, 4  ;;  %v626_v5 = vsel %vm585_vm6, 0, %v625_v60  ;;  %v646_v22 = vsel %vm585_vm6, %v625_v60, %v618_v59 }
 0x2b1   : > { %v651_v7 = vrot.slane %v626_v5, 4  ;;  %v1263_v9 = vsel %vm585_vm6, %v1262_v1, %v1255_v63  ;;  %v1281_v10 = vrot.slane %v1280_v2, 4  ;;  %v633_v11 = vsel %vm585_vm6, %v632_v61, %v598_v3 }
 0x2b2   : > { %v624_v12 = vsel %vm585_vm6, 0, %v623_v4  ;;  %v1267_v14 = vperm.slane %v1263_v9, %v2607_v62  ;;  %v637_v15 = vperm.slane %v633_v11, %v2603_v49  ;;  %v631_v24 = vperm.slane %v627_v13, %v2603_v49 }
 0x2b3   : > { %v1282_v16 = vsel %vm585_vm6, %v1281_v10, %v1274_v6  ;;  %v652_v17 = vsel %vm585_vm6, %v651_v7, %v624_v12  ;;  %v650_v31 = vperm.slane %v646_v22, %v2603_v49 }
 0x2b4   : > { %v1303_v18 = vld [vmem:[#allocation4] sm:$0xf]  ;;  %v1286_v19 = vperm.slane %v1282_v16, %v2607_v62  ;;  %v1268_v20 = vrot.slane %v1267_v14, 4  ;;  %v638_v21 = vrot.slane %v637_v15, 4  ;;  %v1292_v23 = vshrl.u32 %v1267_v14, 16 }
 0x2b5   : > { %1307 = vrot.lane.b32.xlu1 %v1303_v18, %s2431_s14  ;;  %1305 = vrot.lane.b32.xlu2 %v1303_v18, %s2430_s24  ;;  %v656_v25 = vperm.slane %v652_v17, %v2603_v49  ;;  %v1314_v63 = vshrl.u32 %v1303_v18, 16 }
 0x2b6   : > { %v1291_v26 = vpack.i.b16 %v1286_v19, %v1267_v14  ;;  %v1293_v27 = vshrl.u32 %v1286_v19, 16  ;;  %v1269_v28 = vsel %vm585_vm6, 0, %v1268_v20  ;;  %v1287_v29 = vrot.slane %v1286_v19, 4 }
 0x2b7   : > { %v639_v30 = vsel %vm585_vm6, %v638_v21, %v631_v24  ;;  %v657_v32 = vrot.slane %v656_v25, 4  ;;  %v1298_v38 = vshrl.u32 %v1269_v28, 16 }
 0x2b8   : > { %v1430_v33 = vsel %vm1425_vm7, %v1291_v26, 0  ;;  %v1294_v34 = vpack.i.b16 %v1293_v27, %v1292_v23  ;;  %v1288_v35 = vsel %vm585_vm6, 0, %v1287_v29  ;;  %v643_v36 = vperm.slane %v639_v30, %v2607_v62 }
 0x2b9   : > { %1439 = vmatpush.bf16.xpose.msra.mxu1 %v1430_v33  ;;  %v1297_v37 = vpack.i.b16 %v1288_v35, %v1269_v28  ;;  %v1299_v39 = vshrl.u32 %v1288_v35, 16  ;;  %v658_v40 = vsel %vm585_vm6, %v657_v32, %v650_v31  ;;  %v677_v30 = vlaneseq }
 0x2ba   : > { %v1449_v41 = vsel %vm1425_vm7, %v1294_v34, 0  ;;  %v662_v42 = vperm.slane %v658_v40, %v2607_v62  ;;  %v644_v43 = vrot.slane %v643_v36, 4  ;;  %v668_v51 = vshrl.u32 %v643_v36, 16 }
 0x2bb   : > { %1458 = vmatpush.bf16.xpose.msra.mxu2 %v1449_v41  ;;  %v1468_v44 = vsel %vm1425_vm7, %v1297_v37, 0  ;;  %v1300_v45 = vpack.i.b16 %v1299_v39, %v1298_v38  ;;  %v678_v39 = vshrl.u32 %v677_v30, 7 }
 0x2bc   : > { %1477 = vmatpush.bf16.xpose.msra.mxu3 %v1468_v44  ;;  %v669_v46 = vshrl.u32 %v662_v42, 16  ;;  %v663_v47 = vrot.slane %v662_v42, 4  ;;  %v667_v50 = vpack.i.b16 %v662_v42, %v643_v36  ;;  %v645_v52 = vsel %vm585_vm6, 0, %v644_v43 }
 0x2bd   : > { %v1487_v48 = vsel %vm1425_vm7, %v1300_v45, 0  ;;  %1309 = vrot.lane.b32.xlu2 %v1303_v18, %s2432_s15  ;;  %v674_v57 = vshrl.u32 %v645_v52, 16  ;;  %v680_v42 = vand.u32 127, %v677_v30 }
 0x2be   : > { %1496 = vmatpush.bf16.xpose.msrb.mxu0 %v1487_v48  ;;  %v664_v53 = vsel %vm585_vm6, 0, %v663_v47  ;;  %v670_v55 = vpack.i.b16 %v669_v46, %v668_v51 }
 0x2bf   : > { %v675_v54 = vshrl.u32 %v664_v53, 16  ;;  %v673_v56 = vpack.i.b16 %v664_v53, %v645_v52  ;;  %vm681_vm8 = vcmp.le.s32.totalorder %v680_v42, %v678_v39 }
 0x2c0   : > { %2166 = vmatmul.msk.bf16.vlgmr.msra.gmra.mxu1 %vm1425_vm7, %v667_v50 }
 0x2c1   : > { %v676_v58 = vpack.i.b16 %v675_v54, %v674_v57 }
 0x2c2   : > { %2167 = vmatmul.msk.bf16.vlgmr.msra.gmra.mxu2 %vm1425_vm7, %v670_v55 }
 0x2c3   : > { %2168 = vmatmul.msk.bf16.vlgmr.msra.gmra.mxu3 %vm1425_vm7, %v673_v56 }
 0x2c5   : > { %2169 = vmatmul.msk.bf16.vlgmr.msrb.gmra.mxu0 %vm1425_vm7, %v676_v58 }
 0x30f   : > { %v1306_v59 = vpop.permute.xlu2 %1305 }
 0x310   : > { %v1315_v60 = vshrl.u32 %v1306_v59, 16  ;;  %v1313_v61 = vpack.i.b16 %v1306_v59, %v1303_v18 }
 0x312   : > { %v1316_v1 = vpack.i.b16 %v1315_v60, %v1314_v63  ;;  %v1327_v3 = vperm.slane %v1313_v61, %v2603_v49 }
 0x314   : > { %v1353_v5 = vperm.slane %v1316_v1, %v2603_v49  ;;  %v1335_v10 = vrot.slane %v1327_v3, 4 }
 0x316   : > { %v1361_v13 = vrot.slane %v1353_v5, 4 }
 0x317   : > { %v1310_v2 = vpop.permute.xlu2 %1309 }
 0x318   : > { %v1321_v6 = vshrl.u32 %v1310_v2, 16 }
 0x327   : > { %v1308_v4 = vpop.permute.xlu1 %1307 }
 0x328   : > { %v1319_v7 = vpack.i.b16 %v1310_v2, %v1308_v4  ;;  %v1320_v9 = vshrl.u32 %v1308_v4, 16 }
 0x32a   : > { %v1322_v11 = vpack.i.b16 %v1321_v6, %v1320_v9  ;;  %v1332_v12 = vperm.slane %v1319_v7, %v2603_v49 }
 0x32c   : > { %v1333_v14 = vrot.slane %v1332_v12, 4  ;;  %v1336_v15 = vsel %vm585_vm6, %v1332_v12, %v1335_v10  ;;  %v1358_v16 = vperm.slane %v1322_v11, %v2603_v49 }
 0x32d   : > { %v1344_v17 = vperm.slane %v1336_v15, %v2607_v62 }
 0x32e   : > { %v1334_v18 = vsel %vm585_vm6, %v1333_v14, %v1327_v3  ;;  %v1359_v19 = vrot.slane %v1358_v16, 4  ;;  %v1362_v20 = vsel %vm585_vm6, %v1358_v16, %v1361_v13 }
 0x32f   : > { %v1340_v21 = vperm.slane %v1334_v18, %v2607_v62  ;;  %v1347_v22 = vrot.slane %v1344_v17, 4  ;;  %v1370_v23 = vperm.slane %v1362_v20, %v2607_v62 }
 0x330   : > { %v1360_v24 = vsel %vm585_vm6, %v1359_v19, %v1353_v5 }
 0x331   : > { %v1345_v25 = vrot.slane %v1340_v21, 4  ;;  %v1348_v26 = vsel %vm585_vm6, 0, %v1347_v22  ;;  %v1366_v27 = vperm.slane %v1360_v24, %v2607_v62  ;;  %v1373_v28 = vrot.slane %v1370_v23, 4 }
 0x332   : > { %v1380_v29 = vrot.slane %v1348_v26, 4  ;;  %v1375_v35 = vsel %vm585_vm6, %v1347_v22, %v1340_v21 }
 0x333   : > { %v1346_v31 = vsel %vm585_vm6, 0, %v1345_v25  ;;  %v1371_v32 = vrot.slane %v1366_v27, 4  ;;  %v1374_v33 = vsel %vm585_vm6, 0, %v1373_v28  ;;  %v1394_v40 = vsel %vm585_vm6, %v1373_v28, %v1366_v27 }
 0x334   : > { %v1399_v34 = vrot.slane %v1374_v33, 4  ;;  %v1381_v36 = vsel %vm585_vm6, %v1380_v29, %v1346_v31  ;;  %v1379_v43 = vperm.slane %v1375_v35, %v2603_v49  ;;  %v1398_v47 = vperm.slane %v1394_v40, %v2603_v49 }
 0x335   : > { %v1372_v37 = vsel %vm585_vm6, 0, %v1371_v32  ;;  %v1385_v38 = vperm.slane %v1381_v36, %v2603_v49 }
 0x336   : > { %v1400_v41 = vsel %vm585_vm6, %v1399_v34, %v1372_v37 }
 0x337   : > { %v1386_v44 = vrot.slane %v1385_v38, 4  ;;  %v1404_v45 = vperm.slane %v1400_v41, %v2603_v49 }
 0x339   : > { %v1387_v46 = vsel %vm585_vm6, %v1386_v44, %v1379_v43  ;;  %v1405_v48 = vrot.slane %v1404_v45, 4 }
 0x33a   : > { %v1391_v50 = vperm.slane %v1387_v46, %v2607_v62 }
 0x33b   : > { %v1406_v51 = vsel %vm585_vm6, %v1405_v48, %v1398_v47 }
 0x33c   : > { %v1410_v52 = vperm.slane %v1406_v51, %v2607_v62  ;;  %v1392_v53 = vrot.slane %v1391_v50, 4  ;;  %v1416_v57 = vshrl.u32 %v1391_v50, 16 }
 0x33d   : > { %v1441_v54 = vpop.f32.mrf.mxu1 }
 0x33e   : > { %v1504_v55 = vsel %vm681_vm8, %v1441_v54, -1e+30  ;;  %v1415_v56 = vpack.i.b16 %v1410_v52, %v1391_v50  ;;  %v1417_v58 = vshrl.u32 %v1410_v52, 16  ;;  %v1393_v60 = vsel %vm585_vm6, 0, %v1392_v53 }
 0x33f   : > { %v1508_v59 = vsel %vm1425_vm7, %v1504_v55, -inf  ;;  %v1411_v61 = vrot.slane %v1410_v52, 4  ;;  %v1422_v6 = vshrl.u32 %v1393_v60, 16 }
 0x340   : > { %1509 = vmax.xlane.f32.xlu2 %v1508_v59  ;;  %v1581_v63 = vsel %vm1579_vm9, %v1415_v56, 0  ;;  %v1418_v1 = vpack.i.b16 %v1417_v58, %v1416_v57 }
 0x341   : > { %1590 = vmatpush.bf16.msrb.mxu1 %v1581_v63  ;;  %v1412_v2 = vsel %vm585_vm6, 0, %v1411_v61 }
 0x342   : > { %v1498_v3 = vpop.f32.mrf.mxu0  ;;  %v1600_v4 = vsel %vm1579_vm9, %v1418_v1, 0  ;;  %v1421_v5 = vpack.i.b16 %v1412_v2, %v1393_v60  ;;  %v1423_v7 = vshrl.u32 %v1412_v2, 16 }
 0x343   : > { %1609 = vmatpush.bf16.msrb.mxu2 %v1600_v4  ;;  %v1507_v20 = vsel %vm681_vm8, %v1498_v3, -1e+30 }
 0x344   : > { %v1619_v9 = vsel %vm1579_vm9, %v1421_v5, 0  ;;  %v1424_v10 = vpack.i.b16 %v1423_v7, %v1422_v6  ;;  %v1517_v23 = vsel %vm1425_vm7, %v1507_v20, -inf }
 0x345   : > { %v1443_v11 = vpop.f32.mrf.mxu1  ;;  %v1460_v12 = vpop.f32.mrf.mxu2  ;;  %1628 = vmatpush.bf16.msrb.mxu3 %v1619_v9 }
 0x346   : > { %v1505_v13 = vsel %vm681_vm8, %v1460_v12, -1e+30  ;;  %v1479_v14 = vpop.f32.mrf.mxu3  ;;  %v1638_v15 = vsel %vm1579_vm9, %v1424_v10, 0 }
 0x347   : > { %v1506_v16 = vsel %vm681_vm8, %v1479_v14, -1e+30  ;;  %1647 = vmatpush.bf16.msra.mxu0 %v1638_v15  ;;  %v1511_v17 = vsel %vm1425_vm7, %v1505_v13, -inf }
 0x348   : > { %1512 = vmax.xlane.f32.xlu1 %v1511_v17  ;;  %v1514_v18 = vsel %vm1425_vm7, %v1506_v16, -inf }
 0x349   : > { %1515 = vmax.xlane.f32.xlu0 %v1514_v18 }
 0x34a   : > { %v1500_v19 = vpop.f32.mrf.mxu0 }
 0x34d   : > { %v1462_v21 = vpop.f32.mrf.mxu2 }
 0x34e   : > { %v1481_v22 = vpop.f32.mrf.mxu3 }
 0x351   : > { %1518 = vmax.xlane.f32.xlu0 %v1517_v23 }
 0x3b3   : > { %v1510_v24 = vpop.xlane.xlu2 %1509 }
 0x3b4   : > { %v1520_v25 = vmax.f32 %v1510_v24, -1e+30 }
 0x3b6   : > { %v1536_v26 = vsub.f32 %v1504_v55, %v1520_v25  ;;  %v1524_v53 = vsub.f32 -1e+30, %v1520_v25 }
 0x3b8   : > { %v1540_v27 = vmul.f32 1.442695, %v1536_v26  ;;  %v1528_v55 = vmul.f32 1.442695, %v1524_v53 }
 0x3ba   : > { %2320 = vpow2.f32 %v1540_v27 }
 0x3bb   : > { %v1513_v28 = vpop.xlane.xlu1 %1512 }
 0x3bc   : > { %v1521_v29 = vmax.f32 %v1513_v28, -1e+30  ;;  %v1516_v30 = vpop.xlane.xlu0 %1515 }
 0x3bd   : > { %v1522_v31 = vmax.f32 %v1516_v30, -1e+30 }
 0x3be   : > { %v1537_v32 = vsub.f32 %v1505_v13, %v1521_v29  ;;  %v1525_v54 = vsub.f32 -1e+30, %v1521_v29 }
 0x3bf   : > { %v1538_v33 = vsub.f32 %v1506_v16, %v1522_v31  ;;  %v1526_v56 = vsub.f32 -1e+30, %v1522_v31 }
 0x3c0   : > { %v1542_v34 = vmul.f32 1.442695, %v1537_v32  ;;  %v2321_v35 = vpop.eup %2320  ;;  %v1530_v58 = vmul.f32 1.442695, %v1525_v54 }
 0x3c1   : > { %v1544_v36 = vmul.f32 1.442695, %v1538_v33  ;;  %v1552_v37 = vsel %vm1425_vm7, %v2321_v35, 0.0  ;;  %v1572_v38 = vpack.c.bf16 %v2321_v35, %v2321_v35  ;;  %v1532_v59 = vmul.f32 1.442695, %v1526_v56 }
 0x3c2   : > { %2322 = vpow2.f32 %v1542_v34  ;;  %1553 = vadd.xlane.f32.xlu1 %v1552_v37 }
 0x3c3   : > { %2170 = vmatmul.msk.bf16.vlgmr.msrb.gmra.mxu1 %vm1425_vm7, %v1572_v38  ;;  %2324 = vpow2.f32 %v1544_v36 }
 0x3c4   : > { %v1519_v39 = vpop.xlane.xlu0 %1518 }
 0x3c5   : > { %v1523_v40 = vmax.f32 %v1519_v39, -1e+30 }
 0x3c7   : > { %v1539_v41 = vsub.f32 %v1507_v20, %v1523_v40  ;;  %v1527_v57 = vsub.f32 -1e+30, %v1523_v40 }
 0x3c8   : > { %v2323_v42 = vpop.eup %2322 }
 0x3c9   : > { %v1546_v43 = vmul.f32 1.442695, %v1539_v41  ;;  %v1573_v44 = vpack.c.bf16 %v2323_v42, %v2323_v42  ;;  %v2325_v45 = vpop.eup %2324  ;;  %v1555_v52 = vsel %vm1425_vm7, %v2323_v42, 0.0  ;;  %v1534_v60 = vmul.f32 1.442695, %v1527_v57 }
 0x3ca   : > { %v1558_v46 = vsel %vm1425_vm7, %v2325_v45, 0.0  ;;  %v1574_v47 = vpack.c.bf16 %v2325_v45, %v2325_v45 }
 0x3cb   : > { %2326 = vpow2.f32 %v1546_v43  ;;  %2171 = vmatmul.msk.bf16.vlgmr.msrb.gmra.mxu2 %vm1425_vm7, %v1573_v44  ;;  %1559 = vadd.xlane.f32.xlu2 %v1558_v46 }
 0x3cc   : > { %2172 = vmatmul.msk.bf16.vlgmr.msrb.gmra.mxu3 %vm1425_vm7, %v1574_v47  ;;  %2328 = vpow2.f32 %v1528_v55 }
 0x3cd   : > { %2330 = vpow2.f32 %v1530_v58 }
 0x3ce   : > { %2332 = vpow2.f32 %v1532_v59 }
 0x3cf   : > { %2334 = vpow2.f32 %v1534_v60 }
 0x3d1   : > { %v2327_v48 = vpop.eup %2326 }
 0x3d2   : > { %v1575_v50 = vpack.c.bf16 %v2327_v48, %v2327_v48  ;;  %v1561_v51 = vsel %vm1425_vm7, %v2327_v48, 0.0  ;;  %v2329_v61 = vpop.eup %2328 }
 0x3d3   : > { %1562 = vadd.xlane.f32.xlu0 %v1561_v51  ;;  %1556 = vadd.xlane.f32.xlu2 %v1555_v52  ;;  %v2331_v3 = vpop.eup %2330  ;;  %v1548_v4 = vmul.f32 0.0, %v2329_v61 }
 0x3d4   : > { %2173 = vmatmul.msk.bf16.vlgmr.msra.gmra.mxu0 %vm1425_vm7, %v1575_v50  ;;  %v2333_v5 = vpop.eup %2332  ;;  %v1549_v10 = vmul.f32 0.0, %v2331_v3 }
 0x3d5   : > { %v2335_v6 = vpop.eup %2334  ;;  %v1550_v9 = vmul.f32 0.0, %v2333_v5 }
 0x3d6   : > { %v1551_v13 = vmul.f32 0.0, %v2335_v6 }
 0x435   : > { %v1554_v2 = vpop.xlane.xlu1 %1553 }
 0x436   : > { %v1564_v7 = vadd.f32 %v1554_v2, %v1548_v4 }
 0x438   : > { %2336 = vrcp.f32 %v1564_v7 }
 0x43e   : > { %v1560_v63 = vpop.xlane.xlu2 %1559  ;;  %v2337_v19 = vpop.eup %2336 }
 0x43f   : > { %v1566_v14 = vadd.f32 %v1560_v63, %v1550_v9 }
 0x440   : > { %v1592_v1 = vpop.f32.mrf.mxu1 }
 0x441   : > { %v1653_v18 = vadd.f32 %v1592_v1, %v1548_v4 }
 0x443   : > { %v1661_v21 = vmul.f32 %v2337_v19, %v1653_v18 }
 0x445   : > { %v1668_v31 = vrot.slane %v1661_v21, 4 }
 0x446   : > { %v1563_v11 = vpop.xlane.xlu0 %1562  ;;  %v1557_v12 = vpop.xlane.xlu2 %1556 }
 0x447   : > { %v1565_v15 = vadd.f32 %v1557_v12, %v1549_v10  ;;  %v1567_v17 = vadd.f32 %v1563_v11, %v1551_v13 }
 0x448   : > { %v1594_v16 = vpop.f32.mrf.mxu1 }
 0x449   : > { %2338 = vrcp.f32 %v1565_v15 }
 0x44a   : > { %2340 = vrcp.f32 %v1566_v14 }
 0x44b   : > { %2342 = vrcp.f32 %v1567_v17 }
 0x44e   : > { %v1611_v20 = vpop.f32.mrf.mxu2 }
 0x44f   : > { %v1654_v22 = vadd.f32 %v1611_v20, %v1549_v10  ;;  %v2339_v23 = vpop.eup %2338  ;;  %v1630_v24 = vpop.f32.mrf.mxu3 }
 0x450   : > { %v1655_v26 = vadd.f32 %v1630_v24, %v1550_v9  ;;  %v2341_v28 = vpop.eup %2340 }
 0x451   : > { %v1662_v25 = vmul.f32 %v2339_v23, %v1654_v22  ;;  %v1649_v27 = vpop.f32.mrf.mxu0  ;;  %v2343_v30 = vpop.eup %2342 }
 0x452   : > { %v1656_v29 = vadd.f32 %v1649_v27, %v1551_v13  ;;  %v1663_v33 = vmul.f32 %v2341_v28, %v1655_v26 }
 0x453   : > { %v1680_v32 = vrot.slane %v1662_v25, 4 }
 0x454   : > { %v1664_v34 = vmul.f32 %v2343_v30, %v1656_v29  ;;  %v1665_v35 = vrot.slane %v1663_v33, 4  ;;  %v1669_v36 = vsel %vm585_vm6, %v1663_v33, %v1668_v31 }
 0x455   : > { %v1677_v37 = vperm.slane %v1669_v36, %v2603_v49 }
 0x456   : > { %v1678_v38 = vrot.slane %v1664_v34, 4  ;;  %v1681_v39 = vsel %vm585_vm6, %v1664_v34, %v1680_v32  ;;  %v1613_v40 = vpop.f32.mrf.mxu2  ;;  %v1667_v41 = vsel %vm585_vm6, %v1665_v35, %v1661_v21 }
 0x457   : > { %v1689_v42 = vperm.slane %v1681_v39, %v2603_v49  ;;  %v1673_v43 = vperm.slane %v1667_v41, %v2603_v49  ;;  %v1704_v44 = vrot.slane %v1677_v37, 4  ;;  %v1632_v46 = vpop.f32.mrf.mxu3 }
 0x458   : > { %v1679_v45 = vsel %vm585_vm6, %v1678_v38, %v1662_v25 }
 0x459   : > { %v1685_v47 = vperm.slane %v1679_v45, %v2603_v49  ;;  %v1702_v48 = vrot.slane %v1689_v42, 4  ;;  %v1651_v50 = vpop.f32.mrf.mxu0  ;;  %v1692_v51 = vrot.slane %v1673_v43, 4  ;;  %v1705_v52 = vsel %vm585_vm6, %v1689_v42, %v1704_v44  ;;  %v2311_v45 = vld [vmem:[%s2877_s6] ss:$0 sm:$0xff] }
 0x45a   : > { %v1713_v55 = vperm.slane %v1705_v52, %v2607_v62 }
 0x45b   : > { %v1690_v53 = vrot.slane %v1685_v47, 4  ;;  %v1703_v54 = vsel %vm585_vm6, %v1702_v48, %v1677_v37  ;;  %v1693_v56 = vsel %vm585_vm6, %v1685_v47, %v1692_v51  ;;  %v2231_v37 = vld [vmem:[%s2876_s5 + $0x8] sm:$0xff] }
 0x45c   : > { %v1709_v57 = vperm.slane %v1703_v54, %v2607_v62  ;;  %v1701_v59 = vperm.slane %v1693_v56, %v2607_v62  ;;  %v1720_v60 = vrot.slane %v1713_v55, 4  ;;  %1824 = vmatpush.bf16.msra.mxu1 %v2231_v37 }
 0x45d   : > { %v1691_v58 = vsel %vm585_vm6, %v1690_v53, %v1673_v43 }
 0x45e   : > { %v1697_v61 = vperm.slane %v1691_v58, %v2607_v62  ;;  %v1718_v63 = vrot.slane %v1709_v57, 4  ;;  %v1716_v1 = vrot.slane %v1701_v59, 4  ;;  %v1721_v2 = vsel %vm585_vm6, 0.0, %v1720_v60  ;;  %v2241_v58 = vld [vmem:[%s2882_s11 + $0x38] sm:$0xff] }
 0x45f   : > { %v1733_v3 = vsel %vm585_vm6, %v1720_v60, %v1709_v57  ;;  %v1738_v4 = vrot.slane %v1721_v2, 4  ;;  %v2233_v57 = vld [vmem:[%s2880_s9 + $0x8] sm:$0xff]  ;;  %1986 = vmatpush.bf16.msra.mxu3 %v2241_v58 }
 0x460   : > { %v1714_v5 = vrot.slane %v1697_v61, 4  ;;  %v1719_v6 = vsel %vm585_vm6, 0.0, %v1718_v63  ;;  %v1737_v7 = vperm.slane %v1733_v3, %v2603_v49  ;;  %v1717_v9 = vsel %vm585_vm6, 0.0, %v1716_v1  ;;  %1901 = vmatpush.bf16.msra.mxu2 %v2233_v57 }
 0x461   : > { %v1722_v10 = vsel %vm585_vm6, %v1716_v1, %v1697_v61  ;;  %v1727_v13 = vrot.slane %v1717_v9, 4  ;;  %v1739_v14 = vsel %vm585_vm6, %v1738_v4, %v1719_v6  ;;  %v2240_v61 = vld [vmem:[%s2882_s11 + $0x30] sm:$0xff] }
 0x462   : > { %v1715_v11 = vsel %vm585_vm6, 0.0, %v1714_v5  ;;  %v1726_v12 = vperm.slane %v1722_v10, %v2603_v49  ;;  %v1743_v15 = vperm.slane %v1739_v14, %v2603_v49  ;;  %v1758_v16 = vrot.slane %v1737_v7, 4  ;;  %v2313_v10 = vld [vmem:[%s2879_s8] ss:$0 sm:$0xff]  ;;  %v2239_v14 = vld [vmem:[%s2882_s11 + $0x28] sm:$0xff] }
 0x463   : > { %v1728_v17 = vsel %vm585_vm6, %v1727_v13, %v1715_v11  ;;  %1987 = vmatpush.bf16.msra.mxu3 %v2240_v61 }
 0x464   : > { %v1746_v18 = vrot.slane %v1726_v12, 4  ;;  %v1732_v19 = vperm.slane %v1728_v17, %v2603_v49  ;;  %v1759_v20 = vsel %vm585_vm6, %v1743_v15, %v1758_v16  ;;  %v1756_v21 = vrot.slane %v1743_v15, 4  ;;  %v2238_v15 = vld [vmem:[%s2882_s11 + $0x20] sm:$0xff]  ;;  %v2237_v16 = vld [vmem:[%s2882_s11 + $0x18] sm:$0xff]  ;;  %v2236_v17 = vld [vmem:[%s2882_s11 + $0x10] sm:$0xff] }
 0x465   : > { %v1767_v22 = vperm.slane %v1759_v20, %v2607_v62  ;;  %v2314_v20 = vld [vmem:[%s2881_s10] ss:$0 sm:$0xff] }
 0x466   : > { %v1747_v23 = vsel %vm585_vm6, %v1732_v19, %v1746_v18  ;;  %v1744_v24 = vrot.slane %v1732_v19, 4  ;;  %v1757_v25 = vsel %vm585_vm6, %v1756_v21, %v1737_v7  ;;  %v2235_v18 = vld [vmem:[%s2882_s11 + $0x8] sm:$0xff]  ;;  %v2234_v19 = vld [vmem:[%s2882_s11] sm:$0xff] }
 0x467   : > { %v1755_v26 = vperm.slane %v1747_v23, %v2607_v62  ;;  %v1772_v27 = vrot.slane %v1767_v22, 4  ;;  %v1763_v28 = vperm.slane %v1757_v25, %v2607_v62  ;;  %1988 = vmatpush.bf16.msra.mxu3 %v2239_v14 }
 0x468   : > { %v1745_v29 = vsel %vm585_vm6, %v1744_v24, %v1726_v12 }
 0x469   : > { %v1773_v30 = vsel %vm585_vm6, %v1772_v27, %v1755_v26  ;;  %v1774_v49 = vrot.slane %v1755_v26, 4  ;;  %v1751_v31 = vperm.slane %v1745_v29, %v2607_v62  ;;  %v1768_v32 = vrot.slane %v1763_v28, 4  ;;  %v2230_v62 = vld [vmem:[%s2876_s5] sm:$0xff] }
 0x46a   : > { %1781 = vrot.lane.b32.xlu0 %v1773_v30, %s2436_s19  ;;  %1825 = vmatpush.bf16.msra.mxu1 %v2230_v62  ;;  %s445_s19 = scalar_lea.vmem [#allocation5], %s2144_s2  ;;  %s2368_s2 = scalar_lea.hbm %s2884_s13, 16 }
 0x46b   : > { %v1775_v33 = vsel %vm585_vm6, %v1767_v22, %v1774_v49  ;;  %v1770_v34 = vrot.slane %v1751_v31, 4  ;;  %v1769_v35 = vsel %vm585_vm6, %v1768_v32, %v1751_v31  ;;  %1989 = vmatpush.bf16.msra.mxu3 %v2238_v15 }
 0x46c   : > { %1785 = vrot.lane.b32.xlu2 %v1775_v33, %s2437_s22  ;;  %v2315_v33 = vld [vmem:[%s2883_s12] ss:$0 sm:$0xff]  ;;  %s2015_s22 = sshll.u32 %s445_s19, 4  ;;  %s2016_s22 = int_to_ptr.vmem [resolvable:$true] %s2015_s22 }
 0x46d   : > { %v1771_v36 = vsel %vm585_vm6, %v1763_v28, %v1770_v34 }
 0x46e   : > { %1777 = vrot.lane.b32.xlu1 %v1771_v36, %s2438_s23  ;;  %s2225_s23 = sshll.u32 %s2418_s28, 3  ;;  %s2002_s28 = scalar_lea.sflag [#allocation6], %s443_s1 }
 0x46f   : > { %1990 = vmatpush.bf16.msra.mxu3 %v2237_v16  ;;  %s2013_s17 = scalar_lea.hbm %s2884_s13, %s2225_s23 }
 0x470   : > { %s2017_s3 = sshll.u32 %s2013_s17, 4  ;;  %s2018_s3 = int_to_ptr.hbm [resolvable:$true] %s2017_s3 }
 0x471   : > { %s2362_s4 = sshra.s32 %s2018_s3, 4  ;;  %s2363_s4 = int_to_ptr.hbm [resolvable:$true] %s2362_s4 }
 0x472   : > { %s2364_s24 = scalar_lea.hbm %s2363_s4, 8  ;;  %p2369_p1 = scmp.lt.s32.totalorder %s2363_s4, %s2884_s13 }
 0x473   : > { %1991 = vmatpush.bf16.msra.mxu3 %v2236_v17  ;;  %p2365_p12 = scmp.ne.s32.totalorder %s2363_s4, %s2364_s24  ;;  %p2370_p2 = scmp.lt.s32.totalorder %s2368_s2, %s2364_s24 }
 0x475   : > { %p2366_p13 = pnand %p2365_p12, %p2549_p4  ;;  %p2371_p3 = por %p2370_p2, %p2369_p1 }
 0x477   : > { %1992 = vmatpush.bf16.msra.mxu3 %v2235_v18  ;;  %p2367_p0 = pneg %p2366_p13 }
 0x479   : > { %p2372_p5 = pnand %p2371_p3, %p2367_p0 }
 0x47b   : > { %1993 = vmatpush.bf16.msra.mxu3 %v2234_v19 }
 0x4c6   : > { %v1786_v41 = vpop.permute.xlu2 %1785 }
 0x4dc   : > { %v1782_v39 = vpop.permute.xlu0 %1781 }
 0x4e0   : > { %v1778_v38 = vpop.permute.xlu1 %1777 }
 0x4e1   : > { %v1788_v40 = vsel %vm1425_vm7, %v1769_v35, %v1778_v38 }
 0x4e2   : > { %v1790_v42 = vsel %vm1789_vm10, %v1788_v40, %v1782_v39 }
 0x4e3   : > { %v1792_v43 = vsel %vm1791_vm11, %v1790_v42, %v1786_v41 }
 0x4e4   : > { %v1793_v44 = vpack.c.bf16 %v1792_v43, %v1792_v43 }
 0x4e6   : > { %2182 = vmatmul.msk.bf16.vlgmr.msra.gmra.mxu1 %vm458_vm0, %v1793_v44 }
 0x563   : > { %v1827_v46 = vpop.f32.mrf.mxu1 }
 0x564   : > { %v1828_v47 = vadd.f32 %v2311_v45, %v1827_v46 }
 0x566   : > { %v2781_v48 = vadd.f32 %v1828_v47, %v2569_v0  ;;  %v2232_v0 = vld [vmem:[%s2880_s9] sm:$0xff] }
 0x567   : > { %1902 = vmatpush.bf16.msra.mxu2 %v2232_v0 }
 0x568   : > { %v1834_v50 = vsel %vm458_vm0, %v2781_v48, 0.0 }
 0x569   : > { %1835 = vadd.xlane.f32.xlu0 %v1834_v50 }
 0x56b   : > { %v1829_v51 = vpop.f32.mrf.mxu1 }
 0x5dc   : > { %v1836_v52 = vpop.xlane.xlu0 %1835 }
 0x5dd   : > { %v1844_v53 = vmul.f32 %v1836_v52, %v2573_v8 }
 0x5df   : > { %v1845_v54 = vsub.f32 %v2781_v48, %v1844_v53 }
 0x5e1   : > { %v1846_v55 = vmul.f32 %v1845_v54, %v1845_v54 }
 0x5e3   : > { %v1847_v56 = vsel %vm458_vm0, %v1846_v55, 0.0 }
 0x5e4   : > { %1848 = vadd.xlane.f32.xlu1 %v1847_v56 }
 0x657   : > { %v1849_v59 = vpop.xlane.xlu1 %1848 }
 0x658   : > { %v1850_v60 = vmul.f32 %v1849_v59, %v2573_v8  ;;  %v2312_v8 = vld [vmem:[%s2878_s7] ss:$0 sm:$0xff] }
 0x65a   : > { %v1851_v63 = vadd.f32 1e-05, %v1850_v60 }
 0x65c   : > { %2344 = vrsqrt.f32 %v1851_v63  ;;  %vm1858_vm13 = vweird.f32 %v1851_v63 }
 0x662   : > { %v2345_v1 = vpop.eup %2344 }
 0x663   : > { %v1853_v2 = vmul.f32 %v2345_v1, %v1851_v63  ;;  %vm1859_vm12 = vweird.f32 %v2345_v1 }
 0x664   : > { %vm1860_vm14 = vmor %vm1858_vm13, %vm1859_vm12 }
 0x665   : > { %v1854_v3 = vmul.f32 %v2345_v1, %v1853_v2 }
 0x667   : > { %v1855_v4 = vmul.f32 0.5, %v1854_v3 }
 0x669   : > { %v1856_v5 = vsub.f32 1.5, %v1855_v4 }
 0x66b   : > { %v1857_v6 = vmul.f32 %v2345_v1, %v1856_v5 }
 0x66d   : > { %v1861_v7 = vsel %vm1860_vm14, %v2345_v1, %v1857_v6 }
 0x66e   : > { %v1862_v9 = vmul.f32 %v1861_v7, %v1845_v54 }
 0x670   : > { %v1866_v11 = vmul.f32 %v2312_v8, %v1862_v9 }
 0x672   : > { %v1870_v12 = vadd.f32 %v2313_v10, %v1866_v11 }
 0x674   : > { %v1871_v13 = vpack.c.bf16 %v1870_v12, %v1870_v12 }
 0x676   : > { %2191 = vmatmul.msk.bf16.vlgmr.msra.gmra.mxu2 %vm458_vm0, %v1871_v13 }
 0x6f9   : > { %v1904_v21 = vpop.f32.mrf.mxu2 }
 0x6fa   : > { %v1905_v22 = vadd.f32 %v2314_v20, %v1904_v21 }
 0x6fc   : > { %v1909_v23 = vmul.f32 0.044715, %v1905_v22  ;;  %v1908_v30 = vmul.f32 0.5, %v1905_v22 }
 0x6fe   : > { %v1910_v24 = vmul.f32 %v1909_v23, %v1905_v22 }
 0x700   : > { %v1911_v25 = vmul.f32 %v1910_v24, %v1905_v22 }
 0x701   : > { %v1906_v26 = vpop.f32.mrf.mxu2 }
 0x702   : > { %v1912_v27 = vadd.f32 %v1911_v25, %v1905_v22 }
 0x704   : > { %v1913_v28 = vmul.f32 0.7978846, %v1912_v27 }
 0x706   : > { %2346 = vtanh.f32 %v1913_v28 }
 0x70c   : > { %v2347_v29 = vpop.eup %2346 }
 0x70d   : > { %v1915_v49 = vadd.f32 1.0, %v2347_v29 }
 0x70f   : > { %v1916_v31 = vmul.f32 %v1915_v49, %v1908_v30 }
 0x711   : > { %v1917_v32 = vpack.c.bf16 %v1916_v31, %v1916_v31 }
 0x713   : > { %1994 = vmatmul.bf16.vlgmr.msra.gmra.mxu3 %v1917_v32 }
 0x796   : > { %v1995_v34 = vpop.f32.mrf.mxu3 }
 0x797   : > { %v1996_v35 = vadd.f32 %v2315_v33, %v1995_v34 }
 0x799   : > { %v1999_v36 = vadd.f32 %v1996_v35, %v2781_v48 }
 0x79b   : > { %2000 = vst.msk [vmem:[%s445_s19] sm:$0xff] %vm458_vm0, %v1999_v36 }
 0x79c   : > { %2375 = shalt.err (!%p2372_p5)
}
 0x79d   : > { %2242 = dma.vmem_to_hbm [thread:$0]  (%p2549_p4), %s2016_s22, 128, %s2018_s3, %s2002_s28  }
 0x79e   : > { %v1997_v37 = vpop.f32.mrf.mxu3 }
 0x79f PF: > { %p2248_p6 = scmp.ge.s32.totalorder %s2426_s30, 2  ;;  %s2029_s1 = sand.u32 1, %s2406_s25  }
 0x7a0   : > { %s2030_s17 = scalar_lea.sflag [#allocation6], %s2029_s1 }
 0x7a1   : > { %p2245_p7 = pnand %p2248_p6, %p2556_p8 }
 0x7a3   : > { %p2246_p9 = pneg %p2245_p7 }
 0x7a5   : > { %2401 = dma.done.wait (%p2246_p9), %s2030_s17, 128  }
 0x7a6   : > { %2403 = vsyncadd (%p2246_p9), %s2030_s17, 4294967168  ;;  %s26_s30 = sadd.s32 1, %s2426_s30   ;;  %s2897_s25 = smov %s2410_s26 }
 0x7a7   : > { %p23_p10 = scmp.ge.s32.totalorder %s26_s30, 4   ;;  %s2898_s26 = smov %s2414_s27 }
 0x7a8   : > { %s2899_s27 = smov %s2562_s21  ;;  %s2900_s28 = smov %s2422_s29 }
 0x7a9   : > { %s2901_s29 = smov %s2903_s16  ;;  %25 = sbr.rel (!%p23_p10) target bundleno = 10 (0xa), region = 135 }
 0x7ae   :  { %2036 = vsyncpa [#allocation6], 1 }
 0x7af   :  { %2038 = vsyncpa [#allocation6 + $0x1], 1 }

// kernel: tpu_custom_call.1
= control target key start
LH: loop header
LB: loop body
LE: loop exit
PB: predicated region body
PF: predicated region fallthrough
CT: control target
= control target key end

     0   :  { %s2871_s0 = inlined_call_operand.vmem [shape: f32[2,8,32], index: 0, kind: input, shape index: {}]   ;;  %s2872_s1 = inlined_call_operand.vmem [shape: f32[1,32], index: 1, kind: input, shape index: {}]   ;;  %s2873_s2 = inlined_call_operand.vmem [shape: f32[1,32], index: 2, kind: input, shape index: {}]   ;;  %s2874_s3 = inlined_call_operand.vmem [shape: bf16[32,96], index: 3, kind: input, shape index: {}]   ;;  %s2875_s4 = inlined_call_operand.vmem [shape: f32[1,96], index: 4, kind: input, shape index: {}]   ;;  %s2876_s5 = inlined_call_operand.vmem [shape: bf16[32,32], index: 5, kind: input, shape index: {}]   ;;  %s2877_s6 = inlined_call_operand.vmem [shape: f32[1,32], index: 6, kind: input, shape index: {}]   ;;  %s2878_s7 = inlined_call_operand.vmem [shape: f32[1,32], index: 7, kind: input, shape index: {}]   ;;  %s2879_s8 = inlined_call_operand.vmem [shape: f32[1,32], index: 8, kind: input, shape index: {}]   ;;  %s2880_s9 = inlined_call_operand.vmem [shape: bf16[32,128], index: 9, kind: input, shape index: {}]   ;;  %s2881_s10 = inlined_call_operand.vmem [shape: f32[1,128], index: 10, kind: input, shape index: {}]   ;;  %s2882_s11 = inlined_call_operand.vmem [shape: bf16[128,32], index: 11, kind: input, shape index: {}]   ;;  %s2883_s12 = inlined_call_operand.vmem [shape: f32[1,32], index: 12, kind: input, shape index: {}]   ;;  %s2884_s13 = inlined_call_operand.hbm [shape: f32[2,8,32], index: 13, kind: output, shape index: {}]  }
   0x1   :  { %2885 = sst [smem:[#allocation8_spill]] %s2871_s0 }
   0x2   :  { %2886 = sst [smem:[#allocation9_spill]] %s2872_s1 }
   0x3   :  { %2887 = sst [smem:[#allocation10_spill]] %s2873_s2 }
   0x4   :  { %2888 = sst [smem:[#allocation11_spill]] %s2874_s3 }
   0x5   :  { %2889 = sst [smem:[#allocation12_spill]] %s2875_s4 }
   0x6   :  { %18 = vsyncpa [#allocation6], 0 }
   0x7   :  { %20 = vsyncpa [#allocation6 + $0x1], 0  ;;  %s2509_s25 = smov 0   ;;  %s2511_s26 = smov 0  }
   0x8   :  { %s2513_s27 = smov 0   ;;  %s2515_s28 = smov 0  }
   0x9   :  { %s2517_s29 = smov 0   ;;  %s2519_s30 = smov 0  }
   0xa LB: > { %s2139_s14 = sadd.s32 4294967295, %s2426_s30   ;;  %s2140_s15 = sadd.s32 4294967294, %s2426_s30   ;;  %s2426_s30 = sphi %s2519_s30, %s26_s30   ;;  %s2422_s29 = sphi %s2517_s29, %s2901_s29   ;;  %s2418_s28 = sphi %s2515_s28, %s2900_s28   ;;  %s2414_s27 = sphi %s2513_s27, %s2899_s27   ;;  %s2410_s26 = sphi %s2511_s26, %s2898_s26   ;;  %s2406_s25 = sphi %s2509_s25, %s2897_s25  }
   0xb   : > { %s38_s16 = sadd.s32 1, %s2422_s29  ;;  %s325_s17 = sadd.s32 1, %s2414_s27 }
   0xc   : > { %p40_p0 = scmp.ge.s32.totalorder %s38_s16, 2  ;;  %p335_p1 = scmp.ne.s32.totalorder %s2414_s27, %s2410_s26 }
   0xd   : > { %p336_p2 = scmp.eq.s32.totalorder %s2139_s14, 1  ;;  %p341_p3 = scmp.ne.s32.totalorder %s2410_s26, %s2406_s25 }
   0xe   : > { %s2903_s16 = smov (%p40_p0, %s38_s16), 0  ;;  %p342_p5 = scmp.eq.s32.totalorder %s2140_s15, 1 }
   0xf   : > { %p2549_p4 = por %p336_p2, %p335_p1  ;;  %s320_s19 = ssub.s32 %s2422_s29, %s2903_s16 }
  0x10   : > { %p2143_p6 = scmp.ge.s32.totalorder %s2426_s30, 1  ;;  %p323_p7 = scmp.eq.s32.totalorder %s320_s19, 0 }
  0x11   : > { %p2556_p8 = por %p342_p5, %p341_p3  ;;  %p403_p9 = scmp.lt.s32.totalorder %s2426_s30, 3 }
  0x12   : > { %s2562_s21 = scalar_select %p323_p7, %s2414_s27, %s325_s17  }
  0x13   : > { %p404_p10 = pnand %p2143_p6, %p403_p9 }
  0x14   : > { %p446_p11 = scmp.lt.s32.totalorder (!%p404_p10), %s2418_s28, 1  ;;  %s2892_s0 = sld [smem:[#allocation8_spill]] (!%p404_p10) }
  0x15   : > { %407 = sbr.rel (%p404_p10) target bundleno = 1951 (0x79f), region = 72  ;;  %s2893_s3 = sld [smem:[#allocation11_spill]] (!%p404_p10) }
  0x16   : > { %s2894_s1 = sld [smem:[#allocation9_spill]] (!%p404_p10)  ;;  %s2430_s24 = smov (!%p404_p10), 120  }
  0x17   : > { %s2895_s2 = sld [smem:[#allocation10_spill]] (!%p404_p10)  ;;  %s2431_s14 = smov (!%p404_p10), 112  }
  0x18   : > { %s2896_s4 = sld [smem:[#allocation12_spill]] (!%p404_p10)  ;;  %s2433_s17 = smov (!%p404_p10), 64  }
  0x19   : > { %s2436_s19 = smov (!%p404_p10), 16  }
  0x1a   : > { %s447_s22 = scalar_select %p446_p11, %s2418_s28, 1  ;;  %vm458_vm0 = vcmask 261120   ;;  %v2428_v2 = vmov 32.0   ;;  %vm535_vm5 = vcmask 257024   ;;  %v2434_v44 = vmov 1983009808  }
  0x1b   : > { %2316 = vrcp.f32 %v2428_v2  ;;  %v2229_v14 = vld [vmem:[%s2893_s3 + $0x8] sm:$0xff]  ;;  %v2228_v15 = vld [vmem:[%s2893_s3] sm:$0xff]  ;;  %v576_v45 = vunpack.c.l.s4 %v2434_v44  ;;  %v2435_v52 = vmov 1934713408   ;;  %vm585_vm6 = vcmask 1047556  }
  0x1c   : > { %s2145_s23 = sshll.u32 %s447_s22, 3  ;;  %526 = vmatpush.bf16.msra.mxu0 %v2229_v14  ;;  %v2308_v25 = vld [vmem:[%s2894_s1] ss:$0 sm:$0xff]  ;;  %v590_v53 = vunpack.c.l.s4 %v2435_v52  ;;  %vm1425_vm7 = vcmask 64512   ;;  %vm1579_vm9 = vcmask 1043456   ;;  %s2437_s22 = smov 24  }
  0x1d   : > { %s449_s15 = scalar_lea.vmem %s2892_s0, %s2145_s23  ;;  %v2309_v28 = vld [vmem:[%s2895_s2] ss:$0 sm:$0xff]  ;;  %s2429_s23 = smov 96   ;;  %v2603_v49 = vunpack.c.0.s8 %v576_v45  ;;  %vm1789_vm10 = vcmask 130048   ;;  %vm1791_vm11 = vcmask 195584  }
  0x1e   : > { %v2569_v0 = vld [vmem:[%s449_s15] sm:$0xff]  ;;  %s2432_s15 = smov 104   ;;  %v2607_v62 = vunpack.c.0.s8 %v590_v53  ;;  %s443_s1 = sand.u32 1, %s2410_s26  }
  0x1f   : > { %v459_v1 = vsel %vm458_vm0, %v2569_v0, 0.0  ;;  %v2310_v32 = vld [vmem:[%s2896_s4] ss:$0 sm:$0xff]  ;;  %s2144_s2 = sshll.u32 %s443_s1, 3 }
  0x20   : > { %460 = vadd.xlane.f32.xlu0 %v459_v1  ;;  %527 = vmatpush.bf16.msra.mxu0 %v2228_v15 }
  0x21   : > { %v2317_v3 = vpop.eup %2316 }
  0x22   : > { %v463_v4 = vmul.f32 32.0, %v2317_v3  ;;  %vm467_vm1 = vweird.f32 %v2317_v3 }
  0x24   : > { %v464_v5 = vsub.f32 1.0, %v463_v4 }
  0x26   : > { %v465_v6 = vmul.f32 %v2317_v3, %v464_v5 }
  0x28   : > { %v466_v7 = vadd.f32 %v2317_v3, %v465_v6 }
  0x2a   : > { %v2573_v8 = vsel %vm467_vm1, %v2317_v3, %v466_v7 }
  0x93   : > { %v461_v9 = vpop.xlane.xlu0 %460 }
  0x94   : > { %v469_v10 = vmul.f32 %v2573_v8, %v461_v9 }
  0x96   : > { %v470_v11 = vsub.f32 %v2569_v0, %v469_v10 }
  0x98   : > { %v471_v12 = vmul.f32 %v470_v11, %v470_v11 }
  0x9a   : > { %v472_v13 = vsel %vm458_vm0, %v471_v12, 0.0 }
  0x9b   : > { %473 = vadd.xlane.f32.xlu0 %v472_v13 }
 0x10e   : > { %v474_v16 = vpop.xlane.xlu0 %473 }
 0x10f   : > { %v475_v17 = vmul.f32 %v474_v16, %v2573_v8 }
 0x111   : > { %v476_v18 = vadd.f32 1e-05, %v475_v17 }
 0x113   : > { %2318 = vrsqrt.f32 %v476_v18  ;;  %vm483_vm3 = vweird.f32 %v476_v18 }
 0x119   : > { %v2319_v19 = vpop.eup %2318 }
 0x11a   : > { %v478_v20 = vmul.f32 %v2319_v19, %v476_v18  ;;  %vm484_vm2 = vweird.f32 %v2319_v19 }
 0x11b   : > { %vm485_vm4 = vmor %vm483_vm3, %vm484_vm2 }
 0x11c   : > { %v479_v21 = vmul.f32 %v2319_v19, %v478_v20 }
 0x11e   : > { %v480_v22 = vmul.f32 0.5, %v479_v21 }
 0x120   : > { %v481_v23 = vsub.f32 1.5, %v480_v22 }
 0x122   : > { %v482_v24 = vmul.f32 %v2319_v19, %v481_v23 }
 0x124   : > { %v486_v26 = vsel %vm485_vm4, %v2319_v19, %v482_v24 }
 0x125   : > { %v487_v27 = vmul.f32 %v486_v26, %v470_v11 }
 0x127   : > { %v491_v29 = vmul.f32 %v2308_v25, %v487_v27 }
 0x129   : > { %v495_v30 = vadd.f32 %v2309_v28, %v491_v29 }
 0x12b   : > { %v496_v31 = vpack.c.bf16 %v495_v30, %v495_v30 }
 0x12d   : > { %2154 = vmatmul.msk.bf16.vlgmr.msra.gmra.mxu0 %vm458_vm0, %v496_v31 }
 0x1aa   : > { %v529_v33 = vpop.f32.mrf.mxu0 }
 0x1ab   : > { %v530_v34 = vadd.f32 %v2310_v32, %v529_v33 }
 0x1ad   : > { %v533_v35 = vmul.f32 0.35355338, %v530_v34  ;;  %v537_v36 = vpack.c.bf16 %v530_v34, %v530_v34 }
 0x1af   : > { %v534_v37 = vpack.c.bf16 %v533_v35, %v533_v35  ;;  %539 = vrot.lane.b32.xlu1 %v537_v36, %s2429_s23  ;;  %s2438_s23 = smov 8  }
 0x1b1   : > { %536 = vst.msk [vmem:[#allocation2] sm:$0xf] %vm535_vm5, %v534_v37 }
 0x1b2   : > { %v531_v38 = vpop.f32.mrf.mxu0 }
 0x1b8   : > { %v554_v39 = vld [vmem:[#allocation2] sm:$0xf] }
 0x1b9   : > { %556 = vrot.lane.b32.xlu0 %v554_v39, %s2430_s24  ;;  %v565_v61 = vshrl.u32 %v554_v39, 16 }
 0x221   : > { %v540_v40 = vpop.permute.xlu1 %539 }
 0x222   : > { %542 = vst.msk [vmem:[#allocation3] sm:$0xf] %vm535_vm5, %v540_v40 }
 0x229   : > { %v1179_v41 = vld [vmem:[#allocation3] sm:$0xf] }
 0x22a   : > { %1183 = vrot.lane.b32.xlu2 %v1179_v41, %s2431_s14  ;;  %1181 = vrot.lane.b32.xlu1 %v1179_v41, %s2430_s24  ;;  %v1190_v59 = vshrl.u32 %v1179_v41, 16 }
 0x22b   : > { %v557_v50 = vpop.permute.xlu0 %556 }
 0x22c   : > { %v566_v55 = vshrl.u32 %v557_v50, 16  ;;  %v564_v63 = vpack.i.b16 %v557_v50, %v554_v39 }
 0x22e   : > { %v567_v4 = vpack.i.b16 %v566_v55, %v565_v61  ;;  %v578_v12 = vperm.slane %v564_v63, %v2603_v49 }
 0x230   : > { %v605_v16 = vperm.slane %v567_v4, %v2603_v49  ;;  %v587_v28 = vrot.slane %v578_v12, 4 }
 0x232   : > { %1185 = vrot.lane.b32.xlu2 %v1179_v41, %s2432_s15  ;;  %558 = vrot.lane.b32.xlu1 %v554_v39, %s2431_s14  ;;  %v613_v31 = vrot.slane %v605_v16, 4 }
 0x23a   : > { %560 = vrot.lane.b32.xlu2 %v554_v39, %s2432_s15  ;;  %543 = vrot.lane.b32.xlu1 %v537_v36, %s2433_s17 }
 0x284   : > { %v1184_v42 = vpop.permute.xlu2 %1183 }
 0x285   : > { %v1196_v47 = vshrl.u32 %v1184_v42, 16 }
 0x28c   : > { %v1186_v43 = vpop.permute.xlu2 %1185 }
 0x28d   : > { %v1197_v46 = vshrl.u32 %v1186_v43, 16  ;;  %v1195_v48 = vpack.i.b16 %v1186_v43, %v1184_v42 }
 0x28f   : > { %v1198_v51 = vpack.i.b16 %v1197_v46, %v1196_v47  ;;  %v1208_v54 = vperm.slane %v1195_v48, %v2603_v49 }
 0x291   : > { %v1234_v57 = vperm.slane %v1198_v51, %v2603_v49  ;;  %v1209_v1 = vrot.slane %v1208_v54, 4 }
 0x293   : > { %v1235_v5 = vrot.slane %v1234_v57, 4 }
 0x294   : > { %v561_v10 = vpop.permute.xlu2 %560 }
 0x295   : > { %v572_v21 = vshrl.u32 %v561_v10, 16 }
 0x29c   : > { %v1182_v56 = vpop.permute.xlu1 %1181 }
 0x29d   : > { %v1189_v58 = vpack.i.b16 %v1182_v56, %v1179_v41  ;;  %v1191_v60 = vshrl.u32 %v1182_v56, 16 }
 0x29f   : > { %v1192_v2 = vpack.i.b16 %v1191_v60, %v1190_v59  ;;  %v1203_v3 = vperm.slane %v1189_v58, %v2603_v49 }
 0x2a1   : > { %v1210_v6 = vsel %vm585_vm6, %v1209_v1, %v1203_v3  ;;  %v1211_v7 = vrot.slane %v1203_v3, 4  ;;  %v1229_v9 = vperm.slane %v1192_v2, %v2603_v49 }
 0x2a2   : > { %v1216_v11 = vperm.slane %v1210_v6, %v2607_v62 }
 0x2a3   : > { %v1212_v13 = vsel %vm585_vm6, %v1208_v54, %v1211_v7  ;;  %v1236_v14 = vsel %vm585_vm6, %v1235_v5, %v1229_v9  ;;  %v1237_v15 = vrot.slane %v1229_v9, 4 }
 0x2a4   : > { %v1220_v17 = vperm.slane %v1212_v13, %v2607_v62  ;;  %v1221_v18 = vrot.slane %v1216_v11, 4  ;;  %v1242_v19 = vperm.slane %v1236_v14, %v2607_v62  ;;  %v559_v20 = vpop.permute.xlu1 %558 }
 0x2a5   : > { %v1238_v22 = vsel %vm585_vm6, %v1234_v57, %v1237_v15  ;;  %v570_v23 = vpack.i.b16 %v561_v10, %v559_v20  ;;  %v571_v24 = vshrl.u32 %v559_v20, 16 }
 0x2a6   : > { %v1223_v25 = vrot.slane %v1220_v17, 4  ;;  %v1246_v26 = vperm.slane %v1238_v22, %v2607_v62  ;;  %v1247_v27 = vrot.slane %v1242_v19, 4  ;;  %v1222_v32 = vsel %vm585_vm6, 0, %v1221_v18 }
 0x2a7   : > { %v573_v29 = vpack.i.b16 %v572_v21, %v571_v24  ;;  %v583_v30 = vperm.slane %v570_v23, %v2603_v49 }
 0x2a8   : > { %v1224_v33 = vsel %vm585_vm6, 0, %v1223_v25  ;;  %v1249_v34 = vrot.slane %v1246_v26, 4  ;;  %v1248_v39 = vsel %vm585_vm6, 0, %v1247_v27  ;;  %v1251_v42 = vsel %vm585_vm6, %v1223_v25, %v1216_v11 }
 0x2a9   : > { %v1256_v35 = vrot.slane %v1224_v33, 4  ;;  %v584_v36 = vrot.slane %v583_v30, 4  ;;  %v588_v37 = vsel %vm585_vm6, %v583_v30, %v587_v28  ;;  %v610_v38 = vperm.slane %v573_v29, %v2603_v49 }
 0x2aa   : > { %v1250_v40 = vsel %vm585_vm6, 0, %v1249_v34  ;;  %v596_v41 = vperm.slane %v588_v37, %v2607_v62  ;;  %v1270_v55 = vsel %vm585_vm6, %v1249_v34, %v1242_v19  ;;  %v1255_v63 = vperm.slane %v1251_v42, %v2603_v49 }
 0x2ab   : > { %v1275_v43 = vrot.slane %v1250_v40, 4  ;;  %v586_v44 = vsel %vm585_vm6, %v584_v36, %v578_v12  ;;  %v611_v45 = vrot.slane %v610_v38, 4  ;;  %v614_v46 = vsel %vm585_vm6, %v610_v38, %v613_v31 }
 0x2ac   : > { %v592_v47 = vperm.slane %v586_v44, %v2607_v62  ;;  %v599_v48 = vrot.slane %v596_v41, 4  ;;  %v622_v50 = vperm.slane %v614_v46, %v2607_v62  ;;  %v544_v51 = vpop.permute.xlu1 %543  ;;  %v1257_v52 = vsel %vm585_vm6, %v1256_v35, %v1222_v32 }
 0x2ad   : > { %v612_v53 = vsel %vm585_vm6, %v611_v45, %v605_v16  ;;  %546 = vst.msk [vmem:[#allocation4] sm:$0xf] %vm535_vm5, %v544_v51  ;;  %v1261_v54 = vperm.slane %v1257_v52, %v2603_v49  ;;  %v1276_v56 = vsel %vm585_vm6, %v1275_v43, %v1248_v39  ;;  %v1274_v6 = vperm.slane %v1270_v55, %v2603_v49 }
 0x2ae   : > { %v597_v57 = vrot.slane %v592_v47, 4  ;;  %v600_v58 = vsel %vm585_vm6, 0, %v599_v48  ;;  %v618_v59 = vperm.slane %v612_v53, %v2607_v62  ;;  %v625_v60 = vrot.slane %v622_v50, 4 }
 0x2af   : > { %v632_v61 = vrot.slane %v600_v58, 4  ;;  %v1262_v1 = vrot.slane %v1261_v54, 4  ;;  %v1280_v2 = vperm.slane %v1276_v56, %v2603_v49  ;;  %v627_v13 = vsel %vm585_vm6, %v599_v48, %v592_v47 }
 0x2b0   : > { %v598_v3 = vsel %vm585_vm6, 0, %v597_v57  ;;  %v623_v4 = vrot.slane %v618_v59, 4  ;;  %v626_v5 = vsel %vm585_vm6, 0, %v625_v60  ;;  %v646_v22 = vsel %vm585_vm6, %v625_v60, %v618_v59 }
 0x2b1   : > { %v651_v7 = vrot.slane %v626_v5, 4  ;;  %v1263_v9 = vsel %vm585_vm6, %v1262_v1, %v1255_v63  ;;  %v1281_v10 = vrot.slane %v1280_v2, 4  ;;  %v633_v11 = vsel %vm585_vm6, %v632_v61, %v598_v3 }
 0x2b2   : > { %v624_v12 = vsel %vm585_vm6, 0, %v623_v4  ;;  %v1267_v14 = vperm.slane %v1263_v9, %v2607_v62  ;;  %v637_v15 = vperm.slane %v633_v11, %v2603_v49  ;;  %v631_v24 = vperm.slane %v627_v13, %v2603_v49 }
 0x2b3   : > { %v1282_v16 = vsel %vm585_vm6, %v1281_v10, %v1274_v6  ;;  %v652_v17 = vsel %vm585_vm6, %v651_v7, %v624_v12  ;;  %v650_v31 = vperm.slane %v646_v22, %v2603_v49 }
 0x2b4   : > { %v1303_v18 = vld [vmem:[#allocation4] sm:$0xf]  ;;  %v1286_v19 = vperm.slane %v1282_v16, %v2607_v62  ;;  %v1268_v20 = vrot.slane %v1267_v14, 4  ;;  %v638_v21 = vrot.slane %v637_v15, 4  ;;  %v1292_v23 = vshrl.u32 %v1267_v14, 16 }
 0x2b5   : > { %1307 = vrot.lane.b32.xlu1 %v1303_v18, %s2431_s14  ;;  %1305 = vrot.lane.b32.xlu2 %v1303_v18, %s2430_s24  ;;  %v656_v25 = vperm.slane %v652_v17, %v2603_v49  ;;  %v1314_v63 = vshrl.u32 %v1303_v18, 16 }
 0x2b6   : > { %v1291_v26 = vpack.i.b16 %v1286_v19, %v1267_v14  ;;  %v1293_v27 = vshrl.u32 %v1286_v19, 16  ;;  %v1269_v28 = vsel %vm585_vm6, 0, %v1268_v20  ;;  %v1287_v29 = vrot.slane %v1286_v19, 4 }
 0x2b7   : > { %v639_v30 = vsel %vm585_vm6, %v638_v21, %v631_v24  ;;  %v657_v32 = vrot.slane %v656_v25, 4  ;;  %v1298_v38 = vshrl.u32 %v1269_v28, 16 }
 0x2b8   : > { %v1430_v33 = vsel %vm1425_vm7, %v1291_v26, 0  ;;  %v1294_v34 = vpack.i.b16 %v1293_v27, %v1292_v23  ;;  %v1288_v35 = vsel %vm585_vm6, 0, %v1287_v29  ;;  %v643_v36 = vperm.slane %v639_v30, %v2607_v62 }
 0x2b9   : > { %1439 = vmatpush.bf16.xpose.msra.mxu1 %v1430_v33  ;;  %v1297_v37 = vpack.i.b16 %v1288_v35, %v1269_v28  ;;  %v1299_v39 = vshrl.u32 %v1288_v35, 16  ;;  %v658_v40 = vsel %vm585_vm6, %v657_v32, %v650_v31  ;;  %v677_v30 = vlaneseq }
 0x2ba   : > { %v1449_v41 = vsel %vm1425_vm7, %v1294_v34, 0  ;;  %v662_v42 = vperm.slane %v658_v40, %v2607_v62  ;;  %v644_v43 = vrot.slane %v643_v36, 4  ;;  %v668_v51 = vshrl.u32 %v643_v36, 16 }
 0x2bb   : > { %1458 = vmatpush.bf16.xpose.msra.mxu2 %v1449_v41  ;;  %v1468_v44 = vsel %vm1425_vm7, %v1297_v37, 0  ;;  %v1300_v45 = vpack.i.b16 %v1299_v39, %v1298_v38  ;;  %v678_v39 = vshrl.u32 %v677_v30, 7 }
 0x2bc   : > { %1477 = vmatpush.bf16.xpose.msra.mxu3 %v1468_v44  ;;  %v669_v46 = vshrl.u32 %v662_v42, 16  ;;  %v663_v47 = vrot.slane %v662_v42, 4  ;;  %v667_v50 = vpack.i.b16 %v662_v42, %v643_v36  ;;  %v645_v52 = vsel %vm585_vm6, 0, %v644_v43 }
 0x2bd   : > { %v1487_v48 = vsel %vm1425_vm7, %v1300_v45, 0  ;;  %1309 = vrot.lane.b32.xlu2 %v1303_v18, %s2432_s15  ;;  %v674_v57 = vshrl.u32 %v645_v52, 16  ;;  %v680_v42 = vand.u32 127, %v677_v30 }
 0x2be   : > { %1496 = vmatpush.bf16.xpose.msrb.mxu0 %v1487_v48  ;;  %v664_v53 = vsel %vm585_vm6, 0, %v663_v47  ;;  %v670_v55 = vpack.i.b16 %v669_v46, %v668_v51 }
 0x2bf   : > { %v675_v54 = vshrl.u32 %v664_v53, 16  ;;  %v673_v56 = vpack.i.b16 %v664_v53, %v645_v52  ;;  %vm681_vm8 = vcmp.le.s32.totalorder %v680_v42, %v678_v39 }
 0x2c0   : > { %2166 = vmatmul.msk.bf16.vlgmr.msra.gmra.mxu1 %vm1425_vm7, %v667_v50 }
 0x2c1   : > { %v676_v58 = vpack.i.b16 %v675_v54, %v674_v57 }
 0x2c2   : > { %2167 = vmatmul.msk.bf16.vlgmr.msra.gmra.mxu2 %vm1425_vm7, %v670_v55 }
 0x2c3   : > { %2168 = vmatmul.msk.bf16.vlgmr.msra.gmra.mxu3 %vm1425_vm7, %v673_v56 }
 0x2c5   : > { %2169 = vmatmul.msk.bf16.vlgmr.msrb.gmra.mxu0 %vm1425_vm7, %v676_v58 }
 0x30f   : > { %v1306_v59 = vpop.permute.xlu2 %1305 }
 0x310   : > { %v1315_v60 = vshrl.u32 %v1306_v59, 16  ;;  %v1313_v61 = vpack.i.b16 %v1306_v59, %v1303_v18 }
 0x312   : > { %v1316_v1 = vpack.i.b16 %v1315_v60, %v1314_v63  ;;  %v1327_v3 = vperm.slane %v1313_v61, %v2603_v49 }
 0x314   : > { %v1353_v5 = vperm.slane %v1316_v1, %v2603_v49  ;;  %v1335_v10 = vrot.slane %v1327_v3, 4 }
 0x316   : > { %v1361_v13 = vrot.slane %v1353_v5, 4 }
 0x317   : > { %v1310_v2 = vpop.permute.xlu2 %1309 }
 0x318   : > { %v1321_v6 = vshrl.u32 %v1310_v2, 16 }
 0x327   : > { %v1308_v4 = vpop.permute.xlu1 %1307 }
 0x328   : > { %v1319_v7 = vpack.i.b16 %v1310_v2, %v1308_v4  ;;  %v1320_v9 = vshrl.u32 %v1308_v4, 16 }
 0x32a   : > { %v1322_v11 = vpack.i.b16 %v1321_v6, %v1320_v9  ;;  %v1332_v12 = vperm.slane %v1319_v7, %v2603_v49 }
 0x32c   : > { %v1333_v14 = vrot.slane %v1332_v12, 4  ;;  %v1336_v15 = vsel %vm585_vm6, %v1332_v12, %v1335_v10  ;;  %v1358_v16 = vperm.slane %v1322_v11, %v2603_v49 }
 0x32d   : > { %v1344_v17 = vperm.slane %v1336_v15, %v2607_v62 }
 0x32e   : > { %v1334_v18 = vsel %vm585_vm6, %v1333_v14, %v1327_v3  ;;  %v1359_v19 = vrot.slane %v1358_v16, 4  ;;  %v1362_v20 = vsel %vm585_vm6, %v1358_v16, %v1361_v13 }
 0x32f   : > { %v1340_v21 = vperm.slane %v1334_v18, %v2607_v62  ;;  %v1347_v22 = vrot.slane %v1344_v17, 4  ;;  %v1370_v23 = vperm.slane %v1362_v20, %v2607_v62 }
 0x330   : > { %v1360_v24 = vsel %vm585_vm6, %v1359_v19, %v1353_v5 }
 0x331   : > { %v1345_v25 = vrot.slane %v1340_v21, 4  ;;  %v1348_v26 = vsel %vm585_vm6, 0, %v1347_v22  ;;  %v1366_v27 = vperm.slane %v1360_v24, %v2607_v62  ;;  %v1373_v28 = vrot.slane %v1370_v23, 4 }
 0x332   : > { %v1380_v29 = vrot.slane %v1348_v26, 4  ;;  %v1375_v35 = vsel %vm585_vm6, %v1347_v22, %v1340_v21 }
 0x333   : > { %v1346_v31 = vsel %vm585_vm6, 0, %v1345_v25  ;;  %v1371_v32 = vrot.slane %v1366_v27, 4  ;;  %v1374_v33 = vsel %vm585_vm6, 0, %v1373_v28  ;;  %v1394_v40 = vsel %vm585_vm6, %v1373_v28, %v1366_v27 }
 0x334   : > { %v1399_v34 = vrot.slane %v1374_v33, 4  ;;  %v1381_v36 = vsel %vm585_vm6, %v1380_v29, %v1346_v31  ;;  %v1379_v43 = vperm.slane %v1375_v35, %v2603_v49  ;;  %v1398_v47 = vperm.slane %v1394_v40, %v2603_v49 }
 0x335   : > { %v1372_v37 = vsel %vm585_vm6, 0, %v1371_v32  ;;  %v1385_v38 = vperm.slane %v1381_v36, %v2603_v49 }
 0x336   : > { %v1400_v41 = vsel %vm585_vm6, %v1399_v34, %v1372_v37 }
 0x337   : > { %v1386_v44 = vrot.slane %v1385_v38, 4  ;;  %v1404_v45 = vperm.slane %v1400_v41, %v2603_v49 }
 0x339   : > { %v1387_v46 = vsel %vm585_vm6, %v1386_v44, %v1379_v43  ;;  %v1405_v48 = vrot.slane %v1404_v45, 4 }
 0x33a   : > { %v1391_v50 = vperm.slane %v1387_v46, %v2607_v62 }
 0x33b   : > { %v1406_v51 = vsel %vm585_vm6, %v1405_v48, %v1398_v47 }
 0x33c   : > { %v1410_v52 = vperm.slane %v1406_v51, %v2607_v62  ;;  %v1392_v53 = vrot.slane %v1391_v50, 4  ;;  %v1416_v57 = vshrl.u32 %v1391_v50, 16 }
 0x33d   : > { %v1441_v54 = vpop.f32.mrf.mxu1 }
 0x33e   : > { %v1504_v55 = vsel %vm681_vm8, %v1441_v54, -1e+30  ;;  %v1415_v56 = vpack.i.b16 %v1410_v52, %v1391_v50  ;;  %v1417_v58 = vshrl.u32 %v1410_v52, 16  ;;  %v1393_v60 = vsel %vm585_vm6, 0, %v1392_v53 }
 0x33f   : > { %v1508_v59 = vsel %vm1425_vm7, %v1504_v55, -inf  ;;  %v1411_v61 = vrot.slane %v1410_v52, 4  ;;  %v1422_v6 = vshrl.u32 %v1393_v60, 16 }
 0x340   : > { %1509 = vmax.xlane.f32.xlu2 %v1508_v59  ;;  %v1581_v63 = vsel %vm1579_vm9, %v1415_v56, 0  ;;  %v1418_v1 = vpack.i.b16 %v1417_v58, %v1416_v57 }
 0x341   : > { %1590 = vmatpush.bf16.msrb.mxu1 %v1581_v63  ;;  %v1412_v2 = vsel %vm585_vm6, 0, %v1411_v61 }
 0x342   : > { %v1498_v3 = vpop.f32.mrf.mxu0  ;;  %v1600_v4 = vsel %vm1579_vm9, %v1418_v1, 0  ;;  %v1421_v5 = vpack.i.b16 %v1412_v2, %v1393_v60  ;;  %v1423_v7 = vshrl.u32 %v1412_v2, 16 }
 0x343   : > { %1609 = vmatpush.bf16.msrb.mxu2 %v1600_v4  ;;  %v1507_v20 = vsel %vm681_vm8, %v1498_v3, -1e+30 }
 0x344   : > { %v1619_v9 = vsel %vm1579_vm9, %v1421_v5, 0  ;;  %v1424_v10 = vpack.i.b16 %v1423_v7, %v1422_v6  ;;  %v1517_v23 = vsel %vm1425_vm7, %v1507_v20, -inf }
 0x345   : > { %v1443_v11 = vpop.f32.mrf.mxu1  ;;  %v1460_v12 = vpop.f32.mrf.mxu2  ;;  %1628 = vmatpush.bf16.msrb.mxu3 %v1619_v9 }
 0x346   : > { %v1505_v13 = vsel %vm681_vm8, %v1460_v12, -1e+30  ;;  %v1479_v14 = vpop.f32.mrf.mxu3  ;;  %v1638_v15 = vsel %vm1579_vm9, %v1424_v10, 0 }
 0x347   : > { %v1506_v16 = vsel %vm681_vm8, %v1479_v14, -1e+30  ;;  %1647 = vmatpush.bf16.msra.mxu0 %v1638_v15  ;;  %v1511_v17 = vsel %vm1425_vm7, %v1505_v13, -inf }
 0x348   : > { %1512 = vmax.xlane.f32.xlu1 %v1511_v17  ;;  %v1514_v18 = vsel %vm1425_vm7, %v1506_v16, -inf }
 0x349   : > { %1515 = vmax.xlane.f32.xlu0 %v1514_v18 }
 0x34a   : > { %v1500_v19 = vpop.f32.mrf.mxu0 }
 0x34d   : > { %v1462_v21 = vpop.f32.mrf.mxu2 }
 0x34e   : > { %v1481_v22 = vpop.f32.mrf.mxu3 }
 0x351   : > { %1518 = vmax.xlane.f32.xlu0 %v1517_v23 }
 0x3b3   : > { %v1510_v24 = vpop.xlane.xlu2 %1509 }
 0x3b4   : > { %v1520_v25 = vmax.f32 %v1510_v24, -1e+30 }
 0x3b6   : > { %v1536_v26 = vsub.f32 %v1504_v55, %v1520_v25  ;;  %v1524_v53 = vsub.f32 -1e+30, %v1520_v25 }
 0x3b8   : > { %v1540_v27 = vmul.f32 1.442695, %v1536_v26  ;;  %v1528_v55 = vmul.f32 1.442695, %v1524_v53 }
 0x3ba   : > { %2320 = vpow2.f32 %v1540_v27 }
 0x3bb   : > { %v1513_v28 = vpop.xlane.xlu1 %1512 }
 0x3bc   : > { %v1521_v29 = vmax.f32 %v1513_v28, -1e+30  ;;  %v1516_v30 = vpop.xlane.xlu0 %1515 }
 0x3bd   : > { %v1522_v31 = vmax.f32 %v1516_v30, -1e+30 }
 0x3be   : > { %v1537_v32 = vsub.f32 %v1505_v13, %v1521_v29  ;;  %v1525_v54 = vsub.f32 -1e+30, %v1521_v29 }
 0x3bf   : > { %v1538_v33 = vsub.f32 %v1506_v16, %v1522_v31  ;;  %v1526_v56 = vsub.f32 -1e+30, %v1522_v31 }
 0x3c0   : > { %v1542_v34 = vmul.f32 1.442695, %v1537_v32  ;;  %v2321_v35 = vpop.eup %2320  ;;  %v1530_v58 = vmul.f32 1.442695, %v1525_v54 }
 0x3c1   : > { %v1544_v36 = vmul.f32 1.442695, %v1538_v33  ;;  %v1552_v37 = vsel %vm1425_vm7, %v2321_v35, 0.0  ;;  %v1572_v38 = vpack.c.bf16 %v2321_v35, %v2321_v35  ;;  %v1532_v59 = vmul.f32 1.442695, %v1526_v56 }
 0x3c2   : > { %2322 = vpow2.f32 %v1542_v34  ;;  %1553 = vadd.xlane.f32.xlu1 %v1552_v37 }
 0x3c3   : > { %2170 = vmatmul.msk.bf16.vlgmr.msrb.gmra.mxu1 %vm1425_vm7, %v1572_v38  ;;  %2324 = vpow2.f32 %v1544_v36 }
 0x3c4   : > { %v1519_v39 = vpop.xlane.xlu0 %1518 }
 0x3c5   : > { %v1523_v40 = vmax.f32 %v1519_v39, -1e+30 }
 0x3c7   : > { %v1539_v41 = vsub.f32 %v1507_v20, %v1523_v40  ;;  %v1527_v57 = vsub.f32 -1e+30, %v1523_v40 }
 0x3c8   : > { %v2323_v42 = vpop.eup %2322 }
 0x3c9   : > { %v1546_v43 = vmul.f32 1.442695, %v1539_v41  ;;  %v1573_v44 = vpack.c.bf16 %v2323_v42, %v2323_v42  ;;  %v2325_v45 = vpop.eup %2324  ;;  %v1555_v52 = vsel %vm1425_vm7, %v2323_v42, 0.0  ;;  %v1534_v60 = vmul.f32 1.442695, %v1527_v57 }
 0x3ca   : > { %v1558_v46 = vsel %vm1425_vm7, %v2325_v45, 0.0  ;;  %v1574_v47 = vpack.c.bf16 %v2325_v45, %v2325_v45 }
 0x3cb   : > { %2326 = vpow2.f32 %v1546_v43  ;;  %2171 = vmatmul.msk.bf16.vlgmr.msrb.gmra.mxu2 %vm1425_vm7, %v1573_v44  ;;  %1559 = vadd.xlane.f32.xlu2 %v1558_v46 }
 0x3cc   : > { %2172 = vmatmul.msk.bf16.vlgmr.msrb.gmra.mxu3 %vm1425_vm7, %v1574_v47  ;;  %2328 = vpow2.f32 %v1528_v55 }
 0x3cd   : > { %2330 = vpow2.f32 %v1530_v58 }
 0x3ce   : > { %2332 = vpow2.f32 %v1532_v59 }
 0x3cf   : > { %2334 = vpow2.f32 %v1534_v60 }
 0x3d1   : > { %v2327_v48 = vpop.eup %2326 }
 0x3d2   : > { %v1575_v50 = vpack.c.bf16 %v2327_v48, %v2327_v48  ;;  %v1561_v51 = vsel %vm1425_vm7, %v2327_v48, 0.0  ;;  %v2329_v61 = vpop.eup %2328 }
 0x3d3   : > { %1562 = vadd.xlane.f32.xlu0 %v1561_v51  ;;  %1556 = vadd.xlane.f32.xlu2 %v1555_v52  ;;  %v2331_v3 = vpop.eup %2330  ;;  %v1548_v4 = vmul.f32 0.0, %v2329_v61 }
 0x3d4   : > { %2173 = vmatmul.msk.bf16.vlgmr.msra.gmra.mxu0 %vm1425_vm7, %v1575_v50  ;;  %v2333_v5 = vpop.eup %2332  ;;  %v1549_v10 = vmul.f32 0.0, %v2331_v3 }
 0x3d5   : > { %v2335_v6 = vpop.eup %2334  ;;  %v1550_v9 = vmul.f32 0.0, %v2333_v5 }
 0x3d6   : > { %v1551_v13 = vmul.f32 0.0, %v2335_v6 }
 0x435   : > { %v1554_v2 = vpop.xlane.xlu1 %1553 }
 0x436   : > { %v1564_v7 = vadd.f32 %v1554_v2, %v1548_v4 }
 0x438   : > { %2336 = vrcp.f32 %v1564_v7 }
 0x43e   : > { %v1560_v63 = vpop.xlane.xlu2 %1559  ;;  %v2337_v19 = vpop.eup %2336 }
 0x43f   : > { %v1566_v14 = vadd.f32 %v1560_v63, %v1550_v9 }
 0x440   : > { %v1592_v1 = vpop.f32.mrf.mxu1 }
 0x441   : > { %v1653_v18 = vadd.f32 %v1592_v1, %v1548_v4 }
 0x443   : > { %v1661_v21 = vmul.f32 %v2337_v19, %v1653_v18 }
 0x445   : > { %v1668_v31 = vrot.slane %v1661_v21, 4 }
 0x446   : > { %v1563_v11 = vpop.xlane.xlu0 %1562  ;;  %v1557_v12 = vpop.xlane.xlu2 %1556 }
 0x447   : > { %v1565_v15 = vadd.f32 %v1557_v12, %v1549_v10  ;;  %v1567_v17 = vadd.f32 %v1563_v11, %v1551_v13 }
 0x448   : > { %v1594_v16 = vpop.f32.mrf.mxu1 }
 0x449   : > { %2338 = vrcp.f32 %v1565_v15 }
 0x44a   : > { %2340 = vrcp.f32 %v1566_v14 }
 0x44b   : > { %2342 = vrcp.f32 %v1567_v17 }
 0x44e   : > { %v1611_v20 = vpop.f32.mrf.mxu2 }
 0x44f   : > { %v1654_v22 = vadd.f32 %v1611_v20, %v1549_v10  ;;  %v2339_v23 = vpop.eup %2338  ;;  %v1630_v24 = vpop.f32.mrf.mxu3 }
 0x450   : > { %v1655_v26 = vadd.f32 %v1630_v24, %v1550_v9  ;;  %v2341_v28 = vpop.eup %2340 }
 0x451   : > { %v1662_v25 = vmul.f32 %v2339_v23, %v1654_v22  ;;  %v1649_v27 = vpop.f32.mrf.mxu0  ;;  %v2343_v30 = vpop.eup %2342 }
 0x452   : > { %v1656_v29 = vadd.f32 %v1649_v27, %v1551_v13  ;;  %v1663_v33 = vmul.f32 %v2341_v28, %v1655_v26 }
 0x453   : > { %v1680_v32 = vrot.slane %v1662_v25, 4 }
 0x454   : > { %v1664_v34 = vmul.f32 %v2343_v30, %v1656_v29  ;;  %v1665_v35 = vrot.slane %v1663_v33, 4  ;;  %v1669_v36 = vsel %vm585_vm6, %v1663_v33, %v1668_v31 }
 0x455   : > { %v1677_v37 = vperm.slane %v1669_v36, %v2603_v49 }
 0x456   : > { %v1678_v38 = vrot.slane %v1664_v34, 4  ;;  %v1681_v39 = vsel %vm585_vm6, %v1664_v34, %v1680_v32  ;;  %v1613_v40 = vpop.f32.mrf.mxu2  ;;  %v1667_v41 = vsel %vm585_vm6, %v1665_v35, %v1661_v21 }
 0x457   : > { %v1689_v42 = vperm.slane %v1681_v39, %v2603_v49  ;;  %v1673_v43 = vperm.slane %v1667_v41, %v2603_v49  ;;  %v1704_v44 = vrot.slane %v1677_v37, 4  ;;  %v1632_v46 = vpop.f32.mrf.mxu3 }
 0x458   : > { %v1679_v45 = vsel %vm585_vm6, %v1678_v38, %v1662_v25 }
 0x459   : > { %v1685_v47 = vperm.slane %v1679_v45, %v2603_v49  ;;  %v1702_v48 = vrot.slane %v1689_v42, 4  ;;  %v1651_v50 = vpop.f32.mrf.mxu0  ;;  %v1692_v51 = vrot.slane %v1673_v43, 4  ;;  %v1705_v52 = vsel %vm585_vm6, %v1689_v42, %v1704_v44  ;;  %v2311_v45 = vld [vmem:[%s2877_s6] ss:$0 sm:$0xff] }
 0x45a   : > { %v1713_v55 = vperm.slane %v1705_v52, %v2607_v62 }
 0x45b   : > { %v1690_v53 = vrot.slane %v1685_v47, 4  ;;  %v1703_v54 = vsel %vm585_vm6, %v1702_v48, %v1677_v37  ;;  %v1693_v56 = vsel %vm585_vm6, %v1685_v47, %v1692_v51  ;;  %v2231_v37 = vld [vmem:[%s2876_s5 + $0x8] sm:$0xff] }
 0x45c   : > { %v1709_v57 = vperm.slane %v1703_v54, %v2607_v62  ;;  %v1701_v59 = vperm.slane %v1693_v56, %v2607_v62  ;;  %v1720_v60 = vrot.slane %v1713_v55, 4  ;;  %1824 = vmatpush.bf16.msra.mxu1 %v2231_v37 }
 0x45d   : > { %v1691_v58 = vsel %vm585_vm6, %v1690_v53, %v1673_v43 }
 0x45e   : > { %v1697_v61 = vperm.slane %v1691_v58, %v2607_v62  ;;  %v1718_v63 = vrot.slane %v1709_v57, 4  ;;  %v1716_v1 = vrot.slane %v1701_v59, 4  ;;  %v1721_v2 = vsel %vm585_vm6, 0.0, %v1720_v60  ;;  %v2241_v58 = vld [vmem:[%s2882_s11 + $0x38] sm:$0xff] }
 0x45f   : > { %v1733_v3 = vsel %vm585_vm6, %v1720_v60, %v1709_v57  ;;  %v1738_v4 = vrot.slane %v1721_v2, 4  ;;  %v2233_v57 = vld [vmem:[%s2880_s9 + $0x8] sm:$0xff]  ;;  %1986 = vmatpush.bf16.msra.mxu3 %v2241_v58 }
 0x460   : > { %v1714_v5 = vrot.slane %v1697_v61, 4  ;;  %v1719_v6 = vsel %vm585_vm6, 0.0, %v1718_v63  ;;  %v1737_v7 = vperm.slane %v1733_v3, %v2603_v49  ;;  %v1717_v9 = vsel %vm585_vm6, 0.0, %v1716_v1  ;;  %1901 = vmatpush.bf16.msra.mxu2 %v2233_v57 }
 0x461   : > { %v1722_v10 = vsel %vm585_vm6, %v1716_v1, %v1697_v61  ;;  %v1727_v13 = vrot.slane %v1717_v9, 4  ;;  %v1739_v14 = vsel %vm585_vm6, %v1738_v4, %v1719_v6  ;;  %v2240_v61 = vld [vmem:[%s2882_s11 + $0x30] sm:$0xff] }
 0x462   : > { %v1715_v11 = vsel %vm585_vm6, 0.0, %v1714_v5  ;;  %v1726_v12 = vperm.slane %v1722_v10, %v2603_v49  ;;  %v1743_v15 = vperm.slane %v1739_v14, %v2603_v49  ;;  %v1758_v16 = vrot.slane %v1737_v7, 4  ;;  %v2313_v10 = vld [vmem:[%s2879_s8] ss:$0 sm:$0xff]  ;;  %v2239_v14 = vld [vmem:[%s2882_s11 + $0x28] sm:$0xff] }
 0x463   : > { %v1728_v17 = vsel %vm585_vm6, %v1727_v13, %v1715_v11  ;;  %1987 = vmatpush.bf16.msra.mxu3 %v2240_v61 }
 0x464   : > { %v1746_v18 = vrot.slane %v1726_v12, 4  ;;  %v1732_v19 = vperm.slane %v1728_v17, %v2603_v49  ;;  %v1759_v20 = vsel %vm585_vm6, %v1743_v15, %v1758_v16  ;;  %v1756_v21 = vrot.slane %v1743_v15, 4  ;;  %v2238_v15 = vld [vmem:[%s2882_s11 + $0x20] sm:$0xff]  ;;  %v2237_v16 = vld [vmem:[%s2882_s11 + $0x18] sm:$0xff]  ;;  %v2236_v17 = vld [vmem:[%s2882_s11 + $0x10] sm:$0xff] }
 0x465   : > { %v1767_v22 = vperm.slane %v1759_v20, %v2607_v62  ;;  %v2314_v20 = vld [vmem:[%s2881_s10] ss:$0 sm:$0xff] }
 0x466   : > { %v1747_v23 = vsel %vm585_vm6, %v1732_v19, %v1746_v18  ;;  %v1744_v24 = vrot.slane %v1732_v19, 4  ;;  %v1757_v25 = vsel %vm585_vm6, %v1756_v21, %v1737_v7  ;;  %v2235_v18 = vld [vmem:[%s2882_s11 + $0x8] sm:$0xff]  ;;  %v2234_v19 = vld [vmem:[%s2882_s11] sm:$0xff] }
 0x467   : > { %v1755_v26 = vperm.slane %v1747_v23, %v2607_v62  ;;  %v1772_v27 = vrot.slane %v1767_v22, 4  ;;  %v1763_v28 = vperm.slane %v1757_v25, %v2607_v62  ;;  %1988 = vmatpush.bf16.msra.mxu3 %v2239_v14 }
 0x468   : > { %v1745_v29 = vsel %vm585_vm6, %v1744_v24, %v1726_v12 }
 0x469   : > { %v1773_v30 = vsel %vm585_vm6, %v1772_v27, %v1755_v26  ;;  %v1774_v49 = vrot.slane %v1755_v26, 4  ;;  %v1751_v31 = vperm.slane %v1745_v29, %v2607_v62  ;;  %v1768_v32 = vrot.slane %v1763_v28, 4  ;;  %v2230_v62 = vld [vmem:[%s2876_s5] sm:$0xff] }
 0x46a   : > { %1781 = vrot.lane.b32.xlu0 %v1773_v30, %s2436_s19  ;;  %1825 = vmatpush.bf16.msra.mxu1 %v2230_v62  ;;  %s445_s19 = scalar_lea.vmem [#allocation5], %s2144_s2  ;;  %s2368_s2 = scalar_lea.hbm %s2884_s13, 16 }
 0x46b   : > { %v1775_v33 = vsel %vm585_vm6, %v1767_v22, %v1774_v49  ;;  %v1770_v34 = vrot.slane %v1751_v31, 4  ;;  %v1769_v35 = vsel %vm585_vm6, %v1768_v32, %v1751_v31  ;;  %1989 = vmatpush.bf16.msra.mxu3 %v2238_v15 }
 0x46c   : > { %1785 = vrot.lane.b32.xlu2 %v1775_v33, %s2437_s22  ;;  %v2315_v33 = vld [vmem:[%s2883_s12] ss:$0 sm:$0xff]  ;;  %s2015_s22 = sshll.u32 %s445_s19, 4  ;;  %s2016_s22 = int_to_ptr.vmem [resolvable:$true] %s2015_s22 }
 0x46d   : > { %v1771_v36 = vsel %vm585_vm6, %v1763_v28, %v1770_v34 }
 0x46e   : > { %1777 = vrot.lane.b32.xlu1 %v1771_v36, %s2438_s23  ;;  %s2225_s23 = sshll.u32 %s2418_s28, 3  ;;  %s2002_s28 = scalar_lea.sflag [#allocation6], %s443_s1 }
 0x46f   : > { %1990 = vmatpush.bf16.msra.mxu3 %v2237_v16  ;;  %s2013_s17 = scalar_lea.hbm %s2884_s13, %s2225_s23 }
 0x470   : > { %s2017_s3 = sshll.u32 %s2013_s17, 4  ;;  %s2018_s3 = int_to_ptr.hbm [resolvable:$true] %s2017_s3 }
 0x471   : > { %s2362_s4 = sshra.s32 %s2018_s3, 4  ;;  %s2363_s4 = int_to_ptr.hbm [resolvable:$true] %s2362_s4 }
 0x472   : > { %s2364_s24 = scalar_lea.hbm %s2363_s4, 8  ;;  %p2369_p1 = scmp.lt.s32.totalorder %s2363_s4, %s2884_s13 }
 0x473   : > { %1991 = vmatpush.bf16.msra.mxu3 %v2236_v17  ;;  %p2365_p12 = scmp.ne.s32.totalorder %s2363_s4, %s2364_s24  ;;  %p2370_p2 = scmp.lt.s32.totalorder %s2368_s2, %s2364_s24 }
 0x475   : > { %p2366_p13 = pnand %p2365_p12, %p2549_p4  ;;  %p2371_p3 = por %p2370_p2, %p2369_p1 }
 0x477   : > { %1992 = vmatpush.bf16.msra.mxu3 %v2235_v18  ;;  %p2367_p0 = pneg %p2366_p13 }
 0x479   : > { %p2372_p5 = pnand %p2371_p3, %p2367_p0 }
 0x47b   : > { %1993 = vmatpush.bf16.msra.mxu3 %v2234_v19 }
 0x4c6   : > { %v1786_v41 = vpop.permute.xlu2 %1785 }
 0x4dc   : > { %v1782_v39 = vpop.permute.xlu0 %1781 }
 0x4e0   : > { %v1778_v38 = vpop.permute.xlu1 %1777 }
 0x4e1   : > { %v1788_v40 = vsel %vm1425_vm7, %v1769_v35, %v1778_v38 }
 0x4e2   : > { %v1790_v42 = vsel %vm1789_vm10, %v1788_v40, %v1782_v39 }
 0x4e3   : > { %v1792_v43 = vsel %vm1791_vm11, %v1790_v42, %v1786_v41 }
 0x4e4   : > { %v1793_v44 = vpack.c.bf16 %v1792_v43, %v1792_v43 }
 0x4e6   : > { %2182 = vmatmul.msk.bf16.vlgmr.msra.gmra.mxu1 %vm458_vm0, %v1793_v44 }
 0x563   : > { %v1827_v46 = vpop.f32.mrf.mxu1 }
 0x564   : > { %v1828_v47 = vadd.f32 %v2311_v45, %v1827_v46 }
 0x566   : > { %v2781_v48 = vadd.f32 %v1828_v47, %v2569_v0  ;;  %v2232_v0 = vld [vmem:[%s2880_s9] sm:$0xff] }
 0x567   : > { %1902 = vmatpush.bf16.msra.mxu2 %v2232_v0 }
 0x568   : > { %v1834_v50 = vsel %vm458_vm0, %v2781_v48, 0.0 }
 0x569   : > { %1835 = vadd.xlane.f32.xlu0 %v1834_v50 }
 0x56b   : > { %v1829_v51 = vpop.f32.mrf.mxu1 }
 0x5dc   : > { %v1836_v52 = vpop.xlane.xlu0 %1835 }
 0x5dd   : > { %v1844_v53 = vmul.f32 %v1836_v52, %v2573_v8 }
 0x5df   : > { %v1845_v54 = vsub.f32 %v2781_v48, %v1844_v53 }
 0x5e1   : > { %v1846_v55 = vmul.f32 %v1845_v54, %v1845_v54 }
 0x5e3   : > { %v1847_v56 = vsel %vm458_vm0, %v1846_v55, 0.0 }
 0x5e4   : > { %1848 = vadd.xlane.f32.xlu1 %v1847_v56 }
 0x657   : > { %v1849_v59 = vpop.xlane.xlu1 %1848 }
 0x658   : > { %v1850_v60 = vmul.f32 %v1849_v59, %v2573_v8  ;;  %v2312_v8 = vld [vmem:[%s2878_s7] ss:$0 sm:$0xff] }
 0x65a   : > { %v1851_v63 = vadd.f32 1e-05, %v1850_v60 }
 0x65c   : > { %2344 = vrsqrt.f32 %v1851_v63  ;;  %vm1858_vm13 = vweird.f32 %v1851_v63 }
 0x662   : > { %v2345_v1 = vpop.eup %2344 }
 0x663   : > { %v1853_v2 = vmul.f32 %v2345_v1, %v1851_v63  ;;  %vm1859_vm12 = vweird.f32 %v2345_v1 }
 0x664   : > { %vm1860_vm14 = vmor %vm1858_vm13, %vm1859_vm12 }
 0x665   : > { %v1854_v3 = vmul.f32 %v2345_v1, %v1853_v2 }
 0x667   : > { %v1855_v4 = vmul.f32 0.5, %v1854_v3 }
 0x669   : > { %v1856_v5 = vsub.f32 1.5, %v1855_v4 }
 0x66b   : > { %v1857_v6 = vmul.f32 %v2345_v1, %v1856_v5 }
 0x66d   : > { %v1861_v7 = vsel %vm1860_vm14, %v2345_v1, %v1857_v6 }
 0x66e   : > { %v1862_v9 = vmul.f32 %v1861_v7, %v1845_v54 }
 0x670   : > { %v1866_v11 = vmul.f32 %v2312_v8, %v1862_v9 }
 0x672   : > { %v1870_v12 = vadd.f32 %v2313_v10, %v1866_v11 }
 0x674   : > { %v1871_v13 = vpack.c.bf16 %v1870_v12, %v1870_v12 }
 0x676   : > { %2191 = vmatmul.msk.bf16.vlgmr.msra.gmra.mxu2 %vm458_vm0, %v1871_v13 }
 0x6f9   : > { %v1904_v21 = vpop.f32.mrf.mxu2 }
 0x6fa   : > { %v1905_v22 = vadd.f32 %v2314_v20, %v1904_v21 }
 0x6fc   : > { %v1909_v23 = vmul.f32 0.044715, %v1905_v22  ;;  %v1908_v30 = vmul.f32 0.5, %v1905_v22 }
 0x6fe   : > { %v1910_v24 = vmul.f32 %v1909_v23, %v1905_v22 }
 0x700   : > { %v1911_v25 = vmul.f32 %v1910_v24, %v1905_v22 }
 0x701   : > { %v1906_v26 = vpop.f32.mrf.mxu2 }
 0x702   : > { %v1912_v27 = vadd.f32 %v1911_v25, %v1905_v22 }
 0x704   : > { %v1913_v28 = vmul.f32 0.7978846, %v1912_v27 }
 0x706   : > { %2346 = vtanh.f32 %v1913_v28 }
 0x70c   : > { %v2347_v29 = vpop.eup %2346 }
 0x70d   : > { %v1915_v49 = vadd.f32 1.0, %v2347_v29 }
 0x70f   : > { %v1916_v31 = vmul.f32 %v1915_v49, %v1908_v30 }
 0x711   : > { %v1917_v32 = vpack.c.bf16 %v1916_v31, %v1916_v31 }
 0x713   : > { %1994 = vmatmul.bf16.vlgmr.msra.gmra.mxu3 %v1917_v32 }
 0x796   : > { %v1995_v34 = vpop.f32.mrf.mxu3 }
 0x797   : > { %v1996_v35 = vadd.f32 %v2315_v33, %v1995_v34 }
 0x799   : > { %v1999_v36 = vadd.f32 %v1996_v35, %v2781_v48 }
 0x79b   : > { %2000 = vst.msk [vmem:[%s445_s19] sm:$0xff] %vm458_vm0, %v1999_v36 }
 0x79c   : > { %2375 = shalt.err (!%p2372_p5)
}
 0x79d   : > { %2242 = dma.vmem_to_hbm [thread:$0]  (%p2549_p4), %s2016_s22, 128, %s2018_s3, %s2002_s28  }
 0x79e   : > { %v1997_v37 = vpop.f32.mrf.mxu3 }
 0x79f PF: > { %p2248_p6 = scmp.ge.s32.totalorder %s2426_s30, 2  ;;  %s2029_s1 = sand.u32 1, %s2406_s25  }
 0x7a0   : > { %s2030_s17 = scalar_lea.sflag [#allocation6], %s2029_s1 }
 0x7a1   : > { %p2245_p7 = pnand %p2248_p6, %p2556_p8 }
 0x7a3   : > { %p2246_p9 = pneg %p2245_p7 }
 0x7a5   : > { %2401 = dma.done.wait (%p2246_p9), %s2030_s17, 128  }
 0x7a6   : > { %2403 = vsyncadd (%p2246_p9), %s2030_s17, 4294967168  ;;  %s26_s30 = sadd.s32 1, %s2426_s30   ;;  %s2897_s25 = smov %s2410_s26 }
 0x7a7   : > { %p23_p10 = scmp.ge.s32.totalorder %s26_s30, 4   ;;  %s2898_s26 = smov %s2414_s27 }
 0x7a8   : > { %s2899_s27 = smov %s2562_s21  ;;  %s2900_s28 = smov %s2422_s29 }
 0x7a9   : > { %s2901_s29 = smov %s2903_s16  ;;  %25 = sbr.rel (!%p23_p10) target bundleno = 10 (0xa), region = 135 }
 0x7ae   :  { %2036 = vsyncpa [#allocation6], 1 }
 0x7af   :  { %2038 = vsyncpa [#allocation6 + $0x1], 1 }

</bundles_post_ra>
